<compile_context>
chip_gen: v6e
topology: v6e:2x2x1
jax: 0.10.0
libtpu: 0.0.40
codegen_flags: <defaults>
</compile_context>

<pallas_src>
import jax
import jax.numpy as jnp
from jax.experimental import pallas as pl
from jax.experimental.pallas import tpu as pltpu

# Flip to jnp.bfloat16 on v6e/v7x for 2x MXU throughput & half the HBM traffic.
MATMUL_DTYPE = jnp.float32

_VMEM = pl.BlockSpec(memory_space=pltpu.MemorySpace.VMEM)
_SMEM = pl.BlockSpec(memory_space=pltpu.MemorySpace.SMEM)


def _round_up(a, m):
    return ((a + m - 1) // m) * m


def _elu(x):
    # ELU, alpha=1.0 (PyTorch default), computed in f32.
    # TODO(synk): jnp.expm1 would be marginally more accurate near 0-.
    return jnp.where(x > 0, x, jnp.exp(x) - 1.0)


# ----------------------------- Pallas kernels ------------------------------

def conv_elu_kernel(p_ref, w_ref, b_ref, o_ref):
    """im2col matmul + bias + ELU for one (TM, K) row tile.

    p_ref: (TM, K)    im2col patches, K = KH*KW*Cin
    w_ref: (K, Cout)  reshaped conv weight
    b_ref: (1, Cout)  conv bias
    o_ref: (TM, Cout)
    """
    acc = jnp.dot(p_ref[...], w_ref[...], preferred_element_type=jnp.float32)
    acc = acc + b_ref[...]
    o_ref[...] = _elu(acc).astype(o_ref.dtype)


def dual_head_kernel(x_ref, w1_ref, b1_ref, g_ref, be_ref, w2_ref, b2_ref, o_ref):
    """Both MLP heads fused: Linear -> BatchNorm1d(batch stats) -> ELU -> Linear.

    x_ref : (B, N)
    w1_ref: (N, 2H), b1_ref/g_ref/be_ref/w2_ref: (1, 2H)   (head1 | head2 concat)
    b2_ref: (2,) in SMEM
    o_ref : (B, 2)  column 0 = speed, column 1 = angle
    """
    h = jnp.dot(x_ref[...], w1_ref[...], preferred_element_type=jnp.float32)
    h = h + b1_ref[...]

    # BatchNorm1d, training mode: biased batch statistics over the batch dim.
    # (This forces the full batch in one block; keep B un-tiled.)
    mean = jnp.mean(h, axis=0, keepdims=True)
    var = jnp.mean((h - mean) ** 2, axis=0, keepdims=True)
    hn = (h - mean) * jax.lax.rsqrt(var + 1e-5)
    hn = hn * g_ref[...] + be_ref[...]
    hn = _elu(hn)

    # Final Linear(H -> 1) per head as VPU multiply + lane reduction (no 1-wide
    # MXU matmul). Select each head's half with an iota mask to avoid
    # non-128-aligned slices.
    weighted = hn * w2_ref[...]                               # (B, 2H)
    half = weighted.shape[1] // 2
    col = jax.lax.broadcasted_iota(jnp.int32, weighted.shape, 1)
    speed = jnp.sum(jnp.where(col < half, weighted, 0.0), axis=-1, keepdims=True)
    angle = jnp.sum(jnp.where(col >= half, weighted, 0.0), axis=-1, keepdims=True)

    o_ref[:, 0:1] = (speed + b2_ref[0]).astype(o_ref.dtype)
    o_ref[:, 1:2] = (angle + b2_ref[1]).astype(o_ref.dtype)


# ------------------------------ host wrappers -------------------------------

def _im2col_nhwc(x_nhwc, kh, kw, stride):
    """(B, H, W, C) -> (B*OH*OW, KH*KW*C); K order is (kh, kw, c)."""
    B, H, W, C = x_nhwc.shape
    OH = (H - kh) // stride + 1
    OW = (W - kw) // stride + 1
    cols = []
    for i in range(kh):
        for j in range(kw):
            cols.append(x_nhwc[:, i:i + stride * OH:stride,
                               j:j + stride * OW:stride, :])
    p = jnp.stack(cols, axis=3)                        # (B, OH, OW, KH*KW, C)
    return p.reshape(B * OH * OW, kh * kw * C), OH, OW


def conv_elu(x_nhwc, w2d, b2d, *, kh, kw, stride):
    """Conv2d(Cin->Cout, kh x kw, stride, valid) + ELU.

    Returns the natural (B*OH*OW, Cout) layout (== NHWC flatten of the output).
    """
    patches, OH, OW = _im2col_nhwc(x_nhwc, kh, kw, stride)
    M, K = patches.shape
    cout = w2d.shape[1]

    TM = min(1024, _round_up(M, 8))          # row tile, multiple of 8 sublanes
    Mp = _round_up(M, TM)
    if Mp != M:
        patches = jnp.pad(patches, ((0, Mp - M), (0, 0)))
    patches = patches.astype(MATMUL_DTYPE)

    out = pl.pallas_call(
        conv_elu_kernel,
        out_shape=jax.ShapeDtypeStruct((Mp, cout), MATMUL_DTYPE),
        grid=(Mp // TM,),
        in_specs=[
            pl.BlockSpec((TM, K), lambda i: (i, 0)),
            pl.BlockSpec((K, cout), lambda i: (0, 0)),
            pl.BlockSpec((1, cout), lambda i: (0, 0)),
        ],
        out_specs=pl.BlockSpec((TM, cout), lambda i: (i, 0)),
        compiler_params=pltpu.CompilerParams(
            dimension_semantics=("parallel",),
            vmem_limit_bytes=64 * 1024 * 1024,
        ),
    )(patches, w2d, b2d)

    if Mp != M:
        out = out[:M]
    return out, OH, OW


def dual_mlp_head(x, head_params):
    """Both heads in one pallas_call; returns (B, 2) = [speed, angle]."""
    w1, b1, g, be, w2, b2 = head_params
    B = x.shape[0]
    return pl.pallas_call(
        dual_head_kernel,
        out_shape=jax.ShapeDtypeStruct((B, 2), jnp.float32),
        in_specs=[_VMEM, _VMEM, _VMEM, _VMEM, _VMEM, _VMEM, _SMEM],
        out_specs=_VMEM,
        compiler_params=pltpu.CompilerParams(vmem_limit_bytes=64 * 1024 * 1024),
    )(x.astype(MATMUL_DTYPE), w1, b1, g, be, w2, b2)


def your_model_forward(img, params):
    """img: (B, 3, H, W) NCHW, as in the PyTorch module."""
    B = img.shape[0]
    x_nhwc = jnp.transpose(img, (0, 2, 3, 1))          # one small input transpose
    feat, OH, OW = conv_elu(x_nhwc, params["conv_w2d"], params["conv_b"],
                            kh=5, kw=5, stride=2)      # (B*OH*OW, 24)
    x = feat.reshape(B, -1)                            # free reshape (NHWC flatten)
    out = dual_mlp_head(x, params["heads"])            # (B, 2)
    return out[:, 0], out[:, 1]                        # (speed, angle)


# ------------------------------ param init ---------------------------------

def init_params(key, imgsize, in_chans=3, cout=24, k=5, stride=2):
    oh = (imgsize - k) // stride + 1
    n = cout * oh * oh            # flattened feature dim ("num_classes" role)
    h = n // 2

    ks = jax.random.split(key, 10)

    def uni(k_, shape, fan_in):
        bound = 1.0 / jnp.sqrt(fan_in)
        return jax.random.uniform(k_, shape, jnp.float32, -bound, bound)

    # Conv weight in PyTorch (Cout, Cin, KH, KW) layout, converted once to the
    # (KH*KW*Cin, Cout) im2col-matmul layout used by the kernel.
    conv_w = uni(ks[0], (cout, in_chans, k, k), in_chans * k * k)
    conv_w2d = conv_w.transpose(2, 3, 1, 0).reshape(k * k * in_chans, cout)
    conv_b = uni(ks[1], (cout,), in_chans * k * k).reshape(1, cout)

    def head(k1, k2, k3, k4):
        # w1 rows are indexed in (oh, ow, cout) NHWC-flatten order; a PyTorch
        # checkpoint (NCHW flatten) would need a one-time row permutation here.
        return (
            uni(k1, (n, h), n),                 # w1 (in, out)
            uni(k2, (1, h), n),                 # b1
            jnp.ones((1, h), jnp.float32),      # gamma
            jnp.zeros((1, h), jnp.float32),     # beta
            uni(k3, (1, h), h),                 # w2 (Linear(h -> 1) weight)
            uni(k4, (1,), h),                   # b2
        )

    h1 = head(ks[2], ks[3], ks[4], ks[5])
    h2 = head(ks[6], ks[7], ks[8], ks[9])

    # Fuse the two heads along the hidden axis -> single pallas_call per batch.
    heads = (
        jnp.concatenate([h1[0], h2[0]], axis=1).astype(MATMUL_DTYPE),  # (n, 2h)
        jnp.concatenate([h1[1], h2[1]], axis=1),                        # (1, 2h)
        jnp.concatenate([h1[2], h2[2]], axis=1),                        # gamma
        jnp.concatenate([h1[3], h2[3]], axis=1),                        # beta
        jnp.concatenate([h1[4], h2[4]], axis=1),                        # (1, 2h)
        jnp.concatenate([h1[5], h2[5]], axis=0),                        # (2,) -> SMEM
    )

    return {
        "conv_w2d": conv_w2d.astype(MATMUL_DTYPE),
        "conv_b": conv_b,
        "heads": heads,
    }


# --------------------------------- main -------------------------------------

if __name__ == "__main__":
    key = jax.random.PRNGKey(0)
    k_img, k_param = jax.random.split(key)

    B, C, IMG = 2, 3, 16                       # conv output: (2, 24, 6, 6) -> N=864
    img = jax.random.normal(k_img, (B, C, IMG, IMG), jnp.float32)
    params = init_params(k_param, IMG, in_chans=C)

    speed, angle = jax.jit(your_model_forward)(img, params)
    jax.block_until_ready((speed, angle))
    assert speed.shape == (B,) and angle.shape == (B,)
    assert bool(jnp.all(jnp.isfinite(speed))) and bool(jnp.all(jnp.isfinite(angle)))
    print("KERNEL_OK")
</pallas_src>

<mosaic_0001>
module attributes {stable_mosaic.version = 11 : i64} {
  func.func @conv_elu_kernel(%arg0: i32, %arg1: memref<72x75xf32, #tpu.memory_space<vmem>>, %arg2: memref<75x24xf32, #tpu.memory_space<vmem>>, %arg3: memref<1x24xf32, #tpu.memory_space<vmem>>, %arg4: memref<72x24xf32, #tpu.memory_space<vmem>>) attributes {dimension_semantics = [#tpu.dimension_semantics<parallel>], iteration_bounds = array<i64: 1>, scalar_prefetch = 0 : i64, scratch_operands = 0 : i64, tpu.core_type = #tpu.core_type<tc>, window_params = [{transform_indices = @transform_0, window_bounds = array<i64: 72, 75>}, {pipeline_mode = #tpu.pipeline_mode<synchronous>, transform_indices = @transform_1, window_bounds = array<i64: 75, 24>}, {pipeline_mode = #tpu.pipeline_mode<synchronous>, transform_indices = @transform_2, window_bounds = array<i64: 1, 24>}, {transform_indices = @transform_3, window_bounds = array<i64: 72, 24>}]} {
    %c0 = arith.constant 0 : index
    %c0_0 = arith.constant 0 : index
    %0 = vector.load %arg1[%c0, %c0_0] : memref<72x75xf32, #tpu.memory_space<vmem>>, vector<72x75xf32>
    %c0_1 = arith.constant 0 : index
    %c0_2 = arith.constant 0 : index
    %1 = vector.load %arg2[%c0_1, %c0_2] : memref<75x24xf32, #tpu.memory_space<vmem>>, vector<75x24xf32>
    %cst = arith.constant dense<0.000000e+00> : vector<72x24xf32>
    %2 = tpu.matmul %0, %1, %cst {dimension_numbers = #tpu.dot_dimension_numbers<[1], [0], [0], [1], [0, 0, 1, 1], [], []>} : vector<72x75xf32>, vector<75x24xf32>, vector<72x24xf32> -> vector<72x24xf32>
    %c0_3 = arith.constant 0 : index
    %c0_4 = arith.constant 0 : index
    %3 = vector.load %arg3[%c0_3, %c0_4] : memref<1x24xf32, #tpu.memory_space<vmem>>, vector<1x24xf32>
    %4 = vector.broadcast %3 : vector<1x24xf32> to vector<72x24xf32>
    %5 = arith.addf %2, %4 : vector<72x24xf32>
    %cst_5 = arith.constant 0.000000e+00 : f32
    %6 = vector.broadcast %cst_5 : f32 to vector<72x24xf32>
    %7 = arith.cmpf ogt, %5, %6 : vector<72x24xf32>
    %8 = math.exp %5 : vector<72x24xf32>
    %cst_6 = arith.constant 1.000000e+00 : f32
    %9 = vector.broadcast %cst_6 : f32 to vector<72x24xf32>
    %10 = arith.subf %8, %9 : vector<72x24xf32>
    %11 = arith.select %7, %5, %10 : vector<72x24xi1>, vector<72x24xf32>
    %c0_7 = arith.constant 0 : index
    %c0_8 = arith.constant 0 : index
    %12 = vector.load %arg4[%c0_7, %c0_8] : memref<72x24xf32, #tpu.memory_space<vmem>>, vector<72x24xf32>
    tpu.vector_store %arg4[%c0_7, %c0_8], %11 {strides = array<i32>} : memref<72x24xf32, #tpu.memory_space<vmem>>, vector<72x24xf32>,
    return
  }
  func.func @transform_0(%arg0: i32) -> (i32, i32) {
    %c0_i32 = arith.constant 0 : i32
    %c0_i32_0 = arith.constant 0 : i32
    return %arg0, %c0_i32 : i32, i32
  }
  func.func @transform_1(%arg0: i32) -> (i32, i32) {
    %c0_i32 = arith.constant 0 : i32
    %c0_i32_0 = arith.constant 0 : i32
    %c0_i32_1 = arith.constant 0 : i32
    return %c0_i32, %c0_i32_0 : i32, i32
  }
  func.func @transform_2(%arg0: i32) -> (i32, i32) {
    %c0_i32 = arith.constant 0 : i32
    %c0_i32_0 = arith.constant 0 : i32
    %c0_i32_1 = arith.constant 0 : i32
    return %c0_i32, %c0_i32_0 : i32, i32
  }
  func.func @transform_3(%arg0: i32) -> (i32, i32) {
    %c0_i32 = arith.constant 0 : i32
    %c0_i32_0 = arith.constant 0 : i32
    return %arg0, %c0_i32 : i32, i32
  }
}

module attributes {stable_mosaic.version = 11 : i64} {
  func.func @dual_head_kernel(%arg0: memref<2x864xf32, #tpu.memory_space<vmem>>, %arg1: memref<864x864xf32, #tpu.memory_space<vmem>>, %arg2: memref<1x864xf32, #tpu.memory_space<vmem>>, %arg3: memref<1x864xf32, #tpu.memory_space<vmem>>, %arg4: memref<1x864xf32, #tpu.memory_space<vmem>>, %arg5: memref<1x864xf32, #tpu.memory_space<vmem>>, %arg6: memref<2xf32, #tpu.memory_space<smem>>, %arg7: memref<2x2xf32, #tpu.memory_space<vmem>>) attributes {dimension_semantics = [], scalar_prefetch = 0 : i64, scratch_operands = 0 : i64, tpu.core_type = #tpu.core_type<tc>} {
    %c0 = arith.constant 0 : index
    %c0_0 = arith.constant 0 : index
    %0 = vector.load %arg0[%c0, %c0_0] : memref<2x864xf32, #tpu.memory_space<vmem>>, vector<2x864xf32>
    %c0_1 = arith.constant 0 : index
    %c0_2 = arith.constant 0 : index
    %1 = vector.load %arg1[%c0_1, %c0_2] : memref<864x864xf32, #tpu.memory_space<vmem>>, vector<864x864xf32>
    %cst = arith.constant dense<0.000000e+00> : vector<2x864xf32>
    %2 = tpu.matmul %0, %1, %cst {dimension_numbers = #tpu.dot_dimension_numbers<[1], [0], [0], [1], [0, 0, 1, 1], [], []>} : vector<2x864xf32>, vector<864x864xf32>, vector<2x864xf32> -> vector<2x864xf32>
    %c0_3 = arith.constant 0 : index
    %c0_4 = arith.constant 0 : index
    %3 = vector.load %arg2[%c0_3, %c0_4] : memref<1x864xf32, #tpu.memory_space<vmem>>, vector<1x864xf32>
    %4 = vector.broadcast %3 : vector<1x864xf32> to vector<2x864xf32>
    %5 = arith.addf %2, %4 : vector<2x864xf32>
    %cst_5 = arith.constant dense<0.000000e+00> : vector<864xf32>
    %6 = vector.multi_reduction <add>, %5, %cst_5 [0] : vector<2x864xf32> to vector<864xf32>
    %7 = vector.shape_cast %6 : vector<864xf32> to vector<1x864xf32>
    %cst_6 = arith.constant 2.000000e+00 : f32
    %8 = vector.broadcast %cst_6 : f32 to vector<1x864xf32>
    %9 = arith.divf %7, %8 : vector<1x864xf32>
    %10 = vector.broadcast %9 : vector<1x864xf32> to vector<2x864xf32>
    %11 = arith.subf %5, %10 : vector<2x864xf32>
    %12 = arith.mulf %11, %11 : vector<2x864xf32>
    %cst_7 = arith.constant dense<0.000000e+00> : vector<864xf32>
    %13 = vector.multi_reduction <add>, %12, %cst_7 [0] : vector<2x864xf32> to vector<864xf32>
    %14 = vector.shape_cast %13 : vector<864xf32> to vector<1x864xf32>
    %cst_8 = arith.constant 2.000000e+00 : f32
    %15 = vector.broadcast %cst_8 : f32 to vector<1x864xf32>
    %16 = arith.divf %14, %15 : vector<1x864xf32>
    %17 = vector.broadcast %9 : vector<1x864xf32> to vector<2x864xf32>
    %18 = arith.subf %5, %17 : vector<2x864xf32>
    %cst_9 = arith.constant 9.99999974E-6 : f32
    %19 = vector.broadcast %cst_9 : f32 to vector<1x864xf32>
    %20 = arith.addf %16, %19 : vector<1x864xf32>
    %21 = math.rsqrt %20 : vector<1x864xf32>
    %22 = vector.broadcast %21 : vector<1x864xf32> to vector<2x864xf32>
    %23 = arith.mulf %18, %22 : vector<2x864xf32>
    %c0_10 = arith.constant 0 : index
    %c0_11 = arith.constant 0 : index
    %24 = vector.load %arg3[%c0_10, %c0_11] : memref<1x864xf32, #tpu.memory_space<vmem>>, vector<1x864xf32>
    %25 = vector.broadcast %24 : vector<1x864xf32> to vector<2x864xf32>
    %26 = arith.mulf %23, %25 : vector<2x864xf32>
    %c0_12 = arith.constant 0 : index
    %c0_13 = arith.constant 0 : index
    %27 = vector.load %arg4[%c0_12, %c0_13] : memref<1x864xf32, #tpu.memory_space<vmem>>, vector<1x864xf32>
    %28 = vector.broadcast %27 : vector<1x864xf32> to vector<2x864xf32>
    %29 = arith.addf %26, %28 : vector<2x864xf32>
    %cst_14 = arith.constant 0.000000e+00 : f32
    %30 = vector.broadcast %cst_14 : f32 to vector<2x864xf32>
    %31 = arith.cmpf ogt, %29, %30 : vector<2x864xf32>
    %32 = math.exp %29 : vector<2x864xf32>
    %cst_15 = arith.constant 1.000000e+00 : f32
    %33 = vector.broadcast %cst_15 : f32 to vector<2x864xf32>
    %34 = arith.subf %32, %33 : vector<2x864xf32>
    %35 = arith.select %31, %29, %34 : vector<2x864xi1>, vector<2x864xf32>
    %c0_16 = arith.constant 0 : index
    %c0_17 = arith.constant 0 : index
    %36 = vector.load %arg5[%c0_16, %c0_17] : memref<1x864xf32, #tpu.memory_space<vmem>>, vector<1x864xf32>
    %37 = vector.broadcast %36 : vector<1x864xf32> to vector<2x864xf32>
    %38 = arith.mulf %35, %37 : vector<2x864xf32>
    %39 = tpu.iota {dimensions = array<i32: 1>} : vector<2x864xi32>
    %c432_i32 = arith.constant 432 : i32
    %40 = vector.broadcast %c432_i32 : i32 to vector<2x864xi32>
    %41 = arith.cmpi slt, %39, %40 : vector<2x864xi32>
    %cst_18 = arith.constant 0.000000e+00 : f32
    %42 = vector.broadcast %cst_18 : f32 to vector<2x864xf32>
    %43 = arith.select %41, %38, %42 : vector<2x864xi1>, vector<2x864xf32>
    %cst_19 = arith.constant dense<0.000000e+00> : vector<2xf32>
    %44 = vector.multi_reduction <add>, %43, %cst_19 [1] : vector<2x864xf32> to vector<2xf32>
    %45 = vector.shape_cast %44 : vector<2xf32> to vector<2x1xf32>
    %c432_i32_20 = arith.constant 432 : i32
    %46 = vector.broadcast %c432_i32_20 : i32 to vector<2x864xi32>
    %47 = arith.cmpi sge, %39, %46 : vector<2x864xi32>
    %cst_21 = arith.constant 0.000000e+00 : f32
    %48 = vector.broadcast %cst_21 : f32 to vector<2x864xf32>
    %49 = arith.select %47, %38, %48 : vector<2x864xi1>, vector<2x864xf32>
    %cst_22 = arith.constant dense<0.000000e+00> : vector<2xf32>
    %50 = vector.multi_reduction <add>, %49, %cst_22 [1] : vector<2x864xf32> to vector<2xf32>
    %51 = vector.shape_cast %50 : vector<2xf32> to vector<2x1xf32>
    %c0_23 = arith.constant 0 : index
    %52 = memref.load %arg6[%c0_23] : memref<2xf32, #tpu.memory_space<smem>>
    %53 = vector.broadcast %52 : f32 to vector<2x1xf32>
    %54 = arith.addf %45, %53 : vector<2x1xf32>
    %c0_24 = arith.constant 0 : index
    %c0_25 = arith.constant 0 : index
    %55 = vector.load %arg7[%c0_24, %c0_25] : memref<2x2xf32, #tpu.memory_space<vmem>>, vector<2x1xf32>
    tpu.vector_store %arg7[%c0_24, %c0_25], %54 {strides = array<i32>} : memref<2x2xf32, #tpu.memory_space<vmem>>, vector<2x1xf32>,
    %c1 = arith.constant 1 : index
    %56 = memref.load %arg6[%c1] : memref<2xf32, #tpu.memory_space<smem>>
    %57 = vector.broadcast %56 : f32 to vector<2x1xf32>
    %58 = arith.addf %51, %57 : vector<2x1xf32>
    %c0_26 = arith.constant 0 : index
    %c1_27 = arith.constant 1 : index
    %59 = vector.load %arg7[%c0_26, %c1_27] : memref<2x2xf32, #tpu.memory_space<vmem>>, vector<2x1xf32>
    tpu.vector_store %arg7[%c0_26, %c1_27], %58 {strides = array<i32>} : memref<2x2xf32, #tpu.memory_space<vmem>>, vector<2x1xf32>,
    return
  }
}

</mosaic_0001>

<bundles_post_ra>
// kernel: your_model_forward.2
= control target key start
LH: loop header
LB: loop body
LE: loop exit
PB: predicated region body
PF: predicated region fallthrough
CT: control target
= control target key end

     0   :  { %vm68_vm0 = vcmask 1042432   ;;  %v367_v0 = vmov 0.0   ;;  %vm40_vm1 = vcmask 613376   ;;  %vm368_vm2 = vmmov 0   ;;  %s532_s1 = inlined_call_operand.vmem [shape: f32[75,24], index: 1, kind: input, shape index: {}]   ;;  %s533_s0 = inlined_call_operand.vmem [shape: f32[72,75], index: 0, kind: input, shape index: {}]   ;;  %s534_s2 = inlined_call_operand.vmem [shape: f32[1,24], index: 2, kind: input, shape index: {}]   ;;  %s535_s3 = inlined_call_operand.vmem [shape: f32[72,24], index: 3, kind: output, shape index: {}]  }
   0x1   :  { %280 = vmatprep.subr.mxu0 %v367_v0  ;;  %327 = vmatprep.subr.mxu1 %v367_v0  ;;  %v32_v1 = vld [vmem:[%s532_s1 + $0x48] sm:$0x7]  ;;  %v31_v2 = vld [vmem:[%s532_s1 + $0x40] sm:$0xff]  ;;  %v30_v3 = vld [vmem:[%s532_s1 + $0x38] sm:$0xff]  ;;  %vm227_vm3 = vcmask 195584  }
   0x2   :  { %281 = vmatpush3.msk.msra.mxu0 %vm68_vm0, %v32_v1  ;;  %337 = vmatpush3.msk.msra.mxu1 %vm68_vm0, %v32_v1  ;;  %v29_v4 = vld [vmem:[%s532_s1 + $0x30] sm:$0xff]  ;;  %v28_v5 = vld [vmem:[%s532_s1 + $0x28] sm:$0xff]  ;;  %v27_v6 = vld [vmem:[%s532_s1 + $0x20] sm:$0xff] }
   0x3   :  { %282 = vmatprep.subr.mxu0 %v367_v0  ;;  %328 = vmatprep.subr.mxu1 %v367_v0  ;;  %v26_v7 = vld [vmem:[%s532_s1 + $0x18] sm:$0xff]  ;;  %v25_v8 = vld [vmem:[%s532_s1 + $0x10] sm:$0xff]  ;;  %v24_v9 = vld [vmem:[%s532_s1 + $0x8] sm:$0xff] }
   0x4   :  { %283 = vmatpush3.msra.mxu0 %v31_v2  ;;  %338 = vmatpush3.msra.mxu1 %v31_v2  ;;  %v23_v10 = vld [vmem:[%s532_s1] sm:$0xff]  ;;  %v19_v12 = vld [vmem:[%s533_s0 + $0x28] sm:$0xff]  ;;  %v20_v14 = vld [vmem:[%s533_s0 + $0x30] sm:$0xff] }
   0x5   :  { %284 = vmatprep.subr.mxu0 %v367_v0  ;;  %329 = vmatprep.subr.mxu1 %v367_v0  ;;  %v14_v11 = vld [vmem:[%s533_s0] sm:$0xff]  ;;  %v15_v13 = vld [vmem:[%s533_s0 + $0x8] sm:$0xff]  ;;  %v16_v15 = vld [vmem:[%s533_s0 + $0x10] sm:$0xff] }
   0x6   :  { %285 = vmatpush3.msra.mxu0 %v30_v3  ;;  %339 = vmatpush3.msra.mxu1 %v30_v3  ;;  %v21_v16 = vld [vmem:[%s533_s0 + $0x38] sm:$0xff]  ;;  %v22_v18 = vld [vmem:[%s533_s0 + $0x40] sm:$0xff] }
   0x7   :  { %286 = vmatprep.subr.mxu0 %v367_v0  ;;  %330 = vmatprep.subr.mxu1 %v367_v0  ;;  %v17_v17 = vld [vmem:[%s533_s0 + $0x18] sm:$0xff]  ;;  %v18_v19 = vld [vmem:[%s533_s0 + $0x20] sm:$0xff] }
   0x8   :  { %287 = vmatpush3.msra.mxu0 %v29_v4  ;;  %340 = vmatpush3.msra.mxu1 %v29_v4  ;;  %v241_v20 = vld [vmem:[%s534_s2] ss:$0 sm:$0xff] }
   0x9   :  { %288 = vmatprep.subr.mxu0 %v367_v0  ;;  %331 = vmatprep.subr.mxu1 %v367_v0 }
   0xa   :  { %289 = vmatpush3.msra.mxu0 %v28_v5  ;;  %341 = vmatpush3.msra.mxu1 %v28_v5 }
   0xb   :  { %290 = vmatprep.subr.mxu0 %v367_v0  ;;  %332 = vmatprep.subr.mxu1 %v367_v0 }
   0xc   :  { %291 = vmatpush3.msra.mxu0 %v27_v6  ;;  %342 = vmatpush3.msra.mxu1 %v27_v6 }
   0xd   :  { %292 = vmatprep.subr.mxu0 %v367_v0  ;;  %333 = vmatprep.subr.mxu1 %v367_v0 }
   0xe   :  { %293 = vmatpush3.msra.mxu0 %v26_v7  ;;  %343 = vmatpush3.msra.mxu1 %v26_v7 }
   0xf   :  { %294 = vmatprep.subr.mxu0 %v367_v0  ;;  %334 = vmatprep.subr.mxu1 %v367_v0 }
  0x10   :  { %295 = vmatpush3.msra.mxu0 %v25_v8  ;;  %344 = vmatpush3.msra.mxu1 %v25_v8 }
  0x11   :  { %296 = vmatprep.subr.mxu0 %v367_v0  ;;  %335 = vmatprep.subr.mxu1 %v367_v0 }
  0x12   :  { %297 = vmatpush3.msra.mxu0 %v24_v9  ;;  %345 = vmatpush3.msra.mxu1 %v24_v9 }
  0x13   :  { %298 = vmatprep.subr.mxu0 %v367_v0  ;;  %336 = vmatprep.subr.mxu1 %v367_v0 }
  0x14   :  { %299 = vmatpush3.msra.mxu0 %v23_v10  ;;  %346 = vmatpush3.msra.mxu1 %v23_v10 }
  0x15   :  { %300 = vmatprep.mubr.msk.f32.mxu0 %vm368_vm2, %v367_v0  ;;  %315 = vmatprep.mubr.msk.f32.mxu1 %vm368_vm2, %v367_v0 }
  0x16   :  { %301 = vmatmul.mubr.msk.f32.vlgmr.msra.gmra.mxu0 %vm40_vm1, %v14_v11  ;;  %316 = vmatmul.mubr.msk.f32.vlgmr.msra.gmra.mxu1 %vm40_vm1, %v19_v12 }
  0x17   :  { %303 = vmatprep.mubr.msk.f32.mxu0 %vm368_vm2, %v367_v0  ;;  %318 = vmatprep.mubr.msk.f32.mxu1 %vm368_vm2, %v367_v0 }
  0x1a   :  { %304 = vmatmul.mubr.msk.f32.gmra.mxu0 %vm40_vm1, %v15_v13  ;;  %319 = vmatmul.mubr.msk.f32.gmra.mxu1 %vm40_vm1, %v20_v14 }
  0x1b   :  { %306 = vmatprep.mubr.msk.f32.mxu0 %vm368_vm2, %v367_v0  ;;  %321 = vmatprep.mubr.msk.f32.mxu1 %vm368_vm2, %v367_v0 }
  0x1e   :  { %307 = vmatmul.mubr.msk.f32.gmra.mxu0 %vm40_vm1, %v16_v15  ;;  %322 = vmatmul.mubr.msk.f32.gmra.mxu1 %vm40_vm1, %v21_v16 }
  0x1f   :  { %309 = vmatprep.mubr.msk.f32.mxu0 %vm368_vm2, %v367_v0  ;;  %324 = vmatprep.mubr.msk.f32.mxu1 %vm368_vm2, %v367_v0 }
  0x22   :  { %310 = vmatmul.mubr.msk.f32.gmra.mxu0 %vm40_vm1, %v17_v17  ;;  %325 = vmatmul.mubr.msk.f32.gmra.mxu1 %vm40_vm1, %v22_v18 }
  0x23   :  { %312 = vmatprep.mubr.msk.f32.mxu0 %vm368_vm2, %v367_v0 }
  0x26   :  { %313 = vmatmul.mubr.msk.f32.gmra.mxu0 %vm40_vm1, %v18_v19 }
  0xd6   :  { %v138_v21 = vpop.f32.mrf.mxu0  ;;  %v163_v22 = vpop.f32.mrf.mxu1 }
  0xd7   :  { %v139_v23 = vadd.f32 %v241_v20, %v138_v21  ;;  %v164_v24 = vadd.f32 %v241_v20, %v163_v22 }
  0xd8   :  { %v302_v25 = vpop.f32.mrf.mxu0  ;;  %v317_v26 = vpop.f32.mrf.mxu1 }
  0xd9   :  { %v191_v27 = vmul.f32 1.442695, %v139_v23  ;;  %v201_v28 = vmul.f32 1.442695, %v164_v24  ;;  %vm182_vm4 = vcmp.gt.f32.partialorder %v139_v23, 0.0  ;;  %vm187_vm5 = vcmp.gt.f32.partialorder %v164_v24, 0.0 }
  0xda   :  { %v143_v29 = vpop.f32.mrf.mxu0  ;;  %v168_v30 = vpop.f32.mrf.mxu1 }
  0xdb   :  { %349 = vpow2.f32 %v191_v27  ;;  %v144_v31 = vadd.f32 %v241_v20, %v143_v29  ;;  %v169_v32 = vadd.f32 %v241_v20, %v168_v30 }
  0xdc   :  { %351 = vpow2.f32 %v201_v28  ;;  %v305_v33 = vpop.f32.mrf.mxu0  ;;  %v320_v34 = vpop.f32.mrf.mxu1 }
  0xdd   :  { %v193_v35 = vmul.f32 1.442695, %v144_v31  ;;  %v203_v36 = vmul.f32 1.442695, %v169_v32  ;;  %vm183_vm6 = vcmp.gt.f32.partialorder %v144_v31, 0.0  ;;  %vm188_vm7 = vcmp.gt.f32.partialorder %v169_v32, 0.0 }
  0xde   :  { %v148_v37 = vpop.f32.mrf.mxu0  ;;  %v173_v38 = vpop.f32.mrf.mxu1 }
  0xdf   :  { %353 = vpow2.f32 %v193_v35  ;;  %v149_v39 = vadd.f32 %v241_v20, %v148_v37  ;;  %v174_v40 = vadd.f32 %v241_v20, %v173_v38 }
  0xe0   :  { %355 = vpow2.f32 %v203_v36  ;;  %v308_v41 = vpop.f32.mrf.mxu0  ;;  %v323_v42 = vpop.f32.mrf.mxu1 }
  0xe1   :  { %v195_v43 = vmul.f32 1.442695, %v149_v39  ;;  %v205_v44 = vmul.f32 1.442695, %v174_v40  ;;  %vm184_vm8 = vcmp.gt.f32.partialorder %v149_v39, 0.0  ;;  %vm189_vm9 = vcmp.gt.f32.partialorder %v174_v40, 0.0 }
  0xe2   :  { %v153_v45 = vpop.f32.mrf.mxu0  ;;  %v178_v46 = vpop.f32.mrf.mxu1 }
  0xe3   :  { %357 = vpow2.f32 %v195_v43  ;;  %v154_v47 = vadd.f32 %v241_v20, %v153_v45  ;;  %v179_v48 = vadd.f32 %v241_v20, %v178_v46 }
  0xe4   :  { %359 = vpow2.f32 %v205_v44  ;;  %v311_v49 = vpop.f32.mrf.mxu0  ;;  %v326_v50 = vpop.f32.mrf.mxu1 }
  0xe5   :  { %v197_v51 = vmul.f32 1.442695, %v154_v47  ;;  %v207_v52 = vmul.f32 1.442695, %v179_v48  ;;  %vm185_vm10 = vcmp.gt.f32.partialorder %v154_v47, 0.0  ;;  %vm190_vm11 = vcmp.gt.f32.partialorder %v179_v48, 0.0 }
  0xe6   :  { %v158_v53 = vpop.f32.mrf.mxu0 }
  0xe7   :  { %361 = vpow2.f32 %v197_v51  ;;  %v159_v54 = vadd.f32 %v241_v20, %v158_v53 }
  0xe8   :  { %v350_v55 = vpop.eup %349  ;;  %363 = vpow2.f32 %v207_v52  ;;  %v314_v56 = vpop.f32.mrf.mxu0 }
  0xe9   :  { %v352_v57 = vpop.eup %351  ;;  %v252_v58 = vadd.f32 -1.0, %v350_v55  ;;  %v199_v59 = vmul.f32 1.442695, %v159_v54  ;;  %vm186_vm12 = vcmp.gt.f32.partialorder %v159_v54, 0.0 }
  0xea   :  { %v257_v60 = vadd.f32 -1.0, %v352_v57 }
  0xeb   :  { %v218_v61 = vsel %vm182_vm4, %v139_v23, %v252_v58  ;;  %365 = vpow2.f32 %v199_v59 }
  0xec   :  { %v354_v62 = vpop.eup %353  ;;  %228 = vst.msk [vmem:[%s535_s3] sm:$0xff] %vm227_vm3, %v218_v61  ;;  %v223_v63 = vsel %vm187_vm5, %v164_v24, %v257_v60 }
  0xed   :  { %v356_v0 = vpop.eup %355  ;;  %233 = vst.msk [vmem:[%s535_s3 + $0x28] sm:$0xff] %vm227_vm3, %v223_v63  ;;  %v253_v1 = vadd.f32 -1.0, %v354_v62 }
  0xee   :  { %v258_v2 = vadd.f32 -1.0, %v356_v0 }
  0xef   :  { %v219_v3 = vsel %vm183_vm6, %v144_v31, %v253_v1 }
  0xf0   :  { %v358_v4 = vpop.eup %357  ;;  %229 = vst.msk [vmem:[%s535_s3 + $0x8] sm:$0xff] %vm227_vm3, %v219_v3  ;;  %v224_v5 = vsel %vm188_vm7, %v169_v32, %v258_v2 }
  0xf1   :  { %v360_v6 = vpop.eup %359  ;;  %234 = vst.msk [vmem:[%s535_s3 + $0x30] sm:$0xff] %vm227_vm3, %v224_v5  ;;  %v254_v7 = vadd.f32 -1.0, %v358_v4 }
  0xf2   :  { %v259_v8 = vadd.f32 -1.0, %v360_v6 }
  0xf3   :  { %v220_v9 = vsel %vm184_vm8, %v149_v39, %v254_v7 }
  0xf4   :  { %v362_v10 = vpop.eup %361  ;;  %230 = vst.msk [vmem:[%s535_s3 + $0x10] sm:$0xff] %vm227_vm3, %v220_v9  ;;  %v225_v11 = vsel %vm189_vm9, %v174_v40, %v259_v8 }
  0xf5   :  { %v364_v12 = vpop.eup %363  ;;  %235 = vst.msk [vmem:[%s535_s3 + $0x38] sm:$0xff] %vm227_vm3, %v225_v11  ;;  %v255_v13 = vadd.f32 -1.0, %v362_v10 }
  0xf6   :  { %v260_v14 = vadd.f32 -1.0, %v364_v12 }
  0xf7   :  { %v221_v15 = vsel %vm185_vm10, %v154_v47, %v255_v13 }
  0xf8   :  { %v366_v16 = vpop.eup %365  ;;  %231 = vst.msk [vmem:[%s535_s3 + $0x18] sm:$0xff] %vm227_vm3, %v221_v15  ;;  %v226_v17 = vsel %vm190_vm11, %v179_v48, %v260_v14 }
  0xf9   :  { %236 = vst.msk [vmem:[%s535_s3 + $0x40] sm:$0xff] %vm227_vm3, %v226_v17  ;;  %v256_v18 = vadd.f32 -1.0, %v366_v16 }
  0xfb   :  { %v222_v19 = vsel %vm186_vm12, %v159_v54, %v256_v18 }
  0xfc   :  { %232 = vst.msk [vmem:[%s535_s3 + $0x20] sm:$0xff] %vm227_vm3, %v222_v19 }

// kernel: your_model_forward.3
= control target key start
LH: loop header
LB: loop body
LE: loop exit
PB: predicated region body
PF: predicated region fallthrough
CT: control target
= control target key end

     0   :  { %12 = vsyncpa [#allocation3], 0  ;;  %s5169_s0 = inlined_call_operand.vmem [shape: f32[2,864], index: 0, kind: input, shape index: {}]   ;;  %s5170_s1 = inlined_call_operand.vmem [shape: f32[864,864], index: 1, kind: input, shape index: {}]   ;;  %s5171_s2 = inlined_call_operand.vmem [shape: f32[1,864], index: 2, kind: input, shape index: {}]   ;;  %s5172_s3 = inlined_call_operand.vmem [shape: f32[1,864], index: 3, kind: input, shape index: {}]   ;;  %s5173_s4 = inlined_call_operand.vmem [shape: f32[1,864], index: 4, kind: input, shape index: {}]   ;;  %s5174_s5 = inlined_call_operand.vmem [shape: f32[1,864], index: 5, kind: input, shape index: {}]   ;;  %s5175_s6 = inlined_call_operand.vmem [shape: f32[2], index: 6, kind: input, shape index: {}]   ;;  %s5176_s7 = inlined_call_operand.vmem [shape: f32[2,2], index: 7, kind: output, shape index: {}]  }
   0x1   :  { %s31_s26 = sshll.u32 %s5175_s6, 4  ;;  %s32_s26 = int_to_ptr.vmem [resolvable:$true] %s31_s26 }
   0x2   :  { %s2599_s27 = scalar_lea.vmem %s32_s26, 16  ;;  %p2604_p1 = scmp.lt.s32.totalorder %s32_s26, %s32_s26 }
   0x3   :  { %p2600_p0 = scmp.ne.s32.totalorder %s32_s26, %s2599_s27  ;;  %p2605_p2 = scmp.lt.s32.totalorder %s2599_s27, %s2599_s27 }
   0x5   :  { %p2606_p3 = por %p2605_p2, %p2604_p1 }
   0x7   :  { %p2607_p4 = pnand %p2606_p3, %p2600_p0 }
   0x9   :  { %2610 = shalt.err (!%p2607_p4)
}
   0xa   :  { %s2613_s28 = smov [#allocation2]  }
   0xb   :  { %34 = dma.vmem_to_smem %s32_s26, 16, %s2613_s28, [#allocation3]  }
   0xc   :  { %2611 = dma.done.wait [#allocation3], 16  }
   0xd   :  { %2612 = vsyncadd [#allocation3], 4294967280 }
   0xe   :  { %38 = sfence }
   0xf   :  { %v147_v0 = vld [vmem:[%s5170_s1 + $0x350] sm:$0xff]  ;;  %v146_v2 = vld [vmem:[%s5170_s1 + $0x348] sm:$0xff]  ;;  %v140_v4 = vld [vmem:[%s5170_s1 + $0x318] sm:$0xff]  ;;  %vm875_vm0 = vcmask 785408   ;;  %vm2010_vm1 = vcmask 1041408   ;;  %vm2616_vm2 = vmmov 0  }
  0x10   :  { %v371_v1 = vld [vmem:[%s5170_s1 + $0xa50] sm:$0xff]  ;;  %878 = vmatprep.subr.mxu0 %v147_v0  ;;  %v370_v3 = vld [vmem:[%s5170_s1 + $0xa48] sm:$0xff]  ;;  %v364_v5 = vld [vmem:[%s5170_s1 + $0xa18] sm:$0xff]  ;;  %vm2053_vm9 = vcmask 779264   ;;  %vm2396_vm10 = vcmask 1024   ;;  %vm2401_vm14 = vcmask 9224  }
  0x11   :  { %949 = vmatprep.subr.mxu1 %v371_v1  ;;  %879 = vmatpush1.msra.mxu0 %v146_v2  ;;  %v139_v6 = vld [vmem:[%s5170_s1 + $0x310] sm:$0xff]  ;;  %v133_v8 = vld [vmem:[%s5170_s1 + $0x2e0] sm:$0xff]  ;;  %v132_v10 = vld [vmem:[%s5170_s1 + $0x2d8] sm:$0xff] }
  0x12   :  { %950 = vmatpush1.msra.mxu1 %v370_v3  ;;  %v363_v7 = vld [vmem:[%s5170_s1 + $0xa10] sm:$0xff]  ;;  %880 = vmatprep.subr.mxu0 %v140_v4  ;;  %v357_v9 = vld [vmem:[%s5170_s1 + $0x9e0] sm:$0xff]  ;;  %v356_v11 = vld [vmem:[%s5170_s1 + $0x9d8] sm:$0xff] }
  0x13   :  { %951 = vmatprep.subr.mxu1 %v364_v5  ;;  %881 = vmatpush1.msra.mxu0 %v139_v6  ;;  %v126_v12 = vld [vmem:[%s5170_s1 + $0x2a8] sm:$0xff]  ;;  %v125_v14 = vld [vmem:[%s5170_s1 + $0x2a0] sm:$0xff]  ;;  %v119_v16 = vld [vmem:[%s5170_s1 + $0x270] sm:$0xff] }
  0x14   :  { %952 = vmatpush1.msra.mxu1 %v363_v7  ;;  %v350_v13 = vld [vmem:[%s5170_s1 + $0x9a8] sm:$0xff]  ;;  %882 = vmatprep.subr.mxu0 %v133_v8  ;;  %v349_v15 = vld [vmem:[%s5170_s1 + $0x9a0] sm:$0xff]  ;;  %v343_v17 = vld [vmem:[%s5170_s1 + $0x970] sm:$0xff] }
  0x15   :  { %953 = vmatprep.subr.mxu1 %v357_v9  ;;  %883 = vmatpush1.msra.mxu0 %v132_v10  ;;  %v118_v18 = vld [vmem:[%s5170_s1 + $0x268] sm:$0xff]  ;;  %v112_v20 = vld [vmem:[%s5170_s1 + $0x238] sm:$0xff]  ;;  %v111_v22 = vld [vmem:[%s5170_s1 + $0x230] sm:$0xff] }
  0x16   :  { %954 = vmatpush1.msra.mxu1 %v356_v11  ;;  %884 = vmatprep.subr.mxu0 %v126_v12  ;;  %v342_v19 = vld [vmem:[%s5170_s1 + $0x968] sm:$0xff]  ;;  %v336_v21 = vld [vmem:[%s5170_s1 + $0x938] sm:$0xff]  ;;  %v335_v23 = vld [vmem:[%s5170_s1 + $0x930] sm:$0xff] }
  0x17   :  { %955 = vmatprep.subr.mxu1 %v350_v13  ;;  %885 = vmatpush1.msra.mxu0 %v125_v14  ;;  %v105_v24 = vld [vmem:[%s5170_s1 + $0x200] sm:$0xff]  ;;  %v104_v26 = vld [vmem:[%s5170_s1 + $0x1f8] sm:$0xff]  ;;  %v98_v28 = vld [vmem:[%s5170_s1 + $0x1c8] sm:$0xff] }
  0x18   :  { %956 = vmatpush1.msra.mxu1 %v349_v15  ;;  %886 = vmatprep.subr.mxu0 %v119_v16  ;;  %v329_v25 = vld [vmem:[%s5170_s1 + $0x900] sm:$0xff]  ;;  %v328_v27 = vld [vmem:[%s5170_s1 + $0x8f8] sm:$0xff]  ;;  %v322_v29 = vld [vmem:[%s5170_s1 + $0x8c8] sm:$0xff] }
  0x19   :  { %957 = vmatprep.subr.mxu1 %v343_v17  ;;  %887 = vmatpush1.msra.mxu0 %v118_v18  ;;  %v97_v30 = vld [vmem:[%s5170_s1 + $0x1c0] sm:$0xff]  ;;  %v91_v32 = vld [vmem:[%s5170_s1 + $0x190] sm:$0xff]  ;;  %v90_v34 = vld [vmem:[%s5170_s1 + $0x188] sm:$0xff] }
  0x1a   :  { %958 = vmatpush1.msra.mxu1 %v342_v19  ;;  %888 = vmatprep.subr.mxu0 %v112_v20  ;;  %v321_v31 = vld [vmem:[%s5170_s1 + $0x8c0] sm:$0xff]  ;;  %v315_v33 = vld [vmem:[%s5170_s1 + $0x890] sm:$0xff]  ;;  %v314_v35 = vld [vmem:[%s5170_s1 + $0x888] sm:$0xff] }
  0x1b   :  { %959 = vmatprep.subr.mxu1 %v336_v21  ;;  %889 = vmatpush1.msra.mxu0 %v111_v22  ;;  %v84_v36 = vld [vmem:[%s5170_s1 + $0x158] sm:$0xff]  ;;  %v83_v38 = vld [vmem:[%s5170_s1 + $0x150] sm:$0xff]  ;;  %v77_v40 = vld [vmem:[%s5170_s1 + $0x120] sm:$0xff] }
  0x1c   :  { %960 = vmatpush1.msra.mxu1 %v335_v23  ;;  %890 = vmatprep.subr.mxu0 %v105_v24  ;;  %v308_v37 = vld [vmem:[%s5170_s1 + $0x858] sm:$0xff]  ;;  %v307_v39 = vld [vmem:[%s5170_s1 + $0x850] sm:$0xff]  ;;  %v301_v41 = vld [vmem:[%s5170_s1 + $0x820] sm:$0xff] }
  0x1d   :  { %961 = vmatprep.subr.mxu1 %v329_v25  ;;  %891 = vmatpush1.msra.mxu0 %v104_v26  ;;  %v76_v42 = vld [vmem:[%s5170_s1 + $0x118] sm:$0xff]  ;;  %v70_v44 = vld [vmem:[%s5170_s1 + $0xe8] sm:$0xff]  ;;  %v69_v46 = vld [vmem:[%s5170_s1 + $0xe0] sm:$0xff] }
  0x1e   :  { %962 = vmatpush1.msra.mxu1 %v328_v27  ;;  %892 = vmatprep.subr.mxu0 %v98_v28  ;;  %v300_v43 = vld [vmem:[%s5170_s1 + $0x818] sm:$0xff]  ;;  %v294_v45 = vld [vmem:[%s5170_s1 + $0x7e8] sm:$0xff]  ;;  %v293_v47 = vld [vmem:[%s5170_s1 + $0x7e0] sm:$0xff] }
  0x1f   :  { %963 = vmatprep.subr.mxu1 %v322_v29  ;;  %893 = vmatpush1.msra.mxu0 %v97_v30  ;;  %v63_v48 = vld [vmem:[%s5170_s1 + $0xb0] sm:$0xff]  ;;  %v62_v50 = vld [vmem:[%s5170_s1 + $0xa8] sm:$0xff]  ;;  %v56_v52 = vld [vmem:[%s5170_s1 + $0x78] sm:$0xff]  ;;  %v799_v30 = vlaneseq }
  0x20   :  { %964 = vmatpush1.msra.mxu1 %v321_v31  ;;  %894 = vmatprep.subr.mxu0 %v91_v32  ;;  %v287_v49 = vld [vmem:[%s5170_s1 + $0x7b0] sm:$0xff]  ;;  %v286_v51 = vld [vmem:[%s5170_s1 + $0x7a8] sm:$0xff]  ;;  %v280_v53 = vld [vmem:[%s5170_s1 + $0x778] sm:$0xff]  ;;  %v2614_v31 = vmov 1983009808  }
  0x21   :  { %965 = vmatprep.subr.mxu1 %v315_v33  ;;  %895 = vmatpush1.msra.mxu0 %v90_v34  ;;  %v55_v54 = vld [vmem:[%s5170_s1 + $0x70] sm:$0xff]  ;;  %v49_v56 = vld [vmem:[%s5170_s1 + $0x40] sm:$0xff]  ;;  %v48_v58 = vld [vmem:[%s5170_s1 + $0x38] sm:$0xff]  ;;  %v838_v32 = vunpack.c.l.s4 %v2614_v31 }
  0x22   :  { %966 = vmatpush1.msra.mxu1 %v314_v35  ;;  %896 = vmatprep.subr.mxu0 %v84_v36  ;;  %v279_v55 = vld [vmem:[%s5170_s1 + $0x770] sm:$0xff]  ;;  %v273_v57 = vld [vmem:[%s5170_s1 + $0x740] sm:$0xff]  ;;  %v272_v59 = vld [vmem:[%s5170_s1 + $0x738] sm:$0xff] }
  0x23   :  { %967 = vmatprep.subr.mxu1 %v308_v37  ;;  %897 = vmatpush1.msra.mxu0 %v83_v38  ;;  %v42_v60 = vld [vmem:[%s5170_s1 + $0x8] sm:$0xff]  ;;  %v41_v62 = vld [vmem:[%s5170_s1] sm:$0xff]  ;;  %v259_v0 = vld [vmem:[%s5170_s1 + $0x6d0] sm:$0xff] }
  0x24   :  { %968 = vmatpush1.msra.mxu1 %v307_v39  ;;  %898 = vmatprep.subr.mxu0 %v77_v40  ;;  %v266_v61 = vld [vmem:[%s5170_s1 + $0x708] sm:$0xff]  ;;  %v265_v63 = vld [vmem:[%s5170_s1 + $0x700] sm:$0xff]  ;;  %v483_v1 = vld [vmem:[%s5170_s1 + $0xdd0] sm:$0xff] }
  0x25   :  { %969 = vmatprep.subr.mxu1 %v301_v41  ;;  %899 = vmatpush1.msra.mxu0 %v76_v42  ;;  %v258_v2 = vld [vmem:[%s5170_s1 + $0x6c8] sm:$0xff]  ;;  %v252_v4 = vld [vmem:[%s5170_s1 + $0x698] sm:$0xff]  ;;  %v251_v6 = vld [vmem:[%s5170_s1 + $0x690] sm:$0xff]  ;;  %v2967_v41 = vshrl.u32 %v799_v30, 7  ;;  %v839_v42 = vunpack.c.0.s8 %v838_v32 }
  0x26   :  { %970 = vmatpush1.msra.mxu1 %v300_v43  ;;  %900 = vmatprep.subr.mxu0 %v70_v44  ;;  %v482_v3 = vld [vmem:[%s5170_s1 + $0xdc8] sm:$0xff]  ;;  %v476_v5 = vld [vmem:[%s5170_s1 + $0xd98] sm:$0xff]  ;;  %v475_v7 = vld [vmem:[%s5170_s1 + $0xd90] sm:$0xff] }
  0x27   :  { %971 = vmatprep.subr.mxu1 %v294_v45  ;;  %901 = vmatpush1.msra.mxu0 %v69_v46  ;;  %v245_v8 = vld [vmem:[%s5170_s1 + $0x660] sm:$0xff]  ;;  %v244_v10 = vld [vmem:[%s5170_s1 + $0x658] sm:$0xff]  ;;  %v238_v12 = vld [vmem:[%s5170_s1 + $0x628] sm:$0xff] }
  0x28   :  { %972 = vmatpush1.msra.mxu1 %v293_v47  ;;  %902 = vmatprep.subr.mxu0 %v63_v48  ;;  %v469_v9 = vld [vmem:[%s5170_s1 + $0xd60] sm:$0xff]  ;;  %v468_v11 = vld [vmem:[%s5170_s1 + $0xd58] sm:$0xff]  ;;  %v462_v13 = vld [vmem:[%s5170_s1 + $0xd28] sm:$0xff] }
  0x29   :  { %973 = vmatprep.subr.mxu1 %v287_v49  ;;  %903 = vmatpush1.msra.mxu0 %v62_v50  ;;  %v237_v14 = vld [vmem:[%s5170_s1 + $0x620] sm:$0xff]  ;;  %v231_v16 = vld [vmem:[%s5170_s1 + $0x5f0] sm:$0xff]  ;;  %v230_v18 = vld [vmem:[%s5170_s1 + $0x5e8] sm:$0xff] }
  0x2a   :  { %974 = vmatpush1.msra.mxu1 %v286_v51  ;;  %904 = vmatprep.subr.mxu0 %v56_v52  ;;  %v461_v15 = vld [vmem:[%s5170_s1 + $0xd20] sm:$0xff]  ;;  %v455_v17 = vld [vmem:[%s5170_s1 + $0xcf0] sm:$0xff]  ;;  %v454_v19 = vld [vmem:[%s5170_s1 + $0xce8] sm:$0xff]  ;;  %v2997_v52 = vsub.s32 %v839_v42, %v2967_v41 }
  0x2b   :  { %975 = vmatprep.subr.mxu1 %v280_v53  ;;  %905 = vmatpush1.msra.mxu0 %v55_v54  ;;  %v224_v20 = vld [vmem:[%s5170_s1 + $0x5b8] sm:$0xff]  ;;  %v223_v22 = vld [vmem:[%s5170_s1 + $0x5b0] sm:$0xff]  ;;  %v217_v24 = vld [vmem:[%s5170_s1 + $0x580] sm:$0xff] }
  0x2c   :  { %976 = vmatpush1.msra.mxu1 %v279_v55  ;;  %906 = vmatprep.subr.mxu0 %v49_v56  ;;  %v448_v21 = vld [vmem:[%s5170_s1 + $0xcb8] sm:$0xff]  ;;  %v447_v23 = vld [vmem:[%s5170_s1 + $0xcb0] sm:$0xff]  ;;  %v441_v25 = vld [vmem:[%s5170_s1 + $0xc80] sm:$0xff] }
  0x2d   :  { %977 = vmatprep.subr.mxu1 %v273_v57  ;;  %907 = vmatpush1.msra.mxu0 %v48_v58  ;;  %v216_v26 = vld [vmem:[%s5170_s1 + $0x578] sm:$0xff]  ;;  %v210_v28 = vld [vmem:[%s5170_s1 + $0x548] sm:$0xff]  ;;  %v209_v33 = vld [vmem:[%s5170_s1 + $0x540] sm:$0xff] }
  0x2e   :  { %978 = vmatpush1.msra.mxu1 %v272_v59  ;;  %908 = vmatprep.subr.mxu0 %v42_v60  ;;  %v440_v27 = vld [vmem:[%s5170_s1 + $0xc78] sm:$0xff]  ;;  %v434_v29 = vld [vmem:[%s5170_s1 + $0xc48] sm:$0xff]  ;;  %v433_v34 = vld [vmem:[%s5170_s1 + $0xc40] sm:$0xff] }
  0x2f   :  { %979 = vmatprep.subr.mxu1 %v266_v61  ;;  %909 = vmatpush1.msra.mxu0 %v41_v62  ;;  %v203_v35 = vld [vmem:[%s5170_s1 + $0x510] sm:$0xff]  ;;  %v202_v37 = vld [vmem:[%s5170_s1 + $0x508] sm:$0xff]  ;;  %v196_v39 = vld [vmem:[%s5170_s1 + $0x4d8] sm:$0xff] }
  0x30   :  { %980 = vmatpush1.msra.mxu1 %v265_v63  ;;  %910 = vmatprep.subr.mxu0 %v259_v0  ;;  %v427_v36 = vld [vmem:[%s5170_s1 + $0xc10] sm:$0xff]  ;;  %v426_v38 = vld [vmem:[%s5170_s1 + $0xc08] sm:$0xff]  ;;  %v420_v40 = vld [vmem:[%s5170_s1 + $0xbd8] sm:$0xff] }
  0x31   :  { %981 = vmatprep.subr.mxu1 %v483_v1  ;;  %911 = vmatpush2.msra.mxu0 %v258_v2  ;;  %v195_v43 = vld [vmem:[%s5170_s1 + $0x4d0] sm:$0xff]  ;;  %v189_v45 = vld [vmem:[%s5170_s1 + $0x4a0] sm:$0xff]  ;;  %v188_v48 = vld [vmem:[%s5170_s1 + $0x498] sm:$0xff] }
  0x32   :  { %982 = vmatpush2.msra.mxu1 %v482_v3  ;;  %912 = vmatprep.subr.mxu0 %v252_v4  ;;  %v419_v44 = vld [vmem:[%s5170_s1 + $0xbd0] sm:$0xff]  ;;  %v413_v46 = vld [vmem:[%s5170_s1 + $0xba0] sm:$0xff]  ;;  %v412_v49 = vld [vmem:[%s5170_s1 + $0xb98] sm:$0xff] }
  0x33   :  { %983 = vmatprep.subr.mxu1 %v476_v5  ;;  %913 = vmatpush2.msra.mxu0 %v251_v6  ;;  %v39_v47 = vld [vmem:[%s5169_s0] sm:$0xff]  ;;  %v182_v50 = vld [vmem:[%s5170_s1 + $0x468] sm:$0xff]  ;;  %v175_v56 = vld [vmem:[%s5170_s1 + $0x430] sm:$0xff] }
  0x34   :  { %984 = vmatpush2.msra.mxu1 %v475_v7  ;;  %914 = vmatprep.subr.mxu0 %v245_v8  ;;  %v406_v51 = vld [vmem:[%s5170_s1 + $0xb68] sm:$0xff]  ;;  %v181_v53 = vld [vmem:[%s5170_s1 + $0x460] sm:$0xff]  ;;  %v836_v55 = vcombine.high %v39_v47, %v39_v47  ;;  %v399_v57 = vld [vmem:[%s5170_s1 + $0xb30] sm:$0xff]  ;;  %v3024_v62 = vrot.slane %v39_v47, %v2997_v52 }
  0x35   :  { %985 = vmatprep.subr.mxu1 %v469_v9  ;;  %915 = vmatpush2.msra.mxu0 %v244_v10  ;;  %v405_v54 = vld [vmem:[%s5170_s1 + $0xb60] sm:$0xff]  ;;  %v174_v58 = vld [vmem:[%s5170_s1 + $0x428] sm:$0xff]  ;;  %v168_v60 = vld [vmem:[%s5170_s1 + $0x3f8] sm:$0xff] }
  0x36   :  { %986 = vmatpush2.msra.mxu1 %v468_v11  ;;  %916 = vmatprep.subr.mxu0 %v238_v12  ;;  %v398_v59 = vld [vmem:[%s5170_s1 + $0xb28] sm:$0xff]  ;;  %v392_v61 = vld [vmem:[%s5170_s1 + $0xaf8] sm:$0xff]  ;;  %v167_v63 = vld [vmem:[%s5170_s1 + $0x3f0] sm:$0xff]  ;;  %v3033_v1 = vrot.slane %v836_v55, %v2997_v52  ;;  %v3055_v8 = vcombine.high %v3024_v62, %v3024_v62 }
  0x37   :  { %987 = vmatprep.subr.mxu1 %v462_v13  ;;  %917 = vmatpush2.msra.mxu0 %v237_v14  ;;  %v391_v0 = vld [vmem:[%s5170_s1 + $0xaf0] sm:$0xff]  ;;  %v161_v2 = vld [vmem:[%s5170_s1 + $0x3c0] sm:$0xff]  ;;  %v160_v4 = vld [vmem:[%s5170_s1 + $0x3b8] sm:$0xff] }
  0x38   :  { %988 = vmatpush2.msra.mxu1 %v461_v15  ;;  %918 = vmatprep.subr.mxu0 %v231_v16  ;;  %v385_v3 = vld [vmem:[%s5170_s1 + $0xac0] sm:$0xff]  ;;  %v384_v5 = vld [vmem:[%s5170_s1 + $0xab8] sm:$0xff]  ;;  %v154_v6 = vld [vmem:[%s5170_s1 + $0x388] sm:$0xff]  ;;  %v3062_v10 = vcombine.high %v3033_v1, %v3033_v1 }
  0x39   :  { %989 = vmatprep.subr.mxu1 %v455_v17  ;;  %919 = vmatpush2.msra.mxu0 %v230_v18  ;;  %v378_v7 = vld [vmem:[%s5170_s1 + $0xa88] sm:$0xff]  ;;  %v153_v9 = vld [vmem:[%s5170_s1 + $0x380] sm:$0xff]  ;;  %v595_v12 = vld [vmem:[%s5170_s1 + $0x1150] sm:$0xff] }
  0x3a   :  { %990 = vmatpush2.msra.mxu1 %v454_v19  ;;  %920 = vmatprep.subr.mxu0 %v224_v20  ;;  %v377_v11 = vld [vmem:[%s5170_s1 + $0xa80] sm:$0xff]  ;;  %v791_v13 = vld [vmem:[%s5170_s1 + $0x1770] sm:$0xff]  ;;  %v594_v14 = vld [vmem:[%s5170_s1 + $0x1148] sm:$0xff] }
  0x3b   :  { %991 = vmatprep.subr.mxu1 %v448_v21  ;;  %921 = vmatpush2.msra.mxu0 %v223_v22  ;;  %v790_v15 = vld [vmem:[%s5170_s1 + $0x1768] sm:$0xff]  ;;  %v588_v16 = vld [vmem:[%s5170_s1 + $0x1118] sm:$0xff]  ;;  %v587_v18 = vld [vmem:[%s5170_s1 + $0x1110] sm:$0xff] }
  0x3c   :  { %992 = vmatpush2.msra.mxu1 %v447_v23  ;;  %922 = vmatprep.subr.mxu0 %v217_v24  ;;  %v784_v17 = vld [vmem:[%s5170_s1 + $0x1738] sm:$0xff]  ;;  %v783_v19 = vld [vmem:[%s5170_s1 + $0x1730] sm:$0xff]  ;;  %v581_v20 = vld [vmem:[%s5170_s1 + $0x10e0] sm:$0xff] }
  0x3d   :  { %993 = vmatprep.subr.mxu1 %v441_v25  ;;  %923 = vmatpush2.msra.mxu0 %v216_v26  ;;  %v777_v21 = vld [vmem:[%s5170_s1 + $0x1700] sm:$0xff]  ;;  %v580_v22 = vld [vmem:[%s5170_s1 + $0x10d8] sm:$0xff]  ;;  %v574_v24 = vld [vmem:[%s5170_s1 + $0x10a8] sm:$0xff] }
  0x3e   :  { %994 = vmatpush2.msra.mxu1 %v440_v27  ;;  %924 = vmatprep.subr.mxu0 %v210_v28  ;;  %v776_v23 = vld [vmem:[%s5170_s1 + $0x16f8] sm:$0xff]  ;;  %v770_v25 = vld [vmem:[%s5170_s1 + $0x16c8] sm:$0xff]  ;;  %v573_v26 = vld [vmem:[%s5170_s1 + $0x10a0] sm:$0xff] }
  0x3f   :  { %995 = vmatprep.subr.mxu1 %v434_v29  ;;  %925 = vmatpush2.msra.mxu0 %v209_v33  ;;  %v769_v27 = vld [vmem:[%s5170_s1 + $0x16c0] sm:$0xff]  ;;  %v567_v28 = vld [vmem:[%s5170_s1 + $0x1070] sm:$0xff]  ;;  %v566_v31 = vld [vmem:[%s5170_s1 + $0x1068] sm:$0xff] }
  0x40   :  { %996 = vmatpush2.msra.mxu1 %v433_v34  ;;  %926 = vmatprep.subr.mxu0 %v203_v35  ;;  %v763_v29 = vld [vmem:[%s5170_s1 + $0x1690] sm:$0xff]  ;;  %v762_v32 = vld [vmem:[%s5170_s1 + $0x1688] sm:$0xff]  ;;  %v560_v33 = vld [vmem:[%s5170_s1 + $0x1038] sm:$0xff] }
  0x41   :  { %997 = vmatprep.subr.mxu1 %v427_v36  ;;  %927 = vmatpush2.msra.mxu0 %v202_v37  ;;  %v756_v34 = vld [vmem:[%s5170_s1 + $0x1658] sm:$0xff]  ;;  %v559_v35 = vld [vmem:[%s5170_s1 + $0x1030] sm:$0xff]  ;;  %v553_v37 = vld [vmem:[%s5170_s1 + $0x1000] sm:$0xff] }
  0x42   :  { %998 = vmatpush2.msra.mxu1 %v426_v38  ;;  %928 = vmatprep.subr.mxu0 %v196_v39  ;;  %v755_v36 = vld [vmem:[%s5170_s1 + $0x1650] sm:$0xff]  ;;  %v749_v38 = vld [vmem:[%s5170_s1 + $0x1620] sm:$0xff]  ;;  %v552_v39 = vld [vmem:[%s5170_s1 + $0xff8] sm:$0xff] }
  0x43   :  { %999 = vmatprep.subr.mxu1 %v420_v40  ;;  %929 = vmatpush2.msra.mxu0 %v195_v43  ;;  %v748_v40 = vld [vmem:[%s5170_s1 + $0x1618] sm:$0xff]  ;;  %v546_v42 = vld [vmem:[%s5170_s1 + $0xfc8] sm:$0xff]  ;;  %v735_v47 = vld [vmem:[%s5170_s1 + $0x15b0] sm:$0xff] }
  0x44   :  { %1000 = vmatpush2.msra.mxu1 %v419_v44  ;;  %930 = vmatprep.subr.mxu0 %v189_v45  ;;  %v742_v43 = vld [vmem:[%s5170_s1 + $0x15e8] sm:$0xff]  ;;  %v545_v44 = vld [vmem:[%s5170_s1 + $0xfc0] sm:$0xff]  ;;  %v727_v55 = vld [vmem:[%s5170_s1 + $0x1570] sm:$0xff] }
  0x45   :  { %1001 = vmatprep.subr.mxu1 %v413_v46  ;;  %931 = vmatpush2.msra.mxu0 %v188_v48  ;;  %v741_v45 = vld [vmem:[%s5170_s1 + $0x15e0] sm:$0xff]  ;;  %v539_v46 = vld [vmem:[%s5170_s1 + $0xf90] sm:$0xff]  ;;  %v538_v48 = vld [vmem:[%s5170_s1 + $0xf88] sm:$0xff] }
  0x46   :  { %1002 = vmatpush2.msra.mxu1 %v412_v49  ;;  %932 = vmatprep.subr.mxu0 %v182_v50  ;;  %v734_v49 = vld [vmem:[%s5170_s1 + $0x15a8] sm:$0xff] }
  0x47   :  { %1003 = vmatprep.subr.mxu1 %v406_v51  ;;  %933 = vmatpush2.msra.mxu0 %v181_v53  ;;  %v3182_v50 = vld [vmem:[%s5169_s0 + $0x8] sm:$0x3f]  ;;  %v532_v51 = vld [vmem:[%s5170_s1 + $0xf58] sm:$0xff]  ;;  %s2419_s0 = sld [smem:[#allocation2 + $0x1]] }
  0x48   :  { %1004 = vmatpush2.msra.mxu1 %v405_v54  ;;  %934 = vmatprep.subr.mxu0 %v175_v56  ;;  %v728_v53 = vld [vmem:[%s5170_s1 + $0x1578] sm:$0xff]  ;;  %v531_v54 = vld [vmem:[%s5170_s1 + $0xf50] sm:$0xff]  ;;  %v525_v56 = vld [vmem:[%s5170_s1 + $0xf20] sm:$0xff] }
  0x49   :  { %1005 = vmatprep.subr.mxu1 %v399_v57  ;;  %935 = vmatpush2.msra.mxu0 %v174_v58  ;;  %v721_v57 = vld [vmem:[%s5170_s1 + $0x1540] sm:$0xff]  ;;  %v853_v58 = vcombine.high %v3182_v50, %v3182_v50 }
  0x4a   :  { %1006 = vmatpush2.msra.mxu1 %v398_v59  ;;  %936 = vmatprep.subr.mxu0 %v168_v60  ;;  %v524_v59 = vld [vmem:[%s5170_s1 + $0xf18] sm:$0xff] }
  0x4b   :  { %1007 = vmatprep.subr.mxu1 %v392_v61  ;;  %937 = vmatpush2.msra.mxu0 %v167_v63  ;;  %v720_v60 = vld [vmem:[%s5170_s1 + $0x1538] sm:$0xff]  ;;  %v518_v61 = vld [vmem:[%s5170_s1 + $0xee8] sm:$0xff] }
  0x4c   :  { %1008 = vmatpush2.msra.mxu1 %v391_v0  ;;  %938 = vmatprep.subr.mxu0 %v161_v2  ;;  %v714_v63 = vld [vmem:[%s5170_s1 + $0x1508] sm:$0xff]  ;;  %v517_v0 = vld [vmem:[%s5170_s1 + $0xee0] sm:$0xff] }
  0x4d   :  { %1009 = vmatprep.subr.mxu1 %v385_v3  ;;  %939 = vmatpush2.msra.mxu0 %v160_v4  ;;  %v713_v2 = vld [vmem:[%s5170_s1 + $0x1500] sm:$0xff]  ;;  %v511_v3 = vld [vmem:[%s5170_s1 + $0xeb0] sm:$0xff]  ;;  %v3226_v4 = vrot.slane %v853_v58, %v2997_v52 }
  0x4e   :  { %1010 = vmatpush2.msra.mxu1 %v384_v5  ;;  %940 = vmatprep.subr.mxu0 %v154_v6  ;;  %v149_v5 = vld [vmem:[%s5170_s1 + $0x360] sm:$0xff]  ;;  %v510_v6 = vld [vmem:[%s5170_s1 + $0xea8] sm:$0xff]  ;;  %v71_v58 = vld [vmem:[%s5170_s1 + $0xf0] sm:$0xff] }
  0x4f   :  { %1011 = vmatprep.subr.mxu1 %v378_v7  ;;  %941 = vmatpush2.msra.mxu0 %v153_v9  ;;  %v148_v7 = vld [vmem:[%s5170_s1 + $0x358] sm:$0xff]  ;;  %v2615_v9 = vmov 0.0  }
  0x50   :  { %942 = vmatprep.mubr.f32.mxu0 %v3055_v8  ;;  %1012 = vmatpush2.msra.mxu1 %v377_v11  ;;  %v504_v11 = vld [vmem:[%s5170_s1 + $0xe78] sm:$0xff] }
  0x51   :  { %1013 = vmatprep.mubr.f32.mxu1 %v3062_v10  ;;  %943 = vmatmul.mubr.f32.vlgmr.msra.gmra.mxu0 %v3024_v62 }
  0x52   :  { %1014 = vmatmul.mubr.f32.vlgmr.msra.gmra.mxu1 %v3033_v1  ;;  %1020 = vmatprep.subr.mxu0 %v595_v12  ;;  %v142_v12 = vld [vmem:[%s5170_s1 + $0x328] sm:$0xff] }
  0x53   :  { %1099 = vmatprep.subr.mxu1 %v791_v13  ;;  %1021 = vmatpush1.msra.mxu0 %v594_v14  ;;  %v503_v13 = vld [vmem:[%s5170_s1 + $0xe70] sm:$0xff]  ;;  %v141_v14 = vld [vmem:[%s5170_s1 + $0x320] sm:$0xff] }
  0x54   :  { %1100 = vmatpush1.msra.mxu1 %v790_v15  ;;  %1022 = vmatprep.subr.mxu0 %v588_v16  ;;  %v497_v15 = vld [vmem:[%s5170_s1 + $0xe40] sm:$0xff]  ;;  %v135_v16 = vld [vmem:[%s5170_s1 + $0x2f0] sm:$0xff] }
  0x55   :  { %1101 = vmatprep.subr.mxu1 %v784_v17  ;;  %1023 = vmatpush1.msra.mxu0 %v587_v18  ;;  %v496_v17 = vld [vmem:[%s5170_s1 + $0xe38] sm:$0xff]  ;;  %v134_v18 = vld [vmem:[%s5170_s1 + $0x2e8] sm:$0xff] }
  0x56   :  { %1102 = vmatpush1.msra.mxu1 %v783_v19  ;;  %1024 = vmatprep.subr.mxu0 %v581_v20  ;;  %v490_v19 = vld [vmem:[%s5170_s1 + $0xe08] sm:$0xff]  ;;  %v128_v20 = vld [vmem:[%s5170_s1 + $0x2b8] sm:$0xff] }
  0x57   :  { %1103 = vmatprep.subr.mxu1 %v777_v21  ;;  %1025 = vmatpush1.msra.mxu0 %v580_v22  ;;  %v489_v21 = vld [vmem:[%s5170_s1 + $0xe00] sm:$0xff]  ;;  %v127_v22 = vld [vmem:[%s5170_s1 + $0x2b0] sm:$0xff] }
  0x58   :  { %1104 = vmatpush1.msra.mxu1 %v776_v23  ;;  %1026 = vmatprep.subr.mxu0 %v574_v24  ;;  %v707_v23 = vld [vmem:[%s5170_s1 + $0x14d0] sm:$0xff]  ;;  %v121_v24 = vld [vmem:[%s5170_s1 + $0x280] sm:$0xff] }
  0x59   :  { %1105 = vmatprep.subr.mxu1 %v770_v25  ;;  %1027 = vmatpush1.msra.mxu0 %v573_v26  ;;  %v706_v25 = vld [vmem:[%s5170_s1 + $0x14c8] sm:$0xff]  ;;  %v120_v26 = vld [vmem:[%s5170_s1 + $0x278] sm:$0xff] }
  0x5a   :  { %1106 = vmatpush1.msra.mxu1 %v769_v27  ;;  %1028 = vmatprep.subr.mxu0 %v567_v28  ;;  %v700_v27 = vld [vmem:[%s5170_s1 + $0x1498] sm:$0xff]  ;;  %v114_v28 = vld [vmem:[%s5170_s1 + $0x248] sm:$0xff] }
  0x5b   :  { %1107 = vmatprep.subr.mxu1 %v763_v29  ;;  %1029 = vmatpush1.msra.mxu0 %v566_v31  ;;  %v699_v29 = vld [vmem:[%s5170_s1 + $0x1490] sm:$0xff]  ;;  %v113_v31 = vld [vmem:[%s5170_s1 + $0x240] sm:$0xff] }
  0x5c   :  { %1108 = vmatpush1.msra.mxu1 %v762_v32  ;;  %1030 = vmatprep.subr.mxu0 %v560_v33  ;;  %v693_v32 = vld [vmem:[%s5170_s1 + $0x1460] sm:$0xff]  ;;  %v107_v33 = vld [vmem:[%s5170_s1 + $0x210] sm:$0xff] }
  0x5d   :  { %1109 = vmatprep.subr.mxu1 %v756_v34  ;;  %1031 = vmatpush1.msra.mxu0 %v559_v35  ;;  %v692_v34 = vld [vmem:[%s5170_s1 + $0x1458] sm:$0xff]  ;;  %v106_v35 = vld [vmem:[%s5170_s1 + $0x208] sm:$0xff] }
  0x5e   :  { %1110 = vmatpush1.msra.mxu1 %v755_v36  ;;  %1032 = vmatprep.subr.mxu0 %v553_v37  ;;  %v686_v36 = vld [vmem:[%s5170_s1 + $0x1428] sm:$0xff]  ;;  %v100_v37 = vld [vmem:[%s5170_s1 + $0x1d8] sm:$0xff] }
  0x5f   :  { %1111 = vmatprep.subr.mxu1 %v749_v38  ;;  %1033 = vmatpush1.msra.mxu0 %v552_v39  ;;  %v685_v38 = vld [vmem:[%s5170_s1 + $0x1420] sm:$0xff]  ;;  %v99_v39 = vld [vmem:[%s5170_s1 + $0x1d0] sm:$0xff] }
  0x60   :  { %1112 = vmatpush1.msra.mxu1 %v748_v40  ;;  %1034 = vmatprep.subr.mxu0 %v546_v42  ;;  %v679_v40 = vld [vmem:[%s5170_s1 + $0x13f0] sm:$0xff]  ;;  %v93_v42 = vld [vmem:[%s5170_s1 + $0x1a0] sm:$0xff] }
  0x61   :  { %1113 = vmatprep.subr.mxu1 %v742_v43  ;;  %1035 = vmatpush1.msra.mxu0 %v545_v44  ;;  %v678_v43 = vld [vmem:[%s5170_s1 + $0x13e8] sm:$0xff]  ;;  %v92_v44 = vld [vmem:[%s5170_s1 + $0x198] sm:$0xff] }
  0x62   :  { %1114 = vmatpush1.msra.mxu1 %v741_v45  ;;  %1036 = vmatprep.subr.mxu0 %v539_v46  ;;  %v672_v45 = vld [vmem:[%s5170_s1 + $0x13b8] sm:$0xff]  ;;  %v86_v46 = vld [vmem:[%s5170_s1 + $0x168] sm:$0xff] }
  0x63   :  { %1115 = vmatprep.subr.mxu1 %v735_v47  ;;  %1037 = vmatpush1.msra.mxu0 %v538_v48  ;;  %v671_v47 = vld [vmem:[%s5170_s1 + $0x13b0] sm:$0xff]  ;;  %v85_v48 = vld [vmem:[%s5170_s1 + $0x160] sm:$0xff] }
  0x64   :  { %1116 = vmatpush1.msra.mxu1 %v734_v49  ;;  %1038 = vmatprep.subr.mxu0 %v532_v51  ;;  %v665_v49 = vld [vmem:[%s5170_s1 + $0x1380] sm:$0xff]  ;;  %v79_v51 = vld [vmem:[%s5170_s1 + $0x130] sm:$0xff] }
  0x65   :  { %1117 = vmatprep.subr.mxu1 %v728_v53  ;;  %1039 = vmatpush1.msra.mxu0 %v531_v54  ;;  %v664_v53 = vld [vmem:[%s5170_s1 + $0x1378] sm:$0xff]  ;;  %v78_v54 = vld [vmem:[%s5170_s1 + $0x128] sm:$0xff] }
  0x66   :  { %1118 = vmatpush1.msra.mxu1 %v727_v55  ;;  %1040 = vmatprep.subr.mxu0 %v525_v56  ;;  %v658_v55 = vld [vmem:[%s5170_s1 + $0x1348] sm:$0xff]  ;;  %v72_v56 = vld [vmem:[%s5170_s1 + $0xf8] sm:$0xff] }
  0x67   :  { %1119 = vmatprep.subr.mxu1 %v721_v57  ;;  %1041 = vmatpush1.msra.mxu0 %v524_v59  ;;  %v657_v57 = vld [vmem:[%s5170_s1 + $0x1340] sm:$0xff]  ;;  %v651_v59 = vld [vmem:[%s5170_s1 + $0x1310] sm:$0xff] }
  0x68   :  { %1120 = vmatpush1.msra.mxu1 %v720_v60  ;;  %1042 = vmatprep.subr.mxu0 %v518_v61  ;;  %v65_v60 = vld [vmem:[%s5170_s1 + $0xc0] sm:$0xff]  ;;  %v650_v61 = vld [vmem:[%s5170_s1 + $0x1308] sm:$0xff] }
  0x69   :  { %1121 = vmatprep.subr.mxu1 %v714_v63  ;;  %1043 = vmatpush1.msra.mxu0 %v517_v0  ;;  %v64_v63 = vld [vmem:[%s5170_s1 + $0xb8] sm:$0xff] }
  0x6a   :  { %1122 = vmatpush1.msra.mxu1 %v713_v2  ;;  %1155 = vmatprep.mubr.f32.mxu1 %v2615_v9  ;;  %v644_v0 = vld [vmem:[%s5170_s1 + $0x12d8] sm:$0xff]  ;;  %v58_v2 = vld [vmem:[%s5170_s1 + $0x88] sm:$0xff] }
  0x6b   :  { %1044 = vmatprep.subr.mxu0 %v511_v3  ;;  %2408 = vmatmul.mubr.msk.f32.vlgmr.msra.gmra.mxu1 %vm875_vm0, %v3226_v4  ;;  %v643_v3 = vld [vmem:[%s5170_s1 + $0x12d0] sm:$0xff] }
  0x6c   :  { %1162 = vmatprep.subr.mxu1 %v149_v5  ;;  %1045 = vmatpush1.msra.mxu0 %v510_v6  ;;  %v57_v5 = vld [vmem:[%s5170_s1 + $0x80] sm:$0xff] }
  0x6d   :  { %1163 = vmatpush1.msra.mxu1 %v148_v7  ;;  %1046 = vmatprep.subr.mxu0 %v504_v11  ;;  %v637_v6 = vld [vmem:[%s5170_s1 + $0x12a0] sm:$0xff]  ;;  %v51_v7 = vld [vmem:[%s5170_s1 + $0x50] sm:$0xff]  ;;  %v636_v11 = vld [vmem:[%s5170_s1 + $0x1298] sm:$0xff] }
  0x6e   :  { %1164 = vmatprep.subr.mxu1 %v142_v12  ;;  %1047 = vmatpush1.msra.mxu0 %v503_v13  ;;  %v50_v12 = vld [vmem:[%s5170_s1 + $0x48] sm:$0xff] }
  0x6f   :  { %1165 = vmatpush1.msra.mxu1 %v141_v14  ;;  %1048 = vmatprep.subr.mxu0 %v497_v15  ;;  %v630_v13 = vld [vmem:[%s5170_s1 + $0x1268] sm:$0xff]  ;;  %v44_v14 = vld [vmem:[%s5170_s1 + $0x18] sm:$0xff]  ;;  %v629_v15 = vld [vmem:[%s5170_s1 + $0x1260] sm:$0xff] }
  0x70   :  { %1166 = vmatprep.subr.mxu1 %v135_v16  ;;  %1049 = vmatpush1.msra.mxu0 %v496_v17  ;;  %v43_v16 = vld [vmem:[%s5170_s1 + $0x10] sm:$0xff] }
  0x71   :  { %1167 = vmatpush1.msra.mxu1 %v134_v18  ;;  %1050 = vmatprep.subr.mxu0 %v490_v19  ;;  %v623_v17 = vld [vmem:[%s5170_s1 + $0x1230] sm:$0xff]  ;;  %v261_v18 = vld [vmem:[%s5170_s1 + $0x6e0] sm:$0xff]  ;;  %v622_v19 = vld [vmem:[%s5170_s1 + $0x1228] sm:$0xff] }
  0x72   :  { %1168 = vmatprep.subr.mxu1 %v128_v20  ;;  %1051 = vmatpush1.msra.mxu0 %v489_v21  ;;  %v260_v20 = vld [vmem:[%s5170_s1 + $0x6d8] sm:$0xff]  ;;  %v3434_v21 = vrot.slane %v3182_v50, %v2997_v52  ;;  %v253_v52 = vld [vmem:[%s5170_s1 + $0x6a0] sm:$0xff] }
  0x73   :  { %1169 = vmatpush1.msra.mxu1 %v127_v22  ;;  %1052 = vmatprep.subr.mxu0 %v707_v23  ;;  %v616_v22 = vld [vmem:[%s5170_s1 + $0x11f8] sm:$0xff]  ;;  %v254_v23 = vld [vmem:[%s5170_s1 + $0x6a8] sm:$0xff]  ;;  %v609_v50 = vld [vmem:[%s5170_s1 + $0x11c0] sm:$0xff] }
  0x74   :  { %1170 = vmatprep.subr.mxu1 %v121_v24  ;;  %1053 = vmatpush2.msra.mxu0 %v706_v25  ;;  %v615_v24 = vld [vmem:[%s5170_s1 + $0x11f0] sm:$0xff] }
  0x75   :  { %1171 = vmatpush1.msra.mxu1 %v120_v26  ;;  %1054 = vmatprep.subr.mxu0 %v700_v27  ;;  %v247_v25 = vld [vmem:[%s5170_s1 + $0x670] sm:$0xff]  ;;  %v608_v26 = vld [vmem:[%s5170_s1 + $0x11b8] sm:$0xff]  ;;  %v246_v27 = vld [vmem:[%s5170_s1 + $0x668] sm:$0xff] }
  0x76   :  { %1172 = vmatprep.subr.mxu1 %v114_v28  ;;  %1055 = vmatpush2.msra.mxu0 %v699_v29  ;;  %v602_v28 = vld [vmem:[%s5170_s1 + $0x1188] sm:$0xff]  ;;  %v240_v29 = vld [vmem:[%s5170_s1 + $0x638] sm:$0xff] }
  0x77   :  { %1173 = vmatpush1.msra.mxu1 %v113_v31  ;;  %1056 = vmatprep.subr.mxu0 %v693_v32  ;;  %v3468_v31 = vcombine.high %v3434_v21, %v3434_v21  ;;  %v601_v32 = vld [vmem:[%s5170_s1 + $0x1180] sm:$0xff] }
  0x78   :  { %1174 = vmatprep.subr.mxu1 %v107_v33  ;;  %1057 = vmatpush2.msra.mxu0 %v692_v34  ;;  %v239_v33 = vld [vmem:[%s5170_s1 + $0x630] sm:$0xff]  ;;  %v233_v34 = vld [vmem:[%s5170_s1 + $0x600] sm:$0xff] }
  0x79   :  { %1175 = vmatpush1.msra.mxu1 %v106_v35  ;;  %1058 = vmatprep.subr.mxu0 %v686_v36  ;;  %v373_v35 = vld [vmem:[%s5170_s1 + $0xa60] sm:$0xff]  ;;  %v232_v36 = vld [vmem:[%s5170_s1 + $0x5f8] sm:$0xff] }
  0x7a   :  { %1176 = vmatprep.subr.mxu1 %v100_v37  ;;  %1059 = vmatpush2.msra.mxu0 %v685_v38  ;;  %v372_v37 = vld [vmem:[%s5170_s1 + $0xa58] sm:$0xff]  ;;  %v226_v38 = vld [vmem:[%s5170_s1 + $0x5c8] sm:$0xff] }
  0x7b   :  { %1177 = vmatpush1.msra.mxu1 %v99_v39  ;;  %1060 = vmatprep.subr.mxu0 %v679_v40  ;;  %v366_v39 = vld [vmem:[%s5170_s1 + $0xa28] sm:$0xff]  ;;  %v225_v40 = vld [vmem:[%s5170_s1 + $0x5c0] sm:$0xff] }
  0x7c   :  { %1178 = vmatprep.subr.mxu1 %v93_v42  ;;  %1061 = vmatpush2.msra.mxu0 %v678_v43  ;;  %v365_v42 = vld [vmem:[%s5170_s1 + $0xa20] sm:$0xff]  ;;  %v219_v43 = vld [vmem:[%s5170_s1 + $0x590] sm:$0xff] }
  0x7d   :  { %1179 = vmatpush1.msra.mxu1 %v92_v44  ;;  %1062 = vmatprep.subr.mxu0 %v672_v45  ;;  %v359_v44 = vld [vmem:[%s5170_s1 + $0x9f0] sm:$0xff]  ;;  %v218_v45 = vld [vmem:[%s5170_s1 + $0x588] sm:$0xff] }
  0x7e   :  { %1180 = vmatprep.subr.mxu1 %v86_v46  ;;  %1063 = vmatpush2.msra.mxu0 %v671_v47  ;;  %v358_v46 = vld [vmem:[%s5170_s1 + $0x9e8] sm:$0xff]  ;;  %v212_v47 = vld [vmem:[%s5170_s1 + $0x558] sm:$0xff] }
  0x7f   :  { %1181 = vmatpush1.msra.mxu1 %v85_v48  ;;  %1064 = vmatprep.subr.mxu0 %v665_v49  ;;  %v352_v48 = vld [vmem:[%s5170_s1 + $0x9b8] sm:$0xff]  ;;  %v211_v49 = vld [vmem:[%s5170_s1 + $0x550] sm:$0xff] }
  0x80   :  { %1182 = vmatprep.subr.mxu1 %v79_v51  ;;  %1065 = vmatpush2.msra.mxu0 %v664_v53  ;;  %v351_v51 = vld [vmem:[%s5170_s1 + $0x9b0] sm:$0xff]  ;;  %v205_v53 = vld [vmem:[%s5170_s1 + $0x520] sm:$0xff] }
  0x81   :  { %1183 = vmatpush1.msra.mxu1 %v78_v54  ;;  %1066 = vmatprep.subr.mxu0 %v658_v55  ;;  %v345_v54 = vld [vmem:[%s5170_s1 + $0x980] sm:$0xff]  ;;  %v204_v55 = vld [vmem:[%s5170_s1 + $0x518] sm:$0xff] }
  0x82   :  { %1184 = vmatprep.subr.mxu1 %v72_v56  ;;  %1067 = vmatpush2.msra.mxu0 %v657_v57  ;;  %v344_v56 = vld [vmem:[%s5170_s1 + $0x978] sm:$0xff]  ;;  %v198_v57 = vld [vmem:[%s5170_s1 + $0x4e8] sm:$0xff] }
  0x83   :  { %1185 = vmatpush1.msra.mxu1 %v71_v58  ;;  %1068 = vmatprep.subr.mxu0 %v651_v59  ;;  %v338_v58 = vld [vmem:[%s5170_s1 + $0x948] sm:$0xff]  ;;  %v197_v59 = vld [vmem:[%s5170_s1 + $0x4e0] sm:$0xff] }
  0x84   :  { %1186 = vmatprep.subr.mxu1 %v65_v60  ;;  %1069 = vmatpush2.msra.mxu0 %v650_v61  ;;  %v337_v60 = vld [vmem:[%s5170_s1 + $0x940] sm:$0xff]  ;;  %v191_v61 = vld [vmem:[%s5170_s1 + $0x4b0] sm:$0xff] }
  0x85   :  { %1187 = vmatpush1.msra.mxu1 %v64_v63  ;;  %1070 = vmatprep.subr.mxu0 %v644_v0  ;;  %v331_v63 = vld [vmem:[%s5170_s1 + $0x910] sm:$0xff]  ;;  %v190_v0 = vld [vmem:[%s5170_s1 + $0x4a8] sm:$0xff] }
  0x86   :  { %1188 = vmatprep.subr.mxu1 %v58_v2  ;;  %1071 = vmatpush2.msra.mxu0 %v643_v3  ;;  %v330_v2 = vld [vmem:[%s5170_s1 + $0x908] sm:$0xff]  ;;  %v184_v3 = vld [vmem:[%s5170_s1 + $0x478] sm:$0xff] }
  0x87   :  { %1189 = vmatpush1.msra.mxu1 %v57_v5  ;;  %1072 = vmatprep.subr.mxu0 %v637_v6  ;;  %v324_v5 = vld [vmem:[%s5170_s1 + $0x8d8] sm:$0xff]  ;;  %v183_v6 = vld [vmem:[%s5170_s1 + $0x470] sm:$0xff] }
  0x88   :  { %1190 = vmatprep.subr.mxu1 %v51_v7  ;;  %1073 = vmatpush2.msra.mxu0 %v636_v11  ;;  %v323_v7 = vld [vmem:[%s5170_s1 + $0x8d0] sm:$0xff]  ;;  %v177_v11 = vld [vmem:[%s5170_s1 + $0x440] sm:$0xff] }
  0x89   :  { %1191 = vmatpush1.msra.mxu1 %v50_v12  ;;  %1074 = vmatprep.subr.mxu0 %v630_v13  ;;  %v317_v12 = vld [vmem:[%s5170_s1 + $0x8a0] sm:$0xff]  ;;  %v176_v13 = vld [vmem:[%s5170_s1 + $0x438] sm:$0xff] }
  0x8a   :  { %1192 = vmatprep.subr.mxu1 %v44_v14  ;;  %1075 = vmatpush2.msra.mxu0 %v629_v15  ;;  %v316_v14 = vld [vmem:[%s5170_s1 + $0x898] sm:$0xff]  ;;  %v170_v15 = vld [vmem:[%s5170_s1 + $0x408] sm:$0xff] }
  0x8b   :  { %1193 = vmatpush1.msra.mxu1 %v43_v16  ;;  %1076 = vmatprep.subr.mxu0 %v623_v17  ;;  %v310_v16 = vld [vmem:[%s5170_s1 + $0x868] sm:$0xff]  ;;  %v169_v17 = vld [vmem:[%s5170_s1 + $0x400] sm:$0xff] }
  0x8c   :  { %1194 = vmatprep.subr.mxu1 %v261_v18  ;;  %1077 = vmatpush2.msra.mxu0 %v622_v19  ;;  %v309_v18 = vld [vmem:[%s5170_s1 + $0x860] sm:$0xff]  ;;  %v163_v19 = vld [vmem:[%s5170_s1 + $0x3d0] sm:$0xff] }
  0x8d   :  { %1195 = vmatpush2.msra.mxu1 %v260_v20  ;;  %1078 = vmatprep.subr.mxu0 %v616_v22  ;;  %v303_v20 = vld [vmem:[%s5170_s1 + $0x830] sm:$0xff]  ;;  %v162_v22 = vld [vmem:[%s5170_s1 + $0x3c8] sm:$0xff] }
  0x8e   :  { %1196 = vmatprep.subr.mxu1 %v254_v23  ;;  %1079 = vmatpush2.msra.mxu0 %v615_v24  ;;  %v302_v23 = vld [vmem:[%s5170_s1 + $0x828] sm:$0xff]  ;;  %v156_v24 = vld [vmem:[%s5170_s1 + $0x398] sm:$0xff] }
  0x8f   :  { %1197 = vmatpush2.msra.mxu1 %v253_v52  ;;  %1080 = vmatprep.subr.mxu0 %v609_v50  ;;  %v296_v52 = vld [vmem:[%s5170_s1 + $0x7f8] sm:$0xff]  ;;  %v155_v50 = vld [vmem:[%s5170_s1 + $0x390] sm:$0xff] }
  0x90   :  { %1198 = vmatprep.subr.mxu1 %v247_v25  ;;  %1081 = vmatpush2.msra.mxu0 %v608_v26  ;;  %v295_v25 = vld [vmem:[%s5170_s1 + $0x7f0] sm:$0xff]  ;;  %v289_v26 = vld [vmem:[%s5170_s1 + $0x7c0] sm:$0xff] }
  0x91   :  { %1199 = vmatpush2.msra.mxu1 %v246_v27  ;;  %1082 = vmatprep.subr.mxu0 %v602_v28  ;;  %v597_v27 = vld [vmem:[%s5170_s1 + $0x1160] sm:$0xff]  ;;  %v288_v28 = vld [vmem:[%s5170_s1 + $0x7b8] sm:$0xff] }
  0x92   :  { %1200 = vmatprep.subr.mxu1 %v240_v29  ;;  %1083 = vmatpush2.msra.mxu0 %v601_v32  ;;  %v596_v29 = vld [vmem:[%s5170_s1 + $0x1158] sm:$0xff]  ;;  %v282_v32 = vld [vmem:[%s5170_s1 + $0x788] sm:$0xff] }
  0x93   :  { %1084 = vmatprep.mubr.f32.mxu0 %v3468_v31  ;;  %1201 = vmatpush2.msra.mxu1 %v239_v33  ;;  %v590_v33 = vld [vmem:[%s5170_s1 + $0x1128] sm:$0xff] }
  0x94   :  { %1085 = vmatmul.mubr.f32.vlgmr.msra.gmra.mxu0 %v3434_v21  ;;  %1202 = vmatprep.subr.mxu1 %v233_v34  ;;  %v281_v34 = vld [vmem:[%s5170_s1 + $0x780] sm:$0xff] }
  0x95   :  { %1233 = vmatprep.subr.mxu0 %v373_v35  ;;  %1203 = vmatpush2.msra.mxu1 %v232_v36  ;;  %v589_v35 = vld [vmem:[%s5170_s1 + $0x1120] sm:$0xff]  ;;  %v275_v36 = vld [vmem:[%s5170_s1 + $0x750] sm:$0xff] }
  0x96   :  { %1234 = vmatpush1.msra.mxu0 %v372_v37  ;;  %1204 = vmatprep.subr.mxu1 %v226_v38  ;;  %v583_v37 = vld [vmem:[%s5170_s1 + $0x10f0] sm:$0xff]  ;;  %v274_v38 = vld [vmem:[%s5170_s1 + $0x748] sm:$0xff] }
  0x97   :  { %1235 = vmatprep.subr.mxu0 %v366_v39  ;;  %1205 = vmatpush2.msra.mxu1 %v225_v40  ;;  %v582_v39 = vld [vmem:[%s5170_s1 + $0x10e8] sm:$0xff]  ;;  %v268_v40 = vld [vmem:[%s5170_s1 + $0x718] sm:$0xff] }
  0x98   :  { %1236 = vmatpush1.msra.mxu0 %v365_v42  ;;  %1206 = vmatprep.subr.mxu1 %v219_v43  ;;  %v576_v42 = vld [vmem:[%s5170_s1 + $0x10b8] sm:$0xff]  ;;  %v267_v43 = vld [vmem:[%s5170_s1 + $0x710] sm:$0xff] }
  0x99   :  { %1237 = vmatprep.subr.mxu0 %v359_v44  ;;  %1207 = vmatpush2.msra.mxu1 %v218_v45  ;;  %v575_v44 = vld [vmem:[%s5170_s1 + $0x10b0] sm:$0xff]  ;;  %v485_v45 = vld [vmem:[%s5170_s1 + $0xde0] sm:$0xff] }
  0x9a   :  { %1238 = vmatpush1.msra.mxu0 %v358_v46  ;;  %1208 = vmatprep.subr.mxu1 %v212_v47  ;;  %v569_v46 = vld [vmem:[%s5170_s1 + $0x1080] sm:$0xff]  ;;  %v484_v47 = vld [vmem:[%s5170_s1 + $0xdd8] sm:$0xff] }
  0x9b   :  { %1239 = vmatprep.subr.mxu0 %v352_v48  ;;  %1209 = vmatpush2.msra.mxu1 %v211_v49  ;;  %v568_v48 = vld [vmem:[%s5170_s1 + $0x1078] sm:$0xff]  ;;  %v478_v49 = vld [vmem:[%s5170_s1 + $0xda8] sm:$0xff] }
  0x9c   :  { %1240 = vmatpush1.msra.mxu0 %v351_v51  ;;  %1210 = vmatprep.subr.mxu1 %v205_v53  ;;  %v562_v51 = vld [vmem:[%s5170_s1 + $0x1048] sm:$0xff]  ;;  %v477_v53 = vld [vmem:[%s5170_s1 + $0xda0] sm:$0xff] }
  0x9d   :  { %1241 = vmatprep.subr.mxu0 %v345_v54  ;;  %1211 = vmatpush2.msra.mxu1 %v204_v55  ;;  %v561_v54 = vld [vmem:[%s5170_s1 + $0x1040] sm:$0xff]  ;;  %v471_v55 = vld [vmem:[%s5170_s1 + $0xd70] sm:$0xff] }
  0x9e   :  { %1242 = vmatpush1.msra.mxu0 %v344_v56  ;;  %1212 = vmatprep.subr.mxu1 %v198_v57  ;;  %v555_v56 = vld [vmem:[%s5170_s1 + $0x1010] sm:$0xff]  ;;  %v470_v57 = vld [vmem:[%s5170_s1 + $0xd68] sm:$0xff] }
  0x9f   :  { %1243 = vmatprep.subr.mxu0 %v338_v58  ;;  %1213 = vmatpush2.msra.mxu1 %v197_v59  ;;  %v554_v58 = vld [vmem:[%s5170_s1 + $0x1008] sm:$0xff]  ;;  %v464_v59 = vld [vmem:[%s5170_s1 + $0xd38] sm:$0xff] }
  0xa0   :  { %1244 = vmatpush1.msra.mxu0 %v337_v60  ;;  %1214 = vmatprep.subr.mxu1 %v191_v61  ;;  %v548_v60 = vld [vmem:[%s5170_s1 + $0xfd8] sm:$0xff]  ;;  %v463_v61 = vld [vmem:[%s5170_s1 + $0xd30] sm:$0xff] }
  0xa1   :  { %1245 = vmatprep.subr.mxu0 %v331_v63  ;;  %1215 = vmatpush2.msra.mxu1 %v190_v0  ;;  %v547_v63 = vld [vmem:[%s5170_s1 + $0xfd0] sm:$0xff]  ;;  %v457_v0 = vld [vmem:[%s5170_s1 + $0xd00] sm:$0xff] }
  0xa2   :  { %1246 = vmatpush1.msra.mxu0 %v330_v2  ;;  %1216 = vmatprep.subr.mxu1 %v184_v3  ;;  %v541_v2 = vld [vmem:[%s5170_s1 + $0xfa0] sm:$0xff]  ;;  %v456_v3 = vld [vmem:[%s5170_s1 + $0xcf8] sm:$0xff] }
  0xa3   :  { %1247 = vmatprep.subr.mxu0 %v324_v5  ;;  %1217 = vmatpush2.msra.mxu1 %v183_v6  ;;  %v540_v5 = vld [vmem:[%s5170_s1 + $0xf98] sm:$0xff]  ;;  %v450_v6 = vld [vmem:[%s5170_s1 + $0xcc8] sm:$0xff] }
  0xa4   :  { %1248 = vmatpush1.msra.mxu0 %v323_v7  ;;  %1218 = vmatprep.subr.mxu1 %v177_v11  ;;  %v534_v7 = vld [vmem:[%s5170_s1 + $0xf68] sm:$0xff]  ;;  %v449_v11 = vld [vmem:[%s5170_s1 + $0xcc0] sm:$0xff] }
  0xa5   :  { %1249 = vmatprep.subr.mxu0 %v317_v12  ;;  %1219 = vmatpush2.msra.mxu1 %v176_v13  ;;  %v533_v12 = vld [vmem:[%s5170_s1 + $0xf60] sm:$0xff]  ;;  %v443_v13 = vld [vmem:[%s5170_s1 + $0xc90] sm:$0xff] }
  0xa6   :  { %1250 = vmatpush1.msra.mxu0 %v316_v14  ;;  %1220 = vmatprep.subr.mxu1 %v170_v15  ;;  %v527_v14 = vld [vmem:[%s5170_s1 + $0xf30] sm:$0xff]  ;;  %v442_v15 = vld [vmem:[%s5170_s1 + $0xc88] sm:$0xff] }
  0xa7   :  { %1251 = vmatprep.subr.mxu0 %v310_v16  ;;  %1221 = vmatpush2.msra.mxu1 %v169_v17  ;;  %v526_v16 = vld [vmem:[%s5170_s1 + $0xf28] sm:$0xff]  ;;  %v436_v17 = vld [vmem:[%s5170_s1 + $0xc58] sm:$0xff] }
  0xa8   :  { %1252 = vmatpush1.msra.mxu0 %v309_v18  ;;  %1222 = vmatprep.subr.mxu1 %v163_v19  ;;  %v520_v18 = vld [vmem:[%s5170_s1 + $0xef8] sm:$0xff]  ;;  %v435_v19 = vld [vmem:[%s5170_s1 + $0xc50] sm:$0xff] }
  0xa9   :  { %1253 = vmatprep.subr.mxu0 %v303_v20  ;;  %1223 = vmatpush2.msra.mxu1 %v162_v22  ;;  %v519_v20 = vld [vmem:[%s5170_s1 + $0xef0] sm:$0xff]  ;;  %v429_v22 = vld [vmem:[%s5170_s1 + $0xc20] sm:$0xff] }
  0xaa   :  { %1254 = vmatpush1.msra.mxu0 %v302_v23  ;;  %1224 = vmatprep.subr.mxu1 %v156_v24  ;;  %v513_v23 = vld [vmem:[%s5170_s1 + $0xec0] sm:$0xff]  ;;  %v428_v24 = vld [vmem:[%s5170_s1 + $0xc18] sm:$0xff] }
  0xab   :  { %1255 = vmatprep.subr.mxu0 %v296_v52  ;;  %1225 = vmatpush2.msra.mxu1 %v155_v50  ;;  %v512_v52 = vld [vmem:[%s5170_s1 + $0xeb8] sm:$0xff]  ;;  %v422_v50 = vld [vmem:[%s5170_s1 + $0xbe8] sm:$0xff] }
  0xac   :  { %1226 = vmatprep.mubr.f32.mxu1 %v3055_v8  ;;  %1256 = vmatpush1.msra.mxu0 %v295_v25  ;;  %v506_v25 = vld [vmem:[%s5170_s1 + $0xe88] sm:$0xff] }
  0xad   :  { %1227 = vmatmul.mubr.f32.vlgmr.msra.gmra.mxu1 %v3024_v62  ;;  %1257 = vmatprep.subr.mxu0 %v289_v26  ;;  %v421_v26 = vld [vmem:[%s5170_s1 + $0xbe0] sm:$0xff] }
  0xae   :  { %1304 = vmatprep.subr.mxu1 %v597_v27  ;;  %1258 = vmatpush1.msra.mxu0 %v288_v28  ;;  %v505_v27 = vld [vmem:[%s5170_s1 + $0xe80] sm:$0xff]  ;;  %v415_v28 = vld [vmem:[%s5170_s1 + $0xbb0] sm:$0xff] }
  0xaf   :  { %1305 = vmatpush1.msra.mxu1 %v596_v29  ;;  %1259 = vmatprep.subr.mxu0 %v282_v32  ;;  %v499_v29 = vld [vmem:[%s5170_s1 + $0xe50] sm:$0xff]  ;;  %v414_v32 = vld [vmem:[%s5170_s1 + $0xba8] sm:$0xff] }
  0xb0   :  { %1306 = vmatprep.subr.mxu1 %v590_v33  ;;  %1260 = vmatpush1.msra.mxu0 %v281_v34  ;;  %v498_v33 = vld [vmem:[%s5170_s1 + $0xe48] sm:$0xff]  ;;  %v408_v34 = vld [vmem:[%s5170_s1 + $0xb78] sm:$0xff] }
  0xb1   :  { %1307 = vmatpush1.msra.mxu1 %v589_v35  ;;  %1261 = vmatprep.subr.mxu0 %v275_v36  ;;  %v492_v35 = vld [vmem:[%s5170_s1 + $0xe18] sm:$0xff]  ;;  %v407_v36 = vld [vmem:[%s5170_s1 + $0xb70] sm:$0xff] }
  0xb2   :  { %1308 = vmatprep.subr.mxu1 %v583_v37  ;;  %1262 = vmatpush1.msra.mxu0 %v274_v38  ;;  %v491_v37 = vld [vmem:[%s5170_s1 + $0xe10] sm:$0xff]  ;;  %v401_v38 = vld [vmem:[%s5170_s1 + $0xb40] sm:$0xff] }
  0xb3   :  { %1309 = vmatpush1.msra.mxu1 %v582_v39  ;;  %1263 = vmatprep.subr.mxu0 %v268_v40  ;;  %v709_v39 = vld [vmem:[%s5170_s1 + $0x14e0] sm:$0xff]  ;;  %v400_v40 = vld [vmem:[%s5170_s1 + $0xb38] sm:$0xff] }
  0xb4   :  { %1310 = vmatprep.subr.mxu1 %v576_v42  ;;  %1264 = vmatpush1.msra.mxu0 %v267_v43  ;;  %v708_v42 = vld [vmem:[%s5170_s1 + $0x14d8] sm:$0xff]  ;;  %v394_v43 = vld [vmem:[%s5170_s1 + $0xb08] sm:$0xff] }
  0xb5   :  { %1311 = vmatpush1.msra.mxu1 %v575_v44  ;;  %1265 = vmatprep.subr.mxu0 %v485_v45  ;;  %v702_v44 = vld [vmem:[%s5170_s1 + $0x14a8] sm:$0xff]  ;;  %v393_v45 = vld [vmem:[%s5170_s1 + $0xb00] sm:$0xff] }
  0xb6   :  { %1312 = vmatprep.subr.mxu1 %v569_v46  ;;  %1266 = vmatpush2.msra.mxu0 %v484_v47  ;;  %v701_v46 = vld [vmem:[%s5170_s1 + $0x14a0] sm:$0xff]  ;;  %v387_v47 = vld [vmem:[%s5170_s1 + $0xad0] sm:$0xff] }
  0xb7   :  { %1313 = vmatpush1.msra.mxu1 %v568_v48  ;;  %1267 = vmatprep.subr.mxu0 %v478_v49  ;;  %v695_v48 = vld [vmem:[%s5170_s1 + $0x1470] sm:$0xff]  ;;  %v386_v49 = vld [vmem:[%s5170_s1 + $0xac8] sm:$0xff] }
  0xb8   :  { %1314 = vmatprep.subr.mxu1 %v562_v51  ;;  %1268 = vmatpush2.msra.mxu0 %v477_v53  ;;  %v694_v51 = vld [vmem:[%s5170_s1 + $0x1468] sm:$0xff]  ;;  %v380_v53 = vld [vmem:[%s5170_s1 + $0xa98] sm:$0xff] }
  0xb9   :  { %1315 = vmatpush1.msra.mxu1 %v561_v54  ;;  %1269 = vmatprep.subr.mxu0 %v471_v55  ;;  %v688_v54 = vld [vmem:[%s5170_s1 + $0x1438] sm:$0xff]  ;;  %v379_v55 = vld [vmem:[%s5170_s1 + $0xa90] sm:$0xff] }
  0xba   :  { %1316 = vmatprep.subr.mxu1 %v555_v56  ;;  %1270 = vmatpush2.msra.mxu0 %v470_v57  ;;  %v687_v56 = vld [vmem:[%s5170_s1 + $0x1430] sm:$0xff]  ;;  %v681_v57 = vld [vmem:[%s5170_s1 + $0x1400] sm:$0xff] }
  0xbb   :  { %1317 = vmatpush1.msra.mxu1 %v554_v58  ;;  %1271 = vmatprep.subr.mxu0 %v464_v59  ;;  %v793_v58 = vld [vmem:[%s5170_s1 + $0x1780] sm:$0xff]  ;;  %v680_v59 = vld [vmem:[%s5170_s1 + $0x13f8] sm:$0xff] }
  0xbc   :  { %1318 = vmatprep.subr.mxu1 %v548_v60  ;;  %1272 = vmatpush2.msra.mxu0 %v463_v61  ;;  %v792_v60 = vld [vmem:[%s5170_s1 + $0x1778] sm:$0xff]  ;;  %v674_v61 = vld [vmem:[%s5170_s1 + $0x13c8] sm:$0xff] }
  0xbd   :  { %1319 = vmatpush1.msra.mxu1 %v547_v63  ;;  %1273 = vmatprep.subr.mxu0 %v457_v0  ;;  %v786_v63 = vld [vmem:[%s5170_s1 + $0x1748] sm:$0xff]  ;;  %v673_v0 = vld [vmem:[%s5170_s1 + $0x13c0] sm:$0xff] }
  0xbe   :  { %1320 = vmatprep.subr.mxu1 %v541_v2  ;;  %1274 = vmatpush2.msra.mxu0 %v456_v3  ;;  %v785_v2 = vld [vmem:[%s5170_s1 + $0x1740] sm:$0xff]  ;;  %v667_v3 = vld [vmem:[%s5170_s1 + $0x1390] sm:$0xff] }
  0xbf   :  { %1321 = vmatpush1.msra.mxu1 %v540_v5  ;;  %1275 = vmatprep.subr.mxu0 %v450_v6  ;;  %v779_v5 = vld [vmem:[%s5170_s1 + $0x1710] sm:$0xff]  ;;  %v666_v6 = vld [vmem:[%s5170_s1 + $0x1388] sm:$0xff] }
  0xc0   :  { %1322 = vmatprep.subr.mxu1 %v534_v7  ;;  %1276 = vmatpush2.msra.mxu0 %v449_v11  ;;  %v778_v7 = vld [vmem:[%s5170_s1 + $0x1708] sm:$0xff]  ;;  %v660_v11 = vld [vmem:[%s5170_s1 + $0x1358] sm:$0xff] }
  0xc1   :  { %1323 = vmatpush1.msra.mxu1 %v533_v12  ;;  %1277 = vmatprep.subr.mxu0 %v443_v13  ;;  %v772_v12 = vld [vmem:[%s5170_s1 + $0x16d8] sm:$0xff]  ;;  %v659_v13 = vld [vmem:[%s5170_s1 + $0x1350] sm:$0xff] }
  0xc2   :  { %1324 = vmatprep.subr.mxu1 %v527_v14  ;;  %1278 = vmatpush2.msra.mxu0 %v442_v15  ;;  %v771_v14 = vld [vmem:[%s5170_s1 + $0x16d0] sm:$0xff]  ;;  %v653_v15 = vld [vmem:[%s5170_s1 + $0x1320] sm:$0xff] }
  0xc3   :  { %1325 = vmatpush1.msra.mxu1 %v526_v16  ;;  %1279 = vmatprep.subr.mxu0 %v436_v17  ;;  %v765_v16 = vld [vmem:[%s5170_s1 + $0x16a0] sm:$0xff]  ;;  %v652_v17 = vld [vmem:[%s5170_s1 + $0x1318] sm:$0xff] }
  0xc4   :  { %1326 = vmatprep.subr.mxu1 %v520_v18  ;;  %1280 = vmatpush2.msra.mxu0 %v435_v19  ;;  %v764_v18 = vld [vmem:[%s5170_s1 + $0x1698] sm:$0xff]  ;;  %v646_v19 = vld [vmem:[%s5170_s1 + $0x12e8] sm:$0xff] }
  0xc5   :  { %1327 = vmatpush1.msra.mxu1 %v519_v20  ;;  %1281 = vmatprep.subr.mxu0 %v429_v22  ;;  %v758_v20 = vld [vmem:[%s5170_s1 + $0x1668] sm:$0xff]  ;;  %v645_v22 = vld [vmem:[%s5170_s1 + $0x12e0] sm:$0xff] }
  0xc6   :  { %1328 = vmatprep.subr.mxu1 %v513_v23  ;;  %1282 = vmatpush2.msra.mxu0 %v428_v24  ;;  %v757_v23 = vld [vmem:[%s5170_s1 + $0x1660] sm:$0xff]  ;;  %v639_v24 = vld [vmem:[%s5170_s1 + $0x12b0] sm:$0xff] }
  0xc7   :  { %1329 = vmatpush1.msra.mxu1 %v512_v52  ;;  %1283 = vmatprep.subr.mxu0 %v422_v50  ;;  %v751_v52 = vld [vmem:[%s5170_s1 + $0x1630] sm:$0xff]  ;;  %v638_v50 = vld [vmem:[%s5170_s1 + $0x12a8] sm:$0xff] }
  0xc8   :  { %1330 = vmatprep.subr.mxu1 %v506_v25  ;;  %1284 = vmatpush2.msra.mxu0 %v421_v26  ;;  %v750_v25 = vld [vmem:[%s5170_s1 + $0x1628] sm:$0xff]  ;;  %v632_v26 = vld [vmem:[%s5170_s1 + $0x1278] sm:$0xff] }
  0xc9   :  { %1331 = vmatpush1.msra.mxu1 %v505_v27  ;;  %1285 = vmatprep.subr.mxu0 %v415_v28  ;;  %v744_v27 = vld [vmem:[%s5170_s1 + $0x15f8] sm:$0xff]  ;;  %v631_v28 = vld [vmem:[%s5170_s1 + $0x1270] sm:$0xff] }
  0xca   :  { %1332 = vmatprep.subr.mxu1 %v499_v29  ;;  %1286 = vmatpush2.msra.mxu0 %v414_v32  ;;  %v743_v29 = vld [vmem:[%s5170_s1 + $0x15f0] sm:$0xff]  ;;  %v625_v32 = vld [vmem:[%s5170_s1 + $0x1240] sm:$0xff] }
  0xcb   :  { %1333 = vmatpush1.msra.mxu1 %v498_v33  ;;  %1287 = vmatprep.subr.mxu0 %v408_v34  ;;  %v737_v33 = vld [vmem:[%s5170_s1 + $0x15c0] sm:$0xff]  ;;  %v624_v34 = vld [vmem:[%s5170_s1 + $0x1238] sm:$0xff] }
  0xcc   :  { %1334 = vmatprep.subr.mxu1 %v492_v35  ;;  %1288 = vmatpush2.msra.mxu0 %v407_v36  ;;  %v736_v35 = vld [vmem:[%s5170_s1 + $0x15b8] sm:$0xff]  ;;  %v618_v36 = vld [vmem:[%s5170_s1 + $0x1208] sm:$0xff] }
  0xcd   :  { %1335 = vmatpush1.msra.mxu1 %v491_v37  ;;  %1289 = vmatprep.subr.mxu0 %v401_v38  ;;  %v730_v37 = vld [vmem:[%s5170_s1 + $0x1588] sm:$0xff]  ;;  %v617_v38 = vld [vmem:[%s5170_s1 + $0x1200] sm:$0xff] }
  0xce   :  { %1336 = vmatprep.subr.mxu1 %v709_v39  ;;  %1290 = vmatpush2.msra.mxu0 %v400_v40  ;;  %v729_v39 = vld [vmem:[%s5170_s1 + $0x1580] sm:$0xff]  ;;  %v611_v40 = vld [vmem:[%s5170_s1 + $0x11d0] sm:$0xff] }
  0xcf   :  { %1337 = vmatpush2.msra.mxu1 %v708_v42  ;;  %1291 = vmatprep.subr.mxu0 %v394_v43  ;;  %v723_v42 = vld [vmem:[%s5170_s1 + $0x1550] sm:$0xff]  ;;  %v610_v43 = vld [vmem:[%s5170_s1 + $0x11c8] sm:$0xff] }
  0xd0   :  { %1338 = vmatprep.subr.mxu1 %v702_v44  ;;  %1292 = vmatpush2.msra.mxu0 %v393_v45  ;;  %v722_v44 = vld [vmem:[%s5170_s1 + $0x1548] sm:$0xff]  ;;  %v604_v45 = vld [vmem:[%s5170_s1 + $0x1198] sm:$0xff] }
  0xd1   :  { %1339 = vmatpush2.msra.mxu1 %v701_v46  ;;  %1293 = vmatprep.subr.mxu0 %v387_v47  ;;  %v716_v46 = vld [vmem:[%s5170_s1 + $0x1518] sm:$0xff]  ;;  %v603_v47 = vld [vmem:[%s5170_s1 + $0x1190] sm:$0xff] }
  0xd2   :  { %1340 = vmatprep.subr.mxu1 %v695_v48  ;;  %1294 = vmatpush2.msra.mxu0 %v386_v49  ;;  %v715_v48 = vld [vmem:[%s5170_s1 + $0x1510] sm:$0xff] }
  0xd3   :  { %1341 = vmatpush2.msra.mxu1 %v694_v51  ;;  %1295 = vmatprep.subr.mxu0 %v380_v53  ;;  %v151_v49 = vld [vmem:[%s5170_s1 + $0x370] sm:$0xff]  ;;  %v150_v53 = vld [vmem:[%s5170_s1 + $0x368] sm:$0xff] }
  0xd4   :  { %1342 = vmatprep.subr.mxu1 %v688_v54  ;;  %1296 = vmatpush2.msra.mxu0 %v379_v55  ;;  %v375_v51 = vld [vmem:[%s5170_s1 + $0xa70] sm:$0xff]  ;;  %v374_v54 = vld [vmem:[%s5170_s1 + $0xa68] sm:$0xff]  ;;  %v144_v55 = vld [vmem:[%s5170_s1 + $0x338] sm:$0xff] }
  0xd5   :  { %1297 = vmatprep.mubr.f32.mxu0 %v3062_v10  ;;  %1343 = vmatpush2.msra.mxu1 %v687_v56  ;;  %v368_v56 = vld [vmem:[%s5170_s1 + $0xa38] sm:$0xff] }
  0xd6   :  { %1298 = vmatmul.mubr.f32.vlgmr.msra.gmra.mxu0 %v3033_v1  ;;  %1344 = vmatprep.subr.mxu1 %v681_v57  ;;  %v143_v57 = vld [vmem:[%s5170_s1 + $0x330] sm:$0xff] }
  0xd7   :  { %1383 = vmatprep.subr.mxu0 %v793_v58  ;;  %1345 = vmatpush2.msra.mxu1 %v680_v59  ;;  %v367_v58 = vld [vmem:[%s5170_s1 + $0xa30] sm:$0xff]  ;;  %v137_v59 = vld [vmem:[%s5170_s1 + $0x300] sm:$0xff] }
  0xd8   :  { %1384 = vmatpush1.msra.mxu0 %v792_v60  ;;  %1346 = vmatprep.subr.mxu1 %v674_v61  ;;  %v361_v60 = vld [vmem:[%s5170_s1 + $0xa00] sm:$0xff]  ;;  %v136_v61 = vld [vmem:[%s5170_s1 + $0x2f8] sm:$0xff] }
  0xd9   :  { %1385 = vmatprep.subr.mxu0 %v786_v63  ;;  %1347 = vmatpush2.msra.mxu1 %v673_v0  ;;  %v360_v63 = vld [vmem:[%s5170_s1 + $0x9f8] sm:$0xff]  ;;  %v130_v0 = vld [vmem:[%s5170_s1 + $0x2c8] sm:$0xff] }
  0xda   :  { %1386 = vmatpush1.msra.mxu0 %v785_v2  ;;  %1348 = vmatprep.subr.mxu1 %v667_v3  ;;  %v354_v2 = vld [vmem:[%s5170_s1 + $0x9c8] sm:$0xff]  ;;  %v129_v3 = vld [vmem:[%s5170_s1 + $0x2c0] sm:$0xff] }
  0xdb   :  { %1387 = vmatprep.subr.mxu0 %v779_v5  ;;  %1349 = vmatpush2.msra.mxu1 %v666_v6  ;;  %v353_v5 = vld [vmem:[%s5170_s1 + $0x9c0] sm:$0xff]  ;;  %v123_v6 = vld [vmem:[%s5170_s1 + $0x290] sm:$0xff] }
  0xdc   :  { %1388 = vmatpush1.msra.mxu0 %v778_v7  ;;  %1350 = vmatprep.subr.mxu1 %v660_v11  ;;  %v347_v7 = vld [vmem:[%s5170_s1 + $0x990] sm:$0xff]  ;;  %v122_v11 = vld [vmem:[%s5170_s1 + $0x288] sm:$0xff] }
  0xdd   :  { %1389 = vmatprep.subr.mxu0 %v772_v12  ;;  %1351 = vmatpush2.msra.mxu1 %v659_v13  ;;  %v346_v12 = vld [vmem:[%s5170_s1 + $0x988] sm:$0xff]  ;;  %v116_v13 = vld [vmem:[%s5170_s1 + $0x258] sm:$0xff] }
  0xde   :  { %1390 = vmatpush1.msra.mxu0 %v771_v14  ;;  %1352 = vmatprep.subr.mxu1 %v653_v15  ;;  %v340_v14 = vld [vmem:[%s5170_s1 + $0x958] sm:$0xff]  ;;  %v115_v15 = vld [vmem:[%s5170_s1 + $0x250] sm:$0xff] }
  0xdf   :  { %1391 = vmatprep.subr.mxu0 %v765_v16  ;;  %1353 = vmatpush2.msra.mxu1 %v652_v17  ;;  %v339_v16 = vld [vmem:[%s5170_s1 + $0x950] sm:$0xff]  ;;  %v109_v17 = vld [vmem:[%s5170_s1 + $0x220] sm:$0xff] }
  0xe0   :  { %1392 = vmatpush1.msra.mxu0 %v764_v18  ;;  %1354 = vmatprep.subr.mxu1 %v646_v19  ;;  %v333_v18 = vld [vmem:[%s5170_s1 + $0x920] sm:$0xff]  ;;  %v108_v19 = vld [vmem:[%s5170_s1 + $0x218] sm:$0xff] }
  0xe1   :  { %1393 = vmatprep.subr.mxu0 %v758_v20  ;;  %1355 = vmatpush2.msra.mxu1 %v645_v22  ;;  %v332_v20 = vld [vmem:[%s5170_s1 + $0x918] sm:$0xff]  ;;  %v102_v22 = vld [vmem:[%s5170_s1 + $0x1e8] sm:$0xff] }
  0xe2   :  { %1394 = vmatpush1.msra.mxu0 %v757_v23  ;;  %1356 = vmatprep.subr.mxu1 %v639_v24  ;;  %v326_v23 = vld [vmem:[%s5170_s1 + $0x8e8] sm:$0xff]  ;;  %v101_v24 = vld [vmem:[%s5170_s1 + $0x1e0] sm:$0xff] }
  0xe3   :  { %1395 = vmatprep.subr.mxu0 %v751_v52  ;;  %1357 = vmatpush2.msra.mxu1 %v638_v50  ;;  %v325_v52 = vld [vmem:[%s5170_s1 + $0x8e0] sm:$0xff]  ;;  %v95_v50 = vld [vmem:[%s5170_s1 + $0x1b0] sm:$0xff] }
  0xe4   :  { %1396 = vmatpush1.msra.mxu0 %v750_v25  ;;  %1358 = vmatprep.subr.mxu1 %v632_v26  ;;  %v319_v25 = vld [vmem:[%s5170_s1 + $0x8b0] sm:$0xff]  ;;  %v94_v26 = vld [vmem:[%s5170_s1 + $0x1a8] sm:$0xff] }
  0xe5   :  { %1397 = vmatprep.subr.mxu0 %v744_v27  ;;  %1359 = vmatpush2.msra.mxu1 %v631_v28  ;;  %v318_v27 = vld [vmem:[%s5170_s1 + $0x8a8] sm:$0xff]  ;;  %v88_v28 = vld [vmem:[%s5170_s1 + $0x178] sm:$0xff] }
  0xe6   :  { %1398 = vmatpush1.msra.mxu0 %v743_v29  ;;  %1360 = vmatprep.subr.mxu1 %v625_v32  ;;  %v312_v29 = vld [vmem:[%s5170_s1 + $0x878] sm:$0xff]  ;;  %v87_v32 = vld [vmem:[%s5170_s1 + $0x170] sm:$0xff] }
  0xe7   :  { %1399 = vmatprep.subr.mxu0 %v737_v33  ;;  %1361 = vmatpush2.msra.mxu1 %v624_v34  ;;  %v311_v33 = vld [vmem:[%s5170_s1 + $0x870] sm:$0xff]  ;;  %v81_v34 = vld [vmem:[%s5170_s1 + $0x140] sm:$0xff] }
  0xe8   :  { %1400 = vmatpush1.msra.mxu0 %v736_v35  ;;  %1362 = vmatprep.subr.mxu1 %v618_v36  ;;  %v305_v35 = vld [vmem:[%s5170_s1 + $0x840] sm:$0xff]  ;;  %v80_v36 = vld [vmem:[%s5170_s1 + $0x138] sm:$0xff] }
  0xe9   :  { %1401 = vmatprep.subr.mxu0 %v730_v37  ;;  %1363 = vmatpush2.msra.mxu1 %v617_v38  ;;  %v304_v37 = vld [vmem:[%s5170_s1 + $0x838] sm:$0xff]  ;;  %v74_v38 = vld [vmem:[%s5170_s1 + $0x108] sm:$0xff] }
  0xea   :  { %1402 = vmatpush1.msra.mxu0 %v729_v39  ;;  %1364 = vmatprep.subr.mxu1 %v611_v40  ;;  %v298_v39 = vld [vmem:[%s5170_s1 + $0x808] sm:$0xff]  ;;  %v73_v40 = vld [vmem:[%s5170_s1 + $0x100] sm:$0xff] }
  0xeb   :  { %1403 = vmatprep.subr.mxu0 %v723_v42  ;;  %1365 = vmatpush2.msra.mxu1 %v610_v43  ;;  %v297_v42 = vld [vmem:[%s5170_s1 + $0x800] sm:$0xff]  ;;  %v67_v43 = vld [vmem:[%s5170_s1 + $0xd0] sm:$0xff] }
  0xec   :  { %1404 = vmatpush1.msra.mxu0 %v722_v44  ;;  %1366 = vmatprep.subr.mxu1 %v604_v45  ;;  %v291_v44 = vld [vmem:[%s5170_s1 + $0x7d0] sm:$0xff]  ;;  %v66_v45 = vld [vmem:[%s5170_s1 + $0xc8] sm:$0xff] }
  0xed   :  { %1405 = vmatprep.subr.mxu0 %v716_v46  ;;  %1367 = vmatpush2.msra.mxu1 %v603_v47  ;;  %v290_v46 = vld [vmem:[%s5170_s1 + $0x7c8] sm:$0xff]  ;;  %v60_v47 = vld [vmem:[%s5170_s1 + $0x98] sm:$0xff] }
  0xee   :  { %1368 = vmatprep.mubr.f32.mxu1 %v3468_v31  ;;  %1406 = vmatpush1.msra.mxu0 %v715_v48  ;;  %v284_v48 = vld [vmem:[%s5170_s1 + $0x798] sm:$0xff] }
  0xef   :  { %1369 = vmatmul.mubr.f32.vlgmr.msra.gmra.mxu1 %v3434_v21  ;;  %1439 = vmatprep.mubr.f32.mxu0 %v2615_v9 }
  0xf0   :  { %1446 = vmatprep.subr.mxu0 %v151_v49  ;;  %1517 = vmatprep.subr.mxu1 %v375_v51  ;;  %v59_v49 = vld [vmem:[%s5170_s1 + $0x90] sm:$0xff] }
  0xf1   :  { %2409 = vmatmul.mubr.msk.f32.vlgmr.msra.gmra.mxu0 %vm875_vm0, %v3226_v4  ;;  %1518 = vmatpush1.msra.mxu1 %v374_v54  ;;  %v283_v51 = vld [vmem:[%s5170_s1 + $0x790] sm:$0xff]  ;;  %v277_v54 = vld [vmem:[%s5170_s1 + $0x760] sm:$0xff] }
  0xf2   :  { %1447 = vmatpush1.msra.mxu0 %v150_v53  ;;  %1519 = vmatprep.subr.mxu1 %v368_v56  ;;  %v53_v53 = vld [vmem:[%s5170_s1 + $0x60] sm:$0xff]  ;;  %v276_v56 = vld [vmem:[%s5170_s1 + $0x758] sm:$0xff] }
  0xf3   :  { %1448 = vmatprep.subr.mxu0 %v144_v55  ;;  %1520 = vmatpush1.msra.mxu1 %v367_v58  ;;  %v52_v55 = vld [vmem:[%s5170_s1 + $0x58] sm:$0xff]  ;;  %v270_v58 = vld [vmem:[%s5170_s1 + $0x728] sm:$0xff] }
  0xf4   :  { %1449 = vmatpush1.msra.mxu0 %v143_v57  ;;  %1521 = vmatprep.subr.mxu1 %v361_v60  ;;  %v46_v57 = vld [vmem:[%s5170_s1 + $0x28] sm:$0xff]  ;;  %v269_v60 = vld [vmem:[%s5170_s1 + $0x720] sm:$0xff] }
  0xf5   :  { %1450 = vmatprep.subr.mxu0 %v137_v59  ;;  %1522 = vmatpush1.msra.mxu1 %v360_v63  ;;  %v45_v59 = vld [vmem:[%s5170_s1 + $0x20] sm:$0xff]  ;;  %v487_v63 = vld [vmem:[%s5170_s1 + $0xdf0] sm:$0xff] }
  0xf6   :  { %1451 = vmatpush1.msra.mxu0 %v136_v61  ;;  %1523 = vmatprep.subr.mxu1 %v354_v2  ;;  %v263_v61 = vld [vmem:[%s5170_s1 + $0x6f0] sm:$0xff]  ;;  %v486_v2 = vld [vmem:[%s5170_s1 + $0xde8] sm:$0xff] }
  0xf7   :  { %1452 = vmatprep.subr.mxu0 %v130_v0  ;;  %1524 = vmatpush1.msra.mxu1 %v353_v5  ;;  %v262_v0 = vld [vmem:[%s5170_s1 + $0x6e8] sm:$0xff]  ;;  %v480_v5 = vld [vmem:[%s5170_s1 + $0xdb8] sm:$0xff] }
  0xf8   :  { %1453 = vmatpush1.msra.mxu0 %v129_v3  ;;  %1525 = vmatprep.subr.mxu1 %v347_v7  ;;  %v256_v3 = vld [vmem:[%s5170_s1 + $0x6b8] sm:$0xff]  ;;  %v479_v7 = vld [vmem:[%s5170_s1 + $0xdb0] sm:$0xff] }
  0xf9   :  { %1454 = vmatprep.subr.mxu0 %v123_v6  ;;  %1526 = vmatpush1.msra.mxu1 %v346_v12  ;;  %v255_v6 = vld [vmem:[%s5170_s1 + $0x6b0] sm:$0xff]  ;;  %v473_v12 = vld [vmem:[%s5170_s1 + $0xd80] sm:$0xff] }
  0xfa   :  { %1455 = vmatpush1.msra.mxu0 %v122_v11  ;;  %1527 = vmatprep.subr.mxu1 %v340_v14  ;;  %v249_v11 = vld [vmem:[%s5170_s1 + $0x680] sm:$0xff]  ;;  %v472_v14 = vld [vmem:[%s5170_s1 + $0xd78] sm:$0xff] }
  0xfb   :  { %1456 = vmatprep.subr.mxu0 %v116_v13  ;;  %1528 = vmatpush1.msra.mxu1 %v339_v16  ;;  %v248_v13 = vld [vmem:[%s5170_s1 + $0x678] sm:$0xff]  ;;  %v466_v16 = vld [vmem:[%s5170_s1 + $0xd48] sm:$0xff] }
  0xfc   :  { %1457 = vmatpush1.msra.mxu0 %v115_v15  ;;  %1529 = vmatprep.subr.mxu1 %v333_v18  ;;  %v242_v15 = vld [vmem:[%s5170_s1 + $0x648] sm:$0xff]  ;;  %v465_v18 = vld [vmem:[%s5170_s1 + $0xd40] sm:$0xff] }
  0xfd   :  { %1458 = vmatprep.subr.mxu0 %v109_v17  ;;  %1530 = vmatpush1.msra.mxu1 %v332_v20  ;;  %v241_v17 = vld [vmem:[%s5170_s1 + $0x640] sm:$0xff]  ;;  %v459_v20 = vld [vmem:[%s5170_s1 + $0xd10] sm:$0xff] }
  0xfe   :  { %1459 = vmatpush1.msra.mxu0 %v108_v19  ;;  %1531 = vmatprep.subr.mxu1 %v326_v23  ;;  %v235_v19 = vld [vmem:[%s5170_s1 + $0x610] sm:$0xff]  ;;  %v458_v23 = vld [vmem:[%s5170_s1 + $0xd08] sm:$0xff] }
  0xff   :  { %1460 = vmatprep.subr.mxu0 %v102_v22  ;;  %1532 = vmatpush1.msra.mxu1 %v325_v52  ;;  %v234_v22 = vld [vmem:[%s5170_s1 + $0x608] sm:$0xff]  ;;  %v452_v52 = vld [vmem:[%s5170_s1 + $0xcd8] sm:$0xff] }
 0x100   :  { %1461 = vmatpush1.msra.mxu0 %v101_v24  ;;  %1533 = vmatprep.subr.mxu1 %v319_v25  ;;  %v228_v24 = vld [vmem:[%s5170_s1 + $0x5d8] sm:$0xff]  ;;  %v451_v25 = vld [vmem:[%s5170_s1 + $0xcd0] sm:$0xff] }
 0x101   :  { %1462 = vmatprep.subr.mxu0 %v95_v50  ;;  %1534 = vmatpush1.msra.mxu1 %v318_v27  ;;  %v227_v50 = vld [vmem:[%s5170_s1 + $0x5d0] sm:$0xff]  ;;  %v445_v27 = vld [vmem:[%s5170_s1 + $0xca0] sm:$0xff] }
 0x102   :  { %1463 = vmatpush1.msra.mxu0 %v94_v26  ;;  %1535 = vmatprep.subr.mxu1 %v312_v29  ;;  %v221_v26 = vld [vmem:[%s5170_s1 + $0x5a0] sm:$0xff]  ;;  %v444_v29 = vld [vmem:[%s5170_s1 + $0xc98] sm:$0xff] }
 0x103   :  { %1464 = vmatprep.subr.mxu0 %v88_v28  ;;  %1536 = vmatpush1.msra.mxu1 %v311_v33  ;;  %v220_v28 = vld [vmem:[%s5170_s1 + $0x598] sm:$0xff]  ;;  %v438_v33 = vld [vmem:[%s5170_s1 + $0xc68] sm:$0xff] }
 0x104   :  { %1465 = vmatpush1.msra.mxu0 %v87_v32  ;;  %1537 = vmatprep.subr.mxu1 %v305_v35  ;;  %v214_v32 = vld [vmem:[%s5170_s1 + $0x568] sm:$0xff]  ;;  %v437_v35 = vld [vmem:[%s5170_s1 + $0xc60] sm:$0xff] }
 0x105   :  { %1466 = vmatprep.subr.mxu0 %v81_v34  ;;  %1538 = vmatpush1.msra.mxu1 %v304_v37  ;;  %v213_v34 = vld [vmem:[%s5170_s1 + $0x560] sm:$0xff]  ;;  %v431_v37 = vld [vmem:[%s5170_s1 + $0xc30] sm:$0xff] }
 0x106   :  { %1467 = vmatpush1.msra.mxu0 %v80_v36  ;;  %1539 = vmatprep.subr.mxu1 %v298_v39  ;;  %v207_v36 = vld [vmem:[%s5170_s1 + $0x530] sm:$0xff]  ;;  %v430_v39 = vld [vmem:[%s5170_s1 + $0xc28] sm:$0xff] }
 0x107   :  { %1468 = vmatprep.subr.mxu0 %v74_v38  ;;  %1540 = vmatpush1.msra.mxu1 %v297_v42  ;;  %v206_v38 = vld [vmem:[%s5170_s1 + $0x528] sm:$0xff]  ;;  %v424_v42 = vld [vmem:[%s5170_s1 + $0xbf8] sm:$0xff] }
 0x108   :  { %1469 = vmatpush1.msra.mxu0 %v73_v40  ;;  %1541 = vmatprep.subr.mxu1 %v291_v44  ;;  %v200_v40 = vld [vmem:[%s5170_s1 + $0x4f8] sm:$0xff]  ;;  %v423_v44 = vld [vmem:[%s5170_s1 + $0xbf0] sm:$0xff] }
 0x109   :  { %1470 = vmatprep.subr.mxu0 %v67_v43  ;;  %1542 = vmatpush1.msra.mxu1 %v290_v46  ;;  %v199_v43 = vld [vmem:[%s5170_s1 + $0x4f0] sm:$0xff]  ;;  %v417_v46 = vld [vmem:[%s5170_s1 + $0xbc0] sm:$0xff] }
 0x10a   :  { %1471 = vmatpush1.msra.mxu0 %v66_v45  ;;  %1543 = vmatprep.subr.mxu1 %v284_v48  ;;  %v193_v45 = vld [vmem:[%s5170_s1 + $0x4c0] sm:$0xff]  ;;  %v416_v48 = vld [vmem:[%s5170_s1 + $0xbb8] sm:$0xff] }
 0x10b   :  { %1472 = vmatprep.subr.mxu0 %v60_v47  ;;  %1544 = vmatpush1.msra.mxu1 %v283_v51  ;;  %v192_v47 = vld [vmem:[%s5170_s1 + $0x4b8] sm:$0xff]  ;;  %v410_v51 = vld [vmem:[%s5170_s1 + $0xb88] sm:$0xff] }
 0x10c   :  { %1473 = vmatpush1.msra.mxu0 %v59_v49  ;;  %1545 = vmatprep.subr.mxu1 %v277_v54  ;;  %v186_v49 = vld [vmem:[%s5170_s1 + $0x488] sm:$0xff]  ;;  %v409_v54 = vld [vmem:[%s5170_s1 + $0xb80] sm:$0xff] }
 0x10d   :  { %1474 = vmatprep.subr.mxu0 %v53_v53  ;;  %1546 = vmatpush1.msra.mxu1 %v276_v56  ;;  %v185_v53 = vld [vmem:[%s5170_s1 + $0x480] sm:$0xff]  ;;  %v403_v56 = vld [vmem:[%s5170_s1 + $0xb50] sm:$0xff] }
 0x10e   :  { %1475 = vmatpush1.msra.mxu0 %v52_v55  ;;  %1547 = vmatprep.subr.mxu1 %v270_v58  ;;  %v179_v55 = vld [vmem:[%s5170_s1 + $0x450] sm:$0xff]  ;;  %v402_v58 = vld [vmem:[%s5170_s1 + $0xb48] sm:$0xff] }
 0x10f   :  { %1476 = vmatprep.subr.mxu0 %v46_v57  ;;  %1548 = vmatpush1.msra.mxu1 %v269_v60  ;;  %v178_v57 = vld [vmem:[%s5170_s1 + $0x448] sm:$0xff]  ;;  %v396_v60 = vld [vmem:[%s5170_s1 + $0xb18] sm:$0xff] }
 0x110   :  { %1477 = vmatpush1.msra.mxu0 %v45_v59  ;;  %1549 = vmatprep.subr.mxu1 %v487_v63  ;;  %v172_v59 = vld [vmem:[%s5170_s1 + $0x418] sm:$0xff]  ;;  %v395_v63 = vld [vmem:[%s5170_s1 + $0xb10] sm:$0xff] }
 0x111   :  { %1478 = vmatprep.subr.mxu0 %v263_v61  ;;  %1550 = vmatpush2.msra.mxu1 %v486_v2  ;;  %v171_v61 = vld [vmem:[%s5170_s1 + $0x410] sm:$0xff]  ;;  %v389_v2 = vld [vmem:[%s5170_s1 + $0xae0] sm:$0xff] }
 0x112   :  { %1479 = vmatpush2.msra.mxu0 %v262_v0  ;;  %1551 = vmatprep.subr.mxu1 %v480_v5  ;;  %v165_v0 = vld [vmem:[%s5170_s1 + $0x3e0] sm:$0xff]  ;;  %v388_v5 = vld [vmem:[%s5170_s1 + $0xad8] sm:$0xff] }
 0x113   :  { %1480 = vmatprep.subr.mxu0 %v256_v3  ;;  %1552 = vmatpush2.msra.mxu1 %v479_v7  ;;  %v164_v3 = vld [vmem:[%s5170_s1 + $0x3d8] sm:$0xff]  ;;  %v382_v7 = vld [vmem:[%s5170_s1 + $0xaa8] sm:$0xff] }
 0x114   :  { %1481 = vmatpush2.msra.mxu0 %v255_v6  ;;  %1553 = vmatprep.subr.mxu1 %v473_v12  ;;  %v158_v6 = vld [vmem:[%s5170_s1 + $0x3a8] sm:$0xff]  ;;  %v381_v12 = vld [vmem:[%s5170_s1 + $0xaa0] sm:$0xff] }
 0x115   :  { %1482 = vmatprep.subr.mxu0 %v249_v11  ;;  %1554 = vmatpush2.msra.mxu1 %v472_v14  ;;  %v157_v11 = vld [vmem:[%s5170_s1 + $0x3a0] sm:$0xff]  ;;  %v795_v14 = vld [vmem:[%s5170_s1 + $0x1790] sm:$0xff] }
 0x116   :  { %1483 = vmatpush2.msra.mxu0 %v248_v13  ;;  %1555 = vmatprep.subr.mxu1 %v466_v16  ;;  %v599_v13 = vld [vmem:[%s5170_s1 + $0x1170] sm:$0xff]  ;;  %v794_v16 = vld [vmem:[%s5170_s1 + $0x1788] sm:$0xff] }
 0x117   :  { %1484 = vmatprep.subr.mxu0 %v242_v15  ;;  %1556 = vmatpush2.msra.mxu1 %v465_v18  ;;  %v598_v15 = vld [vmem:[%s5170_s1 + $0x1168] sm:$0xff]  ;;  %v788_v18 = vld [vmem:[%s5170_s1 + $0x1758] sm:$0xff] }
 0x118   :  { %1485 = vmatpush2.msra.mxu0 %v241_v17  ;;  %1557 = vmatprep.subr.mxu1 %v459_v20  ;;  %v592_v17 = vld [vmem:[%s5170_s1 + $0x1138] sm:$0xff]  ;;  %v787_v20 = vld [vmem:[%s5170_s1 + $0x1750] sm:$0xff] }
 0x119   :  { %1486 = vmatprep.subr.mxu0 %v235_v19  ;;  %1558 = vmatpush2.msra.mxu1 %v458_v23  ;;  %v591_v19 = vld [vmem:[%s5170_s1 + $0x1130] sm:$0xff]  ;;  %v781_v23 = vld [vmem:[%s5170_s1 + $0x1720] sm:$0xff] }
 0x11a   :  { %1487 = vmatpush2.msra.mxu0 %v234_v22  ;;  %1559 = vmatprep.subr.mxu1 %v452_v52  ;;  %v585_v22 = vld [vmem:[%s5170_s1 + $0x1100] sm:$0xff]  ;;  %v780_v52 = vld [vmem:[%s5170_s1 + $0x1718] sm:$0xff] }
 0x11b   :  { %1488 = vmatprep.subr.mxu0 %v228_v24  ;;  %1560 = vmatpush2.msra.mxu1 %v451_v25  ;;  %v584_v24 = vld [vmem:[%s5170_s1 + $0x10f8] sm:$0xff]  ;;  %v774_v25 = vld [vmem:[%s5170_s1 + $0x16e8] sm:$0xff] }
 0x11c   :  { %1489 = vmatpush2.msra.mxu0 %v227_v50  ;;  %1561 = vmatprep.subr.mxu1 %v445_v27  ;;  %v578_v50 = vld [vmem:[%s5170_s1 + $0x10c8] sm:$0xff]  ;;  %v773_v27 = vld [vmem:[%s5170_s1 + $0x16e0] sm:$0xff] }
 0x11d   :  { %1490 = vmatprep.subr.mxu0 %v221_v26  ;;  %1562 = vmatpush2.msra.mxu1 %v444_v29  ;;  %v577_v26 = vld [vmem:[%s5170_s1 + $0x10c0] sm:$0xff]  ;;  %v767_v29 = vld [vmem:[%s5170_s1 + $0x16b0] sm:$0xff] }
 0x11e   :  { %1491 = vmatpush2.msra.mxu0 %v220_v28  ;;  %1563 = vmatprep.subr.mxu1 %v438_v33  ;;  %v571_v28 = vld [vmem:[%s5170_s1 + $0x1090] sm:$0xff]  ;;  %v766_v33 = vld [vmem:[%s5170_s1 + $0x16a8] sm:$0xff] }
 0x11f   :  { %1492 = vmatprep.subr.mxu0 %v214_v32  ;;  %1564 = vmatpush2.msra.mxu1 %v437_v35  ;;  %v570_v32 = vld [vmem:[%s5170_s1 + $0x1088] sm:$0xff]  ;;  %v760_v35 = vld [vmem:[%s5170_s1 + $0x1678] sm:$0xff] }
 0x120   :  { %1493 = vmatpush2.msra.mxu0 %v213_v34  ;;  %1565 = vmatprep.subr.mxu1 %v431_v37  ;;  %v564_v34 = vld [vmem:[%s5170_s1 + $0x1058] sm:$0xff]  ;;  %v759_v37 = vld [vmem:[%s5170_s1 + $0x1670] sm:$0xff] }
 0x121   :  { %1494 = vmatprep.subr.mxu0 %v207_v36  ;;  %1566 = vmatpush2.msra.mxu1 %v430_v39  ;;  %v563_v36 = vld [vmem:[%s5170_s1 + $0x1050] sm:$0xff]  ;;  %v753_v39 = vld [vmem:[%s5170_s1 + $0x1640] sm:$0xff] }
 0x122   :  { %1495 = vmatpush2.msra.mxu0 %v206_v38  ;;  %1567 = vmatprep.subr.mxu1 %v424_v42  ;;  %v557_v38 = vld [vmem:[%s5170_s1 + $0x1020] sm:$0xff]  ;;  %v752_v42 = vld [vmem:[%s5170_s1 + $0x1638] sm:$0xff] }
 0x123   :  { %1496 = vmatprep.subr.mxu0 %v200_v40  ;;  %1568 = vmatpush2.msra.mxu1 %v423_v44  ;;  %v556_v40 = vld [vmem:[%s5170_s1 + $0x1018] sm:$0xff]  ;;  %v746_v44 = vld [vmem:[%s5170_s1 + $0x1608] sm:$0xff] }
 0x124   :  { %1497 = vmatpush2.msra.mxu0 %v199_v43  ;;  %1569 = vmatprep.subr.mxu1 %v417_v46  ;;  %v550_v43 = vld [vmem:[%s5170_s1 + $0xfe8] sm:$0xff]  ;;  %v745_v46 = vld [vmem:[%s5170_s1 + $0x1600] sm:$0xff] }
 0x125   :  { %1498 = vmatprep.subr.mxu0 %v193_v45  ;;  %1570 = vmatpush2.msra.mxu1 %v416_v48  ;;  %v549_v45 = vld [vmem:[%s5170_s1 + $0xfe0] sm:$0xff]  ;;  %v739_v48 = vld [vmem:[%s5170_s1 + $0x15d0] sm:$0xff] }
 0x126   :  { %1499 = vmatpush2.msra.mxu0 %v192_v47  ;;  %1571 = vmatprep.subr.mxu1 %v410_v51  ;;  %v543_v47 = vld [vmem:[%s5170_s1 + $0xfb0] sm:$0xff]  ;;  %v738_v51 = vld [vmem:[%s5170_s1 + $0x15c8] sm:$0xff] }
 0x127   :  { %1500 = vmatprep.subr.mxu0 %v186_v49  ;;  %1572 = vmatpush2.msra.mxu1 %v409_v54  ;;  %v542_v49 = vld [vmem:[%s5170_s1 + $0xfa8] sm:$0xff]  ;;  %v732_v54 = vld [vmem:[%s5170_s1 + $0x1598] sm:$0xff] }
 0x128   :  { %1501 = vmatpush2.msra.mxu0 %v185_v53  ;;  %1573 = vmatprep.subr.mxu1 %v403_v56  ;;  %v536_v53 = vld [vmem:[%s5170_s1 + $0xf78] sm:$0xff]  ;;  %v731_v56 = vld [vmem:[%s5170_s1 + $0x1590] sm:$0xff] }
 0x129   :  { %1502 = vmatprep.subr.mxu0 %v179_v55  ;;  %1574 = vmatpush2.msra.mxu1 %v402_v58  ;;  %v535_v55 = vld [vmem:[%s5170_s1 + $0xf70] sm:$0xff]  ;;  %v725_v58 = vld [vmem:[%s5170_s1 + $0x1560] sm:$0xff] }
 0x12a   :  { %1503 = vmatpush2.msra.mxu0 %v178_v57  ;;  %1575 = vmatprep.subr.mxu1 %v396_v60  ;;  %v529_v57 = vld [vmem:[%s5170_s1 + $0xf40] sm:$0xff]  ;;  %v724_v60 = vld [vmem:[%s5170_s1 + $0x1558] sm:$0xff] }
 0x12b   :  { %1504 = vmatprep.subr.mxu0 %v172_v59  ;;  %1576 = vmatpush2.msra.mxu1 %v395_v63  ;;  %v528_v59 = vld [vmem:[%s5170_s1 + $0xf38] sm:$0xff]  ;;  %v718_v63 = vld [vmem:[%s5170_s1 + $0x1528] sm:$0xff] }
 0x12c   :  { %1505 = vmatpush2.msra.mxu0 %v171_v61  ;;  %1577 = vmatprep.subr.mxu1 %v389_v2  ;;  %v522_v61 = vld [vmem:[%s5170_s1 + $0xf08] sm:$0xff]  ;;  %v717_v2 = vld [vmem:[%s5170_s1 + $0x1520] sm:$0xff] }
 0x12d   :  { %1506 = vmatprep.subr.mxu0 %v165_v0  ;;  %1578 = vmatpush2.msra.mxu1 %v388_v5  ;;  %v521_v0 = vld [vmem:[%s5170_s1 + $0xf00] sm:$0xff]  ;;  %v264_v5 = vld [vmem:[%s5170_s1 + $0x6f8] sm:$0xff] }
 0x12e   :  { %1507 = vmatpush2.msra.mxu0 %v164_v3  ;;  %1579 = vmatprep.subr.mxu1 %v382_v7  ;;  %v515_v3 = vld [vmem:[%s5170_s1 + $0xed0] sm:$0xff]  ;;  %v152_v7 = vld [vmem:[%s5170_s1 + $0x378] sm:$0xff] }
 0x12f   :  { %1508 = vmatprep.subr.mxu0 %v158_v6  ;;  %1510 = vmatprep.mubr.f32.mxu0 %v3055_v8  ;;  %v514_v6 = vld [vmem:[%s5170_s1 + $0xec8] sm:$0xff] }
 0x130   :  { %1509 = vmatpush2.msra.mxu0 %v157_v11  ;;  %1580 = vmatpush2.msra.mxu1 %v381_v12  ;;  %v508_v11 = vld [vmem:[%s5170_s1 + $0xe98] sm:$0xff]  ;;  %v257_v12 = vld [vmem:[%s5170_s1 + $0x6c0] sm:$0xff] }
 0x131   :  { %1581 = vmatprep.mubr.f32.mxu1 %v3062_v10  ;;  %1511 = vmatmul.mubr.f32.vlgmr.msra.gmra.mxu0 %v3024_v62 }
 0x132   :  { %1582 = vmatmul.mubr.f32.vlgmr.msra.gmra.mxu1 %v3033_v1  ;;  %1588 = vmatprep.subr.mxu0 %v599_v13  ;;  %v507_v13 = vld [vmem:[%s5170_s1 + $0xe90] sm:$0xff] }
 0x133   :  { %1667 = vmatprep.subr.mxu1 %v795_v14  ;;  %1589 = vmatpush1.msra.mxu0 %v598_v15  ;;  %v145_v14 = vld [vmem:[%s5170_s1 + $0x340] sm:$0xff] }
 0x134   :  { %1668 = vmatpush1.msra.mxu1 %v794_v16  ;;  %1590 = vmatprep.subr.mxu0 %v592_v17  ;;  %v501_v15 = vld [vmem:[%s5170_s1 + $0xe60] sm:$0xff]  ;;  %v250_v16 = vld [vmem:[%s5170_s1 + $0x688] sm:$0xff]  ;;  %v500_v17 = vld [vmem:[%s5170_s1 + $0xe58] sm:$0xff] }
 0x135   :  { %1669 = vmatprep.subr.mxu1 %v788_v18  ;;  %1591 = vmatpush1.msra.mxu0 %v591_v19  ;;  %v138_v18 = vld [vmem:[%s5170_s1 + $0x308] sm:$0xff] }
 0x136   :  { %1670 = vmatpush1.msra.mxu1 %v787_v20  ;;  %1592 = vmatprep.subr.mxu0 %v585_v22  ;;  %v494_v19 = vld [vmem:[%s5170_s1 + $0xe28] sm:$0xff]  ;;  %v243_v20 = vld [vmem:[%s5170_s1 + $0x650] sm:$0xff]  ;;  %v493_v22 = vld [vmem:[%s5170_s1 + $0xe20] sm:$0xff] }
 0x137   :  { %1671 = vmatprep.subr.mxu1 %v781_v23  ;;  %1593 = vmatpush1.msra.mxu0 %v584_v24  ;;  %v131_v23 = vld [vmem:[%s5170_s1 + $0x2d0] sm:$0xff] }
 0x138   :  { %1672 = vmatpush1.msra.mxu1 %v780_v52  ;;  %1594 = vmatprep.subr.mxu0 %v578_v50  ;;  %v711_v24 = vld [vmem:[%s5170_s1 + $0x14f0] sm:$0xff]  ;;  %v236_v52 = vld [vmem:[%s5170_s1 + $0x618] sm:$0xff]  ;;  %v710_v50 = vld [vmem:[%s5170_s1 + $0x14e8] sm:$0xff] }
 0x139   :  { %1673 = vmatprep.subr.mxu1 %v774_v25  ;;  %1595 = vmatpush1.msra.mxu0 %v577_v26  ;;  %v124_v25 = vld [vmem:[%s5170_s1 + $0x298] sm:$0xff] }
 0x13a   :  { %1674 = vmatpush1.msra.mxu1 %v773_v27  ;;  %1596 = vmatprep.subr.mxu0 %v571_v28  ;;  %v704_v26 = vld [vmem:[%s5170_s1 + $0x14b8] sm:$0xff]  ;;  %v229_v27 = vld [vmem:[%s5170_s1 + $0x5e0] sm:$0xff]  ;;  %v703_v28 = vld [vmem:[%s5170_s1 + $0x14b0] sm:$0xff] }
 0x13b   :  { %1675 = vmatprep.subr.mxu1 %v767_v29  ;;  %1597 = vmatpush1.msra.mxu0 %v570_v32  ;;  %v117_v29 = vld [vmem:[%s5170_s1 + $0x260] sm:$0xff] }
 0x13c   :  { %1676 = vmatpush1.msra.mxu1 %v766_v33  ;;  %1598 = vmatprep.subr.mxu0 %v564_v34  ;;  %v697_v32 = vld [vmem:[%s5170_s1 + $0x1480] sm:$0xff]  ;;  %v222_v33 = vld [vmem:[%s5170_s1 + $0x5a8] sm:$0xff]  ;;  %v696_v34 = vld [vmem:[%s5170_s1 + $0x1478] sm:$0xff] }
 0x13d   :  { %1677 = vmatprep.subr.mxu1 %v760_v35  ;;  %1599 = vmatpush1.msra.mxu0 %v563_v36  ;;  %v110_v35 = vld [vmem:[%s5170_s1 + $0x228] sm:$0xff] }
 0x13e   :  { %1678 = vmatpush1.msra.mxu1 %v759_v37  ;;  %1600 = vmatprep.subr.mxu0 %v557_v38  ;;  %v690_v36 = vld [vmem:[%s5170_s1 + $0x1448] sm:$0xff]  ;;  %v215_v37 = vld [vmem:[%s5170_s1 + $0x570] sm:$0xff]  ;;  %v689_v38 = vld [vmem:[%s5170_s1 + $0x1440] sm:$0xff] }
 0x13f   :  { %1679 = vmatprep.subr.mxu1 %v753_v39  ;;  %1601 = vmatpush1.msra.mxu0 %v556_v40  ;;  %v103_v39 = vld [vmem:[%s5170_s1 + $0x1f0] sm:$0xff] }
 0x140   :  { %1680 = vmatpush1.msra.mxu1 %v752_v42  ;;  %1602 = vmatprep.subr.mxu0 %v550_v43  ;;  %v683_v40 = vld [vmem:[%s5170_s1 + $0x1410] sm:$0xff]  ;;  %v208_v42 = vld [vmem:[%s5170_s1 + $0x538] sm:$0xff]  ;;  %v682_v43 = vld [vmem:[%s5170_s1 + $0x1408] sm:$0xff] }
 0x141   :  { %1681 = vmatprep.subr.mxu1 %v746_v44  ;;  %1603 = vmatpush1.msra.mxu0 %v549_v45  ;;  %v96_v44 = vld [vmem:[%s5170_s1 + $0x1b8] sm:$0xff] }
 0x142   :  { %1682 = vmatpush1.msra.mxu1 %v745_v46  ;;  %1604 = vmatprep.subr.mxu0 %v543_v47  ;;  %v676_v45 = vld [vmem:[%s5170_s1 + $0x13d8] sm:$0xff]  ;;  %v201_v46 = vld [vmem:[%s5170_s1 + $0x500] sm:$0xff]  ;;  %v675_v47 = vld [vmem:[%s5170_s1 + $0x13d0] sm:$0xff] }
 0x143   :  { %1683 = vmatprep.subr.mxu1 %v739_v48  ;;  %1605 = vmatpush1.msra.mxu0 %v542_v49  ;;  %v89_v48 = vld [vmem:[%s5170_s1 + $0x180] sm:$0xff] }
 0x144   :  { %1684 = vmatpush1.msra.mxu1 %v738_v51  ;;  %1606 = vmatprep.subr.mxu0 %v536_v53  ;;  %v669_v49 = vld [vmem:[%s5170_s1 + $0x13a0] sm:$0xff]  ;;  %v194_v51 = vld [vmem:[%s5170_s1 + $0x4c8] sm:$0xff]  ;;  %v668_v53 = vld [vmem:[%s5170_s1 + $0x1398] sm:$0xff] }
 0x145   :  { %1685 = vmatprep.subr.mxu1 %v732_v54  ;;  %1607 = vmatpush1.msra.mxu0 %v535_v55  ;;  %v82_v54 = vld [vmem:[%s5170_s1 + $0x148] sm:$0xff] }
 0x146   :  { %1686 = vmatpush1.msra.mxu1 %v731_v56  ;;  %1608 = vmatprep.subr.mxu0 %v529_v57  ;;  %v662_v55 = vld [vmem:[%s5170_s1 + $0x1368] sm:$0xff]  ;;  %v187_v56 = vld [vmem:[%s5170_s1 + $0x490] sm:$0xff]  ;;  %v661_v57 = vld [vmem:[%s5170_s1 + $0x1360] sm:$0xff] }
 0x147   :  { %1687 = vmatprep.subr.mxu1 %v725_v58  ;;  %1609 = vmatpush1.msra.mxu0 %v528_v59  ;;  %v75_v58 = vld [vmem:[%s5170_s1 + $0x110] sm:$0xff] }
 0x148   :  { %1688 = vmatpush1.msra.mxu1 %v724_v60  ;;  %1610 = vmatprep.subr.mxu0 %v522_v61  ;;  %v655_v59 = vld [vmem:[%s5170_s1 + $0x1330] sm:$0xff]  ;;  %v180_v60 = vld [vmem:[%s5170_s1 + $0x458] sm:$0xff]  ;;  %v4701_v61 = vsub.s32 1, %v2967_v41 }
 0x149   :  { %1689 = vmatprep.subr.mxu1 %v718_v63  ;;  %1611 = vmatpush1.msra.mxu0 %v521_v0  ;;  %v654_v63 = vld [vmem:[%s5170_s1 + $0x1328] sm:$0xff]  ;;  %v68_v0 = vld [vmem:[%s5170_s1 + $0xd8] sm:$0xff] }
 0x14a   :  { %1690 = vmatpush1.msra.mxu1 %v717_v2  ;;  %1723 = vmatprep.mubr.f32.mxu1 %v2615_v9  ;;  %v944_v2 = vpop.f32.mrf.mxu0 }
 0x14b   :  { %1612 = vmatprep.subr.mxu0 %v515_v3  ;;  %2410 = vmatmul.mubr.msk.f32.vlgmr.msra.gmra.mxu1 %vm875_vm0, %v3226_v4  ;;  %v648_v3 = vld [vmem:[%s5170_s1 + $0x12f8] sm:$0xff] }
 0x14c   :  { %2420 = vmatprep.subr.mxu1 %v264_v5  ;;  %1613 = vmatpush1.msra.mxu0 %v514_v6  ;;  %v173_v5 = vld [vmem:[%s5170_s1 + $0x420] sm:$0xff]  ;;  %v4716_v6 = vsub.s32 0, %v2967_v41 }
 0x14d   :  { %2421 = vmatpush3.msra.mxu1 %v152_v7  ;;  %1614 = vmatprep.subr.mxu0 %v508_v11  ;;  %v647_v7 = vld [vmem:[%s5170_s1 + $0x12f0] sm:$0xff]  ;;  %v61_v11 = vld [vmem:[%s5170_s1 + $0xa0] sm:$0xff] }
 0x14e   :  { %2422 = vmatprep.subr.mxu1 %v257_v12  ;;  %1615 = vmatpush1.msra.mxu0 %v507_v13  ;;  %v4727_v12 = vld [vmem:[%s5171_s2] sm:$0x7f] }
 0x14f   :  { %2423 = vmatpush3.msra.mxu1 %v145_v14  ;;  %1616 = vmatprep.subr.mxu0 %v501_v15  ;;  %v641_v13 = vld [vmem:[%s5170_s1 + $0x12c0] sm:$0xff]  ;;  %v166_v14 = vld [vmem:[%s5170_s1 + $0x3e8] sm:$0xff]  ;;  %v806_v15 = vrot.slane %v4727_v12, %v4701_v61 }
 0x150   :  { %2424 = vmatprep.subr.mxu1 %v250_v16  ;;  %1617 = vmatpush1.msra.mxu0 %v500_v17  ;;  %v640_v16 = vld [vmem:[%s5170_s1 + $0x12b8] sm:$0xff]  ;;  %v54_v17 = vld [vmem:[%s5170_s1 + $0x68] sm:$0xff] }
 0x151   :  { %2425 = vmatpush3.msra.mxu1 %v138_v18  ;;  %1618 = vmatprep.subr.mxu0 %v494_v19  ;;  %v946_v18 = vpop.f32.mrf.mxu0  ;;  %v634_v19 = vld [vmem:[%s5170_s1 + $0x1288] sm:$0xff] }
 0x152   :  { %2426 = vmatprep.subr.mxu1 %v243_v20  ;;  %1619 = vmatpush1.msra.mxu0 %v493_v22  ;;  %v159_v20 = vld [vmem:[%s5170_s1 + $0x3b0] sm:$0xff]  ;;  %v802_v22 = vrot.slane %v4727_v12, %v4716_v6 }
 0x153   :  { %2427 = vmatpush3.msra.mxu1 %v131_v23  ;;  %1620 = vmatprep.subr.mxu0 %v711_v24  ;;  %v633_v23 = vld [vmem:[%s5170_s1 + $0x1280] sm:$0xff]  ;;  %v47_v24 = vld [vmem:[%s5170_s1 + $0x30] sm:$0xff] }
 0x154   :  { %2428 = vmatprep.subr.mxu1 %v236_v52  ;;  %1621 = vmatpush2.msra.mxu0 %v710_v50  ;;  %v1015_v52 = vpop.f32.mrf.mxu1  ;;  %v1086_v50 = vpop.f32.mrf.mxu0 }
 0x155   :  { %2429 = vmatpush3.msra.mxu1 %v124_v25  ;;  %1622 = vmatprep.subr.mxu0 %v704_v26  ;;  %v627_v25 = vld [vmem:[%s5170_s1 + $0x1250] sm:$0xff]  ;;  %v947_v26 = vadd.f32 %v946_v18, %v806_v15 }
 0x156   :  { %2430 = vmatprep.subr.mxu1 %v229_v27  ;;  %1623 = vmatpush2.msra.mxu0 %v703_v28  ;;  %v488_v27 = vld [vmem:[%s5170_s1 + $0xdf8] sm:$0xff]  ;;  %v626_v28 = vld [vmem:[%s5170_s1 + $0x1248] sm:$0xff]  ;;  %v691_v15 = vld [vmem:[%s5170_s1 + $0x1450] sm:$0xff] }
 0x157   :  { %2431 = vmatpush3.msra.mxu1 %v117_v29  ;;  %1624 = vmatprep.subr.mxu0 %v697_v32  ;;  %v376_v29 = vld [vmem:[%s5170_s1 + $0xa78] sm:$0xff]  ;;  %v945_v32 = vadd.f32 %v944_v2, %v802_v22  ;;  %v593_v2 = vld [vmem:[%s5170_s1 + $0x1140] sm:$0xff]  ;;  %v579_v18 = vld [vmem:[%s5170_s1 + $0x10d0] sm:$0xff] }
 0x158   :  { %2432 = vmatprep.subr.mxu1 %v222_v33  ;;  %1625 = vmatpush2.msra.mxu0 %v696_v34  ;;  %v620_v33 = vld [vmem:[%s5170_s1 + $0x1218] sm:$0xff]  ;;  %v481_v34 = vld [vmem:[%s5170_s1 + $0xdc0] sm:$0xff] }
 0x159   :  { %2433 = vmatpush3.msra.mxu1 %v110_v35  ;;  %1626 = vmatprep.subr.mxu0 %v690_v36  ;;  %v1017_v35 = vpop.f32.mrf.mxu1  ;;  %v1088_v36 = vpop.f32.mrf.mxu0  ;;  %v684_v22 = vld [vmem:[%s5170_s1 + $0x1418] sm:$0xff] }
 0x15a   :  { %2434 = vmatprep.subr.mxu1 %v215_v37  ;;  %1627 = vmatpush2.msra.mxu0 %v689_v38  ;;  %v619_v37 = vld [vmem:[%s5170_s1 + $0x1210] sm:$0xff]  ;;  %v1018_v38 = vadd.f32 %v1017_v35, %v947_v26  ;;  %v313_v26 = vld [vmem:[%s5170_s1 + $0x880] sm:$0xff] }
 0x15b   :  { %2435 = vmatpush3.msra.mxu1 %v103_v39  ;;  %1628 = vmatprep.subr.mxu0 %v683_v40  ;;  %v613_v39 = vld [vmem:[%s5170_s1 + $0x11e0] sm:$0xff]  ;;  %v1157_v40 = vpop.f32.mrf.mxu1 }
 0x15c   :  { %2436 = vmatprep.subr.mxu1 %v208_v42  ;;  %1629 = vmatpush2.msra.mxu0 %v682_v43  ;;  %v612_v42 = vld [vmem:[%s5170_s1 + $0x11d8] sm:$0xff]  ;;  %v362_v43 = vld [vmem:[%s5170_s1 + $0xa08] sm:$0xff] }
 0x15d   :  { %2437 = vmatpush3.msra.mxu1 %v96_v44  ;;  %1630 = vmatprep.subr.mxu0 %v676_v45  ;;  %v1016_v44 = vadd.f32 %v1015_v52, %v945_v32  ;;  %v1089_v45 = vadd.f32 %v1088_v36, %v1018_v38  ;;  %v670_v32 = vld [vmem:[%s5170_s1 + $0x13a8] sm:$0xff]  ;;  %v411_v36 = vld [vmem:[%s5170_s1 + $0xb90] sm:$0xff] }
 0x15e   :  { %2438 = vmatprep.subr.mxu1 %v201_v46  ;;  %1631 = vmatpush2.msra.mxu0 %v675_v47  ;;  %v606_v46 = vld [vmem:[%s5170_s1 + $0x11a8] sm:$0xff]  ;;  %v467_v47 = vld [vmem:[%s5170_s1 + $0xd50] sm:$0xff] }
 0x15f   :  { %2439 = vmatpush3.msra.mxu1 %v89_v48  ;;  %1632 = vmatprep.subr.mxu0 %v669_v49  ;;  %v605_v48 = vld [vmem:[%s5170_s1 + $0x11a0] sm:$0xff]  ;;  %v1087_v49 = vadd.f32 %v1086_v50, %v1016_v44  ;;  %v551_v38 = vld [vmem:[%s5170_s1 + $0xff0] sm:$0xff] }
 0x160   :  { %2440 = vmatprep.subr.mxu1 %v194_v51  ;;  %1633 = vmatpush2.msra.mxu0 %v668_v53  ;;  %v355_v51 = vld [vmem:[%s5170_s1 + $0x9d0] sm:$0xff]  ;;  %v1159_v53 = vpop.f32.mrf.mxu1  ;;  %v425_v50 = vld [vmem:[%s5170_s1 + $0xc00] sm:$0xff] }
 0x161   :  { %2441 = vmatpush3.msra.mxu1 %v82_v54  ;;  %1634 = vmatprep.subr.mxu0 %v662_v55  ;;  %v460_v54 = vld [vmem:[%s5170_s1 + $0xd18] sm:$0xff] }
 0x162   :  { %2442 = vmatprep.subr.mxu1 %v187_v56  ;;  %1635 = vmatpush2.msra.mxu0 %v661_v57  ;;  %v712_v55 = vld [vmem:[%s5170_s1 + $0x14f8] sm:$0xff]  ;;  %v4813_v56 = vadd.f32 %v1159_v53, %v1089_v45  ;;  %v397_v45 = vld [vmem:[%s5170_s1 + $0xb20] sm:$0xff]  ;;  %v642_v53 = vld [vmem:[%s5170_s1 + $0x12c8] sm:$0xff] }
 0x163   :  { %2443 = vmatpush3.msra.mxu1 %v75_v58  ;;  %1636 = vmatprep.subr.mxu0 %v655_v59  ;;  %v348_v57 = vld [vmem:[%s5170_s1 + $0x998] sm:$0xff]  ;;  %v453_v59 = vld [vmem:[%s5170_s1 + $0xce0] sm:$0xff] }
 0x164   :  { %2444 = vmatprep.subr.mxu1 %v180_v60  ;;  %1637 = vmatpush2.msra.mxu0 %v654_v63  ;;  %v600_v58 = vld [vmem:[%s5170_s1 + $0x1178] sm:$0xff]  ;;  %v705_v60 = vld [vmem:[%s5170_s1 + $0x14c0] sm:$0xff]  ;;  %v4829_v63 = vadd.f32 %v1157_v40, %v1087_v49 }
 0x165   :  { %2445 = vmatpush3.msra.mxu1 %v68_v0  ;;  %1638 = vmatprep.subr.mxu0 %v648_v3  ;;  %v341_v0 = vld [vmem:[%s5170_s1 + $0x960] sm:$0xff]  ;;  %v446_v3 = vld [vmem:[%s5170_s1 + $0xca8] sm:$0xff]  ;;  %v656_v40 = vld [vmem:[%s5170_s1 + $0x1338] sm:$0xff] }
 0x166   :  { %2446 = vmatprep.subr.mxu1 %v173_v5  ;;  %1639 = vmatpush2.msra.mxu0 %v647_v7  ;;  %v698_v5 = vld [vmem:[%s5170_s1 + $0x1488] sm:$0xff]  ;;  %v2018_v7 = vsel %vm2010_vm1, %v4813_v56, 0.0 }
 0x167   :  { %2447 = vmatpush3.msra.mxu1 %v61_v11  ;;  %1640 = vmatprep.subr.mxu0 %v641_v13  ;;  %v334_v11 = vld [vmem:[%s5170_s1 + $0x928] sm:$0xff] }
 0x168   :  { %2448 = vmatprep.subr.mxu1 %v166_v14  ;;  %1641 = vmatpush2.msra.mxu0 %v640_v16  ;;  %v586_v13 = vld [vmem:[%s5170_s1 + $0x1108] sm:$0xff]  ;;  %v439_v14 = vld [vmem:[%s5170_s1 + $0xc70] sm:$0xff]  ;;  %v2011_v16 = vsel %vm2010_vm1, %v4829_v63, 0.0 }
 0x169   :  { %2449 = vmatpush3.msra.mxu1 %v54_v17  ;;  %1642 = vmatprep.subr.mxu0 %v634_v19  ;;  %v327_v17 = vld [vmem:[%s5170_s1 + $0x8f0] sm:$0xff]  ;;  %v2019_v19 = vrot.slane %v2018_v7, 4  ;;  %v2012_v52 = vrot.slane %v2011_v16, 4 }
 0x16a   :  { %2450 = vmatprep.subr.mxu1 %v159_v20  ;;  %1643 = vmatpush2.msra.mxu0 %v633_v23  ;;  %v432_v20 = vld [vmem:[%s5170_s1 + $0xc38] sm:$0xff] }
 0x16b   :  { %2451 = vmatpush3.msra.mxu1 %v47_v24  ;;  %1794 = vmatprep.mubr.f32.mxu1 %v3055_v8  ;;  %v369_v8 = vld [vmem:[%s5170_s1 + $0xa40] sm:$0xff]  ;;  %v320_v23 = vld [vmem:[%s5170_s1 + $0x8b8] sm:$0xff]  ;;  %v2013_v35 = vadd.f32 %v2012_v52, %v2011_v16 }
 0x16c   :  { %1644 = vmatprep.subr.mxu0 %v627_v25  ;;  %1795 = vmatmul.mubr.f32.vlgmr.msra.gmra.mxu1 %v3024_v62  ;;  %v474_v62 = vld [vmem:[%s5170_s1 + $0xd88] sm:$0xff]  ;;  %v572_v24 = vld [vmem:[%s5170_s1 + $0x1098] sm:$0xff]  ;;  %v677_v25 = vld [vmem:[%s5170_s1 + $0x13e0] sm:$0xff] }
 0x16d   :  { %2455 = vmatprep.subr.mxu1 %v488_v27  ;;  %1645 = vmatpush2.msra.mxu0 %v626_v28  ;;  %v565_v27 = vld [vmem:[%s5170_s1 + $0x1060] sm:$0xff]  ;;  %v2020_v28 = vadd.f32 %v2019_v19, %v2018_v7  ;;  %v2014_v44 = vrot.slane %v2013_v35, 2  ;;  %v516_v7 = vld [vmem:[%s5170_s1 + $0xed8] sm:$0xff]  ;;  %v607_v19 = vld [vmem:[%s5170_s1 + $0x11b0] sm:$0xff] }
 0x16e   :  { %2456 = vmatpush3.msra.mxu1 %v376_v29  ;;  %1646 = vmatprep.subr.mxu0 %v620_v33  ;;  %v418_v29 = vld [vmem:[%s5170_s1 + $0xbc8] sm:$0xff]  ;;  %v768_v52 = vld [vmem:[%s5170_s1 + $0x16b8] sm:$0xff] }
 0x16f   :  { %2457 = vmatprep.subr.mxu1 %v481_v34  ;;  %1647 = vmatpush2.msra.mxu0 %v619_v37  ;;  %v306_v33 = vld [vmem:[%s5170_s1 + $0x848] sm:$0xff]  ;;  %v663_v37 = vld [vmem:[%s5170_s1 + $0x1370] sm:$0xff] }
 0x170   :  { %2458 = vmatpush3.msra.mxu1 %v369_v8  ;;  %1648 = vmatprep.subr.mxu0 %v613_v39  ;;  %v558_v34 = vld [vmem:[%s5170_s1 + $0x1028] sm:$0xff]  ;;  %v299_v8 = vld [vmem:[%s5170_s1 + $0x810] sm:$0xff]  ;;  %v2021_v39 = vrot.slane %v2020_v28, 2 }
 0x171   :  { %2459 = vmatprep.subr.mxu1 %v474_v62  ;;  %1649 = vmatpush2.msra.mxu0 %v612_v42  ;;  %v404_v62 = vld [vmem:[%s5170_s1 + $0xb58] sm:$0xff] }
 0x172   :  { %2460 = vmatpush3.msra.mxu1 %v362_v43  ;;  %1650 = vmatprep.subr.mxu0 %v606_v46  ;;  %v292_v42 = vld [vmem:[%s5170_s1 + $0x7d8] sm:$0xff]  ;;  %v649_v46 = vld [vmem:[%s5170_s1 + $0x1300] sm:$0xff]  ;;  %v2022_v49 = vadd.f32 %v2021_v39, %v2020_v28  ;;  %v1228_v39 = vpop.f32.mrf.mxu1 }
 0x173   :  { %2461 = vmatprep.subr.mxu1 %v467_v47  ;;  %1651 = vmatpush2.msra.mxu0 %v605_v48  ;;  %v544_v43 = vld [vmem:[%s5170_s1 + $0xfb8] sm:$0xff]  ;;  %v285_v47 = vld [vmem:[%s5170_s1 + $0x7a0] sm:$0xff] }
 0x174   :  { %1652 = vmatprep.mubr.f32.mxu0 %v3468_v31  ;;  %2462 = vmatpush3.msra.mxu1 %v355_v51  ;;  %v537_v48 = vld [vmem:[%s5170_s1 + $0xf80] sm:$0xff]  ;;  %v390_v51 = vld [vmem:[%s5170_s1 + $0xae8] sm:$0xff] }
 0x175   :  { %1653 = vmatmul.mubr.f32.vlgmr.msra.gmra.mxu0 %v3434_v21  ;;  %2463 = vmatprep.subr.mxu1 %v460_v54  ;;  %v278_v54 = vld [vmem:[%s5170_s1 + $0x768] sm:$0xff] }
 0x176   :  { %2490 = vmatprep.subr.mxu0 %v712_v55  ;;  %2464 = vmatpush3.msra.mxu1 %v348_v57  ;;  %v530_v55 = vld [vmem:[%s5170_s1 + $0xf48] sm:$0xff]  ;;  %v2015_v57 = vadd.f32 %v2014_v44, %v2013_v35 }
 0x177   :  { %2491 = vmatpush3.msra.mxu0 %v600_v58  ;;  %2465 = vmatprep.subr.mxu1 %v453_v59  ;;  %v383_v58 = vld [vmem:[%s5170_s1 + $0xab0] sm:$0xff] }
 0x178   :  { %2492 = vmatprep.subr.mxu0 %v705_v60  ;;  %2466 = vmatpush3.msra.mxu1 %v341_v0  ;;  %v635_v59 = vld [vmem:[%s5170_s1 + $0x1290] sm:$0xff]  ;;  %v2023_v0 = vrot.slane %v2022_v49, 1 }
 0x179   :  { %2493 = vmatpush3.msra.mxu0 %v593_v2  ;;  %2467 = vmatprep.subr.mxu1 %v446_v3  ;;  %v271_v60 = vld [vmem:[%s5170_s1 + $0x730] sm:$0xff]  ;;  %v628_v3 = vld [vmem:[%s5170_s1 + $0x1258] sm:$0xff] }
 0x17a   :  { %2494 = vmatprep.subr.mxu0 %v698_v5  ;;  %2468 = vmatpush3.msra.mxu1 %v334_v11  ;;  %v523_v2 = vld [vmem:[%s5170_s1 + $0xf10] sm:$0xff]  ;;  %v2016_v5 = vrot.slane %v2015_v57, 1  ;;  %v796_v11 = vld [vmem:[%s5170_s1 + $0x1798] sm:$0xff] }
 0x17b   :  { %2495 = vmatpush3.msra.mxu0 %v586_v13  ;;  %2469 = vmatprep.subr.mxu1 %v439_v14  ;;  %v621_v13 = vld [vmem:[%s5170_s1 + $0x1220] sm:$0xff]  ;;  %v2024_v14 = vadd.f32 %v2023_v0, %v2022_v49 }
 0x17c   :  { %2496 = vmatprep.subr.mxu0 %v691_v15  ;;  %2470 = vmatpush3.msra.mxu1 %v327_v17  ;;  %v789_v15 = vld [vmem:[%s5170_s1 + $0x1760] sm:$0xff]  ;;  %v2017_v16 = vadd.f32 %v2016_v5, %v2015_v57  ;;  %v502_v17 = vld [vmem:[%s5170_s1 + $0xe68] sm:$0xff] }
 0x17d   :  { %2497 = vmatpush3.msra.mxu0 %v579_v18  ;;  %2471 = vmatprep.subr.mxu1 %v432_v20  ;;  %v782_v18 = vld [vmem:[%s5170_s1 + $0x1728] sm:$0xff]  ;;  %v2063_v20 = vmul.f32 0.5, %v2024_v14 }
 0x17e   :  { %2498 = vmatprep.subr.mxu0 %v684_v22  ;;  %2472 = vmatpush3.msra.mxu1 %v320_v23  ;;  %v495_v22 = vld [vmem:[%s5170_s1 + $0xe30] sm:$0xff] }
 0x17f   :  { %2499 = vmatpush3.msra.mxu0 %v572_v24  ;;  %2473 = vmatprep.subr.mxu1 %v425_v50  ;;  %v775_v23 = vld [vmem:[%s5170_s1 + $0x16f0] sm:$0xff]  ;;  %v2062_v24 = vmul.f32 0.5, %v2017_v16  ;;  %v5008_v50 = vsub.f32 %v4813_v56, %v2063_v20  ;;  %v754_v56 = vld [vmem:[%s5170_s1 + $0x1648] sm:$0xff] }
 0x180   :  { %2500 = vmatprep.subr.mxu0 %v677_v25  ;;  %2474 = vmatpush3.msra.mxu1 %v313_v26  ;;  %v761_v25 = vld [vmem:[%s5170_s1 + $0x1680] sm:$0xff]  ;;  %v747_v26 = vld [vmem:[%s5170_s1 + $0x1610] sm:$0xff] }
 0x181   :  { %2501 = vmatpush3.msra.mxu0 %v565_v27  ;;  %2475 = vmatprep.subr.mxu1 %v418_v29  ;;  %v740_v27 = vld [vmem:[%s5170_s1 + $0x15d8] sm:$0xff]  ;;  %v733_v29 = vld [vmem:[%s5170_s1 + $0x15a0] sm:$0xff] }
 0x182   :  { %2502 = vmatprep.subr.mxu0 %v670_v32  ;;  %2476 = vmatpush3.msra.mxu1 %v306_v33 }
 0x183   :  { %2503 = vmatpush3.msra.mxu0 %v558_v34  ;;  %2477 = vmatprep.subr.mxu1 %v411_v36  ;;  %v726_v34 = vld [vmem:[%s5170_s1 + $0x1568] sm:$0xff]  ;;  %v5046_v36 = vsub.s32 2, %v2967_v41 }
 0x184   :  { %2504 = vmatprep.subr.mxu0 %v663_v37  ;;  %2478 = vmatpush3.msra.mxu1 %v299_v8  ;;  %v719_v37 = vld [vmem:[%s5170_s1 + $0x1530] sm:$0xff] }
 0x185   :  { %2505 = vmatpush3.msra.mxu0 %v551_v38  ;;  %2479 = vmatprep.subr.mxu1 %v404_v62  ;;  %v5053_v38 = vsub.s32 3, %v2967_v41 }
 0x186   :  { %2506 = vmatprep.subr.mxu0 %v656_v40  ;;  %2480 = vmatpush3.msra.mxu1 %v292_v42  ;;  %v810_v40 = vrot.slane %v4727_v12, %v5046_v36 }
 0x187   :  { %2507 = vmatpush3.msra.mxu0 %v544_v43  ;;  %2481 = vmatprep.subr.mxu1 %v397_v45  ;;  %v814_v44 = vrot.slane %v4727_v12, %v5053_v38  ;;  %v1230_v45 = vpop.f32.mrf.mxu1 }
 0x188   :  { %2508 = vmatprep.subr.mxu0 %v649_v46  ;;  %2482 = vmatpush3.msra.mxu1 %v285_v47  ;;  %v1229_v47 = vadd.f32 %v1228_v39, %v810_v40 }
 0x189   :  { %2509 = vmatpush3.msra.mxu0 %v537_v48  ;;  %2483 = vmatprep.subr.mxu1 %v390_v51 }
 0x18a   :  { %2510 = vmatprep.subr.mxu0 %v642_v53  ;;  %2484 = vmatpush3.msra.mxu1 %v278_v54 }
 0x18b   :  { %2511 = vmatpush3.msra.mxu0 %v530_v55  ;;  %2485 = vmatprep.subr.mxu1 %v383_v58 }
 0x18c   :  { %2512 = vmatprep.subr.mxu0 %v635_v59  ;;  %2486 = vmatpush3.msra.mxu1 %v271_v60 }
 0x18d   :  { %1864 = vmatprep.mubr.f32.mxu1 %v3062_v10  ;;  %2513 = vmatpush3.msra.mxu0 %v523_v2  ;;  %v509_v10 = vld [vmem:[%s5170_s1 + $0xea0] sm:$0xff] }
 0x18e   :  { %1865 = vmatmul.mubr.f32.vlgmr.msra.gmra.mxu1 %v3033_v1  ;;  %2514 = vmatprep.subr.mxu0 %v628_v3  ;;  %v614_v1 = vld [vmem:[%s5170_s1 + $0x11e8] sm:$0xff] }
 0x18f   :  { %2538 = vmatprep.subr.mxu1 %v2615_v9  ;;  %2515 = vmatpush3.msra.mxu0 %v516_v7 }
 0x190   :  { %2539 = vmatpush3.msra.mxu1 %v796_v11  ;;  %2516 = vmatprep.subr.mxu0 %v621_v13 }
 0x191   :  { %2540 = vmatprep.subr.mxu1 %v2615_v9  ;;  %2517 = vmatpush3.msra.mxu0 %v509_v10 }
 0x192   :  { %2541 = vmatpush3.msra.mxu1 %v789_v15  ;;  %2518 = vmatprep.subr.mxu0 %v614_v1 }
 0x193   :  { %2542 = vmatprep.subr.mxu1 %v2615_v9  ;;  %2519 = vmatpush3.msra.mxu0 %v502_v17 }
 0x194   :  { %2543 = vmatpush3.msra.mxu1 %v782_v18  ;;  %2520 = vmatprep.subr.mxu0 %v607_v19 }
 0x195   :  { %2544 = vmatprep.subr.mxu1 %v2615_v9  ;;  %2521 = vmatpush3.msra.mxu0 %v495_v22 }
 0x196   :  { %1934 = vmatprep.mubr.f32.mxu0 %v3468_v31  ;;  %2545 = vmatpush3.msra.mxu1 %v775_v23  ;;  %v5017_v31 = vsub.f32 %v4829_v63, %v2062_v24  ;;  %v1299_v42 = vpop.f32.mrf.mxu0 }
 0x197   :  { %1935 = vmatmul.mubr.f32.vlgmr.msra.gmra.mxu0 %v3434_v21  ;;  %2546 = vmatprep.subr.mxu1 %v2615_v9  ;;  %v2077_v21 = vmul.f32 %v5008_v50, %v5008_v50  ;;  %v1300_v51 = vadd.f32 %v1299_v42, %v1229_v47 }
 0x198   :  { %2562 = vmatprep.mubr.msk.f32.mxu1 %vm2616_vm2, %v2615_v9  ;;  %2547 = vmatpush3.msra.mxu1 %v768_v52  ;;  %v2076_v63 = vmul.f32 %v5017_v31, %v5017_v31  ;;  %v1301_v48 = vpop.f32.mrf.mxu0 }
 0x199   :  { %2548 = vmatprep.subr.mxu1 %v2615_v9  ;;  %v2090_v28 = vsel %vm2010_vm1, %v2077_v21, 0.0 }
 0x19a   :  { %2549 = vmatpush3.msra.mxu1 %v761_v25  ;;  %v2083_v32 = vsel %vm2010_vm1, %v2076_v63, 0.0  ;;  %v2091_v33 = vrot.slane %v2090_v28, 4 }
 0x19b   :  { %2550 = vmatprep.subr.mxu1 %v2615_v9  ;;  %v2084_v35 = vrot.slane %v2083_v32, 4 }
 0x19c   :  { %2551 = vmatpush3.msra.mxu1 %v754_v56  ;;  %v2092_v8 = vadd.f32 %v2091_v33, %v2090_v28 }
 0x19d   :  { %2552 = vmatprep.subr.mxu1 %v2615_v9  ;;  %v2085_v62 = vadd.f32 %v2084_v35, %v2083_v32 }
 0x19e   :  { %2553 = vmatpush3.msra.mxu1 %v747_v26  ;;  %v2093_v43 = vrot.slane %v2092_v8, 2 }
 0x19f   :  { %2554 = vmatprep.subr.mxu1 %v2615_v9  ;;  %v2086_v46 = vrot.slane %v2085_v62, 2 }
 0x1a0   :  { %2555 = vmatpush3.msra.mxu1 %v740_v27  ;;  %v2094_v49 = vadd.f32 %v2093_v43, %v2092_v8 }
 0x1a1   :  { %2556 = vmatprep.subr.mxu1 %v2615_v9  ;;  %v2087_v54 = vadd.f32 %v2086_v46, %v2085_v62 }
 0x1a2   :  { %2557 = vmatpush3.msra.mxu1 %v733_v29  ;;  %v2095_v60 = vrot.slane %v2094_v49, 1 }
 0x1a3   :  { %2558 = vmatprep.subr.mxu1 %v2615_v9  ;;  %v2088_v3 = vrot.slane %v2087_v54, 1 }
 0x1a4   :  { %2559 = vmatpush3.msra.mxu1 %v726_v34  ;;  %v2096_v13 = vadd.f32 %v2095_v60, %v2094_v49 }
 0x1a5   :  { %2560 = vmatprep.subr.mxu1 %v2615_v9  ;;  %v1231_v9 = vadd.f32 %v1230_v45, %v814_v44  ;;  %v2089_v1 = vadd.f32 %v2088_v3, %v2087_v54 }
 0x1a6   :  { %2561 = vmatpush3.msra.mxu1 %v719_v37  ;;  %v2133_v18 = vmul.f32 0.5, %v2096_v13 }
 0x1a7   :  { %2563 = vmatmul.mubr.msk.f32.vlgmr.msra.gmra.mxu1 %vm875_vm0, %v3226_v4  ;;  %v1302_v55 = vadd.f32 %v1301_v48, %v1231_v9  ;;  %v2132_v22 = vmul.f32 0.5, %v2089_v1  ;;  %v5069_v48 = vld [vmem:[%s5172_s3] sm:$0x7f] }
 0x1a8   :  { %v2140_v52 = vadd.f32 1e-05, %v2133_v18  ;;  %v2169_v9 = vrot.slane %v5069_v48, %v4701_v61 }
 0x1a9   :  { %v2139_v21 = vadd.f32 1e-05, %v2132_v22 }
 0x1aa   :  { %2571 = vrsqrt.f32 %v2140_v52 }
 0x1ab   :  { %2573 = vrsqrt.f32 %v2139_v21 }
 0x1af   :  { %v1370_v53 = vpop.f32.mrf.mxu1 }
 0x1b0   :  { %v1371_v57 = vadd.f32 %v1370_v53, %v1300_v51 }
 0x1b1   :  { %v1372_v58 = vpop.f32.mrf.mxu1  ;;  %v1441_v59 = vpop.f32.mrf.mxu0 }
 0x1b2   :  { %v1373_v4 = vadd.f32 %v1372_v58, %v1302_v55  ;;  %v1442_v0 = vadd.f32 %v1441_v59, %v1371_v57  ;;  %v2165_v55 = vrot.slane %v5069_v48, %v4716_v6  ;;  %v5080_v59 = vld [vmem:[%s5173_s4] sm:$0x7f] }
 0x1b3   :  { %v1443_v2 = vpop.f32.mrf.mxu0  ;;  %v2217_v1 = vrot.slane %v5080_v59, %v5046_v36 }
 0x1b4   :  { %v2025_v5 = vsel %vm2010_vm1, %v1442_v0, 0.0  ;;  %v1444_v7 = vadd.f32 %v1443_v2, %v1373_v4 }
 0x1b5   :  { %v2026_v11 = vrot.slane %v2025_v5, 4 }
 0x1b6   :  { %v2032_v14 = vsel %vm2010_vm1, %v1444_v7, 0.0 }
 0x1b7   :  { %v2027_v10 = vadd.f32 %v2026_v11, %v2025_v5  ;;  %v2033_v15 = vrot.slane %v2032_v14, 4  ;;  %v2572_v44 = vpop.eup %2571 }
 0x1b8   :  { %v2574_v47 = vpop.eup %2573  ;;  %v2154_v49 = vmul.f32 %v2572_v44, %v5008_v50  ;;  %v2213_v50 = vrot.slane %v5080_v59, %v4701_v61 }
 0x1b9   :  { %v2028_v16 = vrot.slane %v2027_v10, 2  ;;  %v2034_v17 = vadd.f32 %v2033_v15, %v2032_v14  ;;  %v2153_v54 = vmul.f32 %v2574_v47, %v5017_v31  ;;  %v2209_v31 = vrot.slane %v5080_v59, %v4716_v6 }
 0x1ba   :  { %v2198_v60 = vmul.f32 %v2169_v9, %v2154_v49  ;;  %v2173_v14 = vrot.slane %v5069_v48, %v5046_v36 }
 0x1bb   :  { %v2029_v19 = vadd.f32 %v2028_v16, %v2027_v10  ;;  %v2035_v20 = vrot.slane %v2034_v17, 2  ;;  %v2197_v2 = vmul.f32 %v2165_v55, %v2153_v54  ;;  %v2177_v16 = vrot.slane %v5069_v48, %v5053_v38 }
 0x1bc   :  { %v2242_v5 = vadd.f32 %v2213_v50, %v2198_v60  ;;  %v5115_v55 = vsub.s32 4, %v2967_v41 }
 0x1bd   :  { %v2030_v23 = vrot.slane %v2029_v19, 1  ;;  %v2036_v24 = vadd.f32 %v2035_v20, %v2034_v17  ;;  %v2221_v20 = vrot.slane %v5080_v59, %v5053_v38 }
 0x1be   :  { %v2257_v11 = vmul.f32 1.442695, %v2242_v5  ;;  %vm2249_vm3 = vcmp.gt.f32.partialorder %v2242_v5, 0.0  ;;  %v818_v60 = vrot.slane %v4727_v12, %v5115_v55 }
 0x1bf   :  { %v2031_v25 = vadd.f32 %v2030_v23, %v2029_v19  ;;  %v2037_v56 = vrot.slane %v2036_v24, 1 }
 0x1c1   :  { %v2064_v26 = vmul.f32 0.5, %v2031_v25  ;;  %v2038_v63 = vadd.f32 %v2037_v56, %v2036_v24 }
 0x1c3   :  { %v2071_v27 = vsub.f32 %v1442_v0, %v2064_v26  ;;  %v2065_v28 = vmul.f32 0.5, %v2038_v63 }
 0x1c5   :  { %v2078_v29 = vmul.f32 %v2071_v27, %v2071_v27  ;;  %v2072_v32 = vsub.f32 %v1444_v7, %v2065_v28  ;;  %v2241_v7 = vadd.f32 %v2209_v31, %v2197_v2 }
 0x1c7   :  { %v2097_v33 = vsel %vm2010_vm1, %v2078_v29, 0.0  ;;  %v2079_v34 = vmul.f32 %v2072_v32, %v2072_v32  ;;  %v2255_v13 = vmul.f32 1.442695, %v2241_v7  ;;  %vm2248_vm4 = vcmp.gt.f32.partialorder %v2241_v7, 0.0 }
 0x1c8   :  { %v2098_v35 = vrot.slane %v2097_v33, 4 }
 0x1c9   :  { %v2104_v37 = vsel %vm2010_vm1, %v2079_v34, 0.0  ;;  %v2328_v34 = vand.u32 127, %v799_v30 }
 0x1ca   :  { %v2099_v8 = vadd.f32 %v2098_v35, %v2097_v33  ;;  %v2105_v39 = vrot.slane %v2104_v37, 4 }
 0x1cc   :  { %v2100_v62 = vrot.slane %v2099_v8, 2  ;;  %v2106_v40 = vadd.f32 %v2105_v39, %v2104_v37 }
 0x1ce   :  { %v2101_v42 = vadd.f32 %v2100_v62, %v2099_v8  ;;  %v2107_v43 = vrot.slane %v2106_v40, 2 }
 0x1d0   :  { %v2102_v45 = vrot.slane %v2101_v42, 1  ;;  %v2108_v46 = vadd.f32 %v2107_v43, %v2106_v40  ;;  %v2331_v40 = vadd.s32 384, %v2328_v34 }
 0x1d2   :  { %v2103_v51 = vadd.f32 %v2102_v45, %v2101_v42  ;;  %v2109_v53 = vrot.slane %v2108_v46, 1  ;;  %vm2338_vm7 = vcmp.lt.s32.totalorder %v2331_v40, 432  ;;  %vm2367_vm8 = vcmp.ge.s32.totalorder %v2331_v40, 432 }
 0x1d4   :  { %v2134_v57 = vmul.f32 0.5, %v2103_v51  ;;  %v2110_v58 = vadd.f32 %v2109_v53, %v2108_v46 }
 0x1d6   :  { %v2141_v4 = vadd.f32 1e-05, %v2134_v57  ;;  %v2135_v0 = vmul.f32 0.5, %v2110_v58  ;;  %v5118_v57 = vsub.s32 5, %v2967_v41 }
 0x1d8   :  { %2575 = vrsqrt.f32 %v2141_v4  ;;  %v2142_v3 = vadd.f32 1e-05, %v2135_v0  ;;  %v822_v50 = vrot.slane %v4727_v12, %v5118_v57 }
 0x1da   :  { %2577 = vrsqrt.f32 %v2142_v3 }
 0x1db   :  { %2579 = vpow2.f32 %v2257_v11 }
 0x1dc   :  { %2581 = vpow2.f32 %v2255_v13 }
 0x1e5   :  { %v2576_v10 = vpop.eup %2575 }
 0x1e6   :  { %v2155_v15 = vmul.f32 %v2576_v10, %v2071_v27  ;;  %v5097_v27 = vld [vmem:[%s5174_s5] sm:$0x7f]  ;;  %s2393_s5 = sld [smem:[#allocation2]] }
 0x1e7   :  { %v2578_v17 = vpop.eup %2577  ;;  %v2292_v28 = vrot.slane %v5097_v27, %v4701_v61  ;;  %v2296_v8 = vrot.slane %v5097_v27, %v5046_v36  ;;  %v2300_v61 = vrot.slane %v5097_v27, %v5053_v38 }
 0x1e8   :  { %v2199_v18 = vmul.f32 %v2173_v14, %v2155_v15  ;;  %v2156_v19 = vmul.f32 %v2578_v17, %v2072_v32  ;;  %v2580_v56 = vpop.eup %2579  ;;  %v2288_v32 = vrot.slane %v5097_v27, %v4716_v6 }
 0x1e9   :  { %v2582_v21 = vpop.eup %2581  ;;  %v2413_v26 = vadd.f32 -1.0, %v2580_v56 }
 0x1ea   :  { %v2243_v22 = vadd.f32 %v2217_v1, %v2199_v18  ;;  %v2200_v23 = vmul.f32 %v2177_v16, %v2156_v19  ;;  %v2412_v63 = vadd.f32 -1.0, %v2582_v21 }
 0x1eb   :  { %v2277_v29 = vsel %vm2249_vm3, %v2242_v5, %v2413_v26 }
 0x1ec   :  { %v2259_v24 = vmul.f32 1.442695, %v2243_v22  ;;  %v2244_v52 = vadd.f32 %v2221_v20, %v2200_v23  ;;  %v2276_v33 = vsel %vm2248_vm4, %v2241_v7, %v2412_v63  ;;  %v2321_v35 = vmul.f32 %v2292_v28, %v2277_v29 }
 0x1ed   :  { %v2320_v39 = vmul.f32 %v2288_v32, %v2276_v33  ;;  %vm2250_vm5 = vcmp.gt.f32.partialorder %v2243_v22, 0.0 }
 0x1ee   :  { %2583 = vpow2.f32 %v2259_v24  ;;  %v2261_v25 = vmul.f32 1.442695, %v2244_v52  ;;  %v2350_v43 = vsel %vm2010_vm1, %v2321_v35, 0.0  ;;  %vm2251_vm6 = vcmp.gt.f32.partialorder %v2244_v52, 0.0 }
 0x1ef   :  { %v2349_v30 = vsel %vm2010_vm1, %v2320_v39, 0.0 }
 0x1f0   :  { %2585 = vpow2.f32 %v2261_v25  ;;  %v2351_v47 = vadd.f32 %v2350_v43, %v2349_v30 }
 0x1f1   :  { %v1512_v58 = vpop.f32.mrf.mxu0 }
 0x1f2   :  { %v1583_v4 = vpop.f32.mrf.mxu1  ;;  %v1513_v2 = vadd.f32 %v1512_v58, %v818_v60 }
 0x1f3   :  { %v1514_v0 = vpop.f32.mrf.mxu0 }
 0x1f4   :  { %v1515_v31 = vadd.f32 %v1514_v0, %v822_v50  ;;  %v1585_v3 = vpop.f32.mrf.mxu1  ;;  %v1584_v5 = vadd.f32 %v1583_v4, %v1513_v2 }
 0x1f6   :  { %v1586_v13 = vadd.f32 %v1585_v3, %v1515_v31 }
 0x1fb   :  { %v2584_v37 = vpop.eup %2583 }
 0x1fc   :  { %v2414_v62 = vadd.f32 -1.0, %v2584_v37 }
 0x1fd   :  { %v2586_v42 = vpop.eup %2585 }
 0x1fe   :  { %v2415_v44 = vadd.f32 -1.0, %v2586_v42  ;;  %v2278_v6 = vsel %vm2250_vm5, %v2243_v22, %v2414_v62 }
 0x1ff   :  { %v2322_v45 = vmul.f32 %v2296_v8, %v2278_v6 }
 0x200   :  { %v2279_v46 = vsel %vm2251_vm6, %v2244_v52, %v2415_v44 }
 0x201   :  { %v2323_v36 = vmul.f32 %v2300_v61, %v2279_v46  ;;  %v2352_v49 = vsel %vm2010_vm1, %v2322_v45, 0.0  ;;  %v5133_v45 = vsub.s32 6, %v2967_v41 }
 0x202   :  { %v2353_v9 = vadd.f32 %v2352_v49, %v2351_v47 }
 0x203   :  { %v2345_v51 = vsel %vm2338_vm7, %v2323_v36, 0.0  ;;  %v5111_v53 = vsel %vm2367_vm8, %v2323_v36, 0.0  ;;  %v826_v49 = vrot.slane %v4727_v12, %v5133_v45 }
 0x204   :  { %v2354_v38 = vsel %vm2010_vm1, %v2345_v51, 0.0 }
 0x205   :  { %v2355_v54 = vadd.f32 %v2354_v38, %v2353_v9 }
 0x207   :  { %2362 = vadd.xlane.f32.xlu0 %v2355_v54 }
 0x20b   :  { %v1725_v7 = vpop.f32.mrf.mxu1 }
 0x20d   :  { %v1727_v16 = vpop.f32.mrf.mxu1 }
 0x22c   :  { %v2452_v62 = vpop.f32.mrf.mxu1 }
 0x22e   :  { %v2453_v61 = vpop.f32.mrf.mxu1 }
 0x22f   :  { %v2454_v9 = vadd.f32 %v2453_v61, %v2452_v62 }
 0x231   :  { %v1797_v60 = vadd.f32 %v2454_v9, %v826_v49  ;;  %v2189_v9 = vrot.slane %v5069_v48, %v5133_v45 }
 0x235   :  { %v1654_v11 = vpop.f32.mrf.mxu0 }
 0x236   :  { %v1655_v14 = vadd.f32 %v1654_v11, %v1584_v5 }
 0x237   :  { %v1656_v10 = vpop.f32.mrf.mxu0 }
 0x238   :  { %v1726_v15 = vadd.f32 %v1725_v7, %v1655_v14  ;;  %v1657_v1 = vadd.f32 %v1656_v10, %v1586_v13 }
 0x23a   :  { %v2039_v17 = vsel %vm2010_vm1, %v1726_v15, 0.0  ;;  %v1728_v18 = vadd.f32 %v1727_v16, %v1657_v1 }
 0x23b   :  { %v2040_v19 = vrot.slane %v2039_v17, 4 }
 0x23c   :  { %v2046_v20 = vsel %vm2010_vm1, %v1728_v18, 0.0 }
 0x23d   :  { %v2041_v22 = vadd.f32 %v2040_v19, %v2039_v17  ;;  %v2047_v23 = vrot.slane %v2046_v20, 4 }
 0x23f   :  { %v2042_v24 = vrot.slane %v2041_v22, 2  ;;  %v2048_v52 = vadd.f32 %v2047_v23, %v2046_v20 }
 0x241   :  { %v2043_v25 = vadd.f32 %v2042_v24, %v2041_v22  ;;  %v2049_v56 = vrot.slane %v2048_v52, 2 }
 0x243   :  { %v2044_v21 = vrot.slane %v2043_v25, 1  ;;  %v2050_v26 = vadd.f32 %v2049_v56, %v2048_v52 }
 0x245   :  { %v2045_v63 = vadd.f32 %v2044_v21, %v2043_v25  ;;  %v2051_v28 = vrot.slane %v2050_v26, 1 }
 0x247   :  { %v2066_v29 = vmul.f32 0.5, %v2045_v63  ;;  %v2052_v32 = vadd.f32 %v2051_v28, %v2050_v26 }
 0x249   :  { %v2073_v33 = vsub.f32 %v1726_v15, %v2066_v29  ;;  %v2067_v34 = vmul.f32 0.5, %v2052_v32  ;;  %v2181_v29 = vrot.slane %v5069_v48, %v5115_v55 }
 0x24b   :  { %v2080_v35 = vmul.f32 %v2073_v33, %v2073_v33  ;;  %v5126_v37 = vsub.f32 %v1728_v18, %v2067_v34 }
 0x24d   :  { %v2111_v8 = vsel %vm2010_vm1, %v2080_v35, 0.0  ;;  %v2081_v39 = vmul.f32 %v5126_v37, %v5126_v37 }
 0x24e   :  { %v2112_v40 = vrot.slane %v2111_v8, 4  ;;  %v2487_v6 = vpop.f32.mrf.mxu1 }
 0x24f   :  { %v2118_v42 = vsel %vm2010_vm1, %v2081_v39, 0.0 }
 0x250   :  { %v2113_v43 = vadd.f32 %v2112_v40, %v2111_v8  ;;  %v2119_v44 = vrot.slane %v2118_v42, 4  ;;  %v2488_v36 = vpop.f32.mrf.mxu1  ;;  %v2225_v8 = vrot.slane %v5080_v59, %v5115_v55  ;;  %v2185_v40 = vrot.slane %v5069_v48, %v5118_v57 }
 0x251   :  { %v2489_v58 = vadd.f32 %v2488_v36, %v2487_v6  ;;  %v2308_v48 = vrot.slane %v5097_v27, %v5118_v57 }
 0x252   :  { %v2114_v46 = vrot.slane %v2113_v43, 2  ;;  %v2120_v47 = vadd.f32 %v2119_v44, %v2118_v42  ;;  %v2229_v44 = vrot.slane %v5080_v59, %v5118_v57 }
 0x253   :  { %v1867_v2 = vadd.f32 %v2489_v58, %v1797_v60 }
 0x254   :  { %v2115_v38 = vadd.f32 %v2114_v46, %v2113_v43  ;;  %v2121_v54 = vrot.slane %v2120_v47, 2 }
 0x256   :  { %v2116_v4 = vrot.slane %v2115_v38, 1  ;;  %v2122_v0 = vadd.f32 %v2121_v54, %v2120_v47  ;;  %v2233_v54 = vrot.slane %v5080_v59, %v5133_v45 }
 0x257   :  { %v2522_v30 = vpop.f32.mrf.mxu0 }
 0x258   :  { %v2117_v3 = vadd.f32 %v2116_v4, %v2115_v38  ;;  %v2123_v5 = vrot.slane %v2122_v0, 1 }
 0x259   :  { %v2523_v51 = vpop.f32.mrf.mxu0 }
 0x25a   :  { %v2524_v50 = vadd.f32 %v2523_v51, %v2522_v30  ;;  %v2136_v14 = vmul.f32 0.5, %v2117_v3  ;;  %v2124_v10 = vadd.f32 %v2123_v5, %v2122_v0  ;;  %v2394_v30 = vstv %s2393_s5 }
 0x25c   :  { %v1937_v31 = vadd.f32 %v2524_v50, %v1867_v2  ;;  %v2143_v16 = vadd.f32 1e-05, %v2136_v14  ;;  %v2137_v17 = vmul.f32 0.5, %v2124_v10  ;;  %v2383_v14 = vsel %vm2010_vm1, %v5111_v53, 0.0 }
 0x25e   :  { %2587 = vrsqrt.f32 %v2143_v16  ;;  %v2144_v20 = vadd.f32 1e-05, %v2137_v17 }
 0x260   :  { %2589 = vrsqrt.f32 %v2144_v20 }
 0x267   :  { %v2006_v41 = vpop.f32.mrf.mxu1 }
 0x268   :  { %v2007_v7 = vadd.f32 %v2006_v41, %v1937_v31  ;;  %v2304_v31 = vrot.slane %v5097_v27, %v5115_v55 }
 0x269   :  { %v2564_v11 = vpop.f32.mrf.mxu1 }
 0x26a   :  { %v2054_v13 = vsel %vm2053_vm9, %v2007_v7, 0.0 }
 0x26b   :  { %v2055_v12 = vrot.slane %v2054_v13, 4  ;;  %v2588_v26 = vpop.eup %2587 }
 0x26c   :  { %v2157_v28 = vmul.f32 %v2588_v26, %v2073_v33 }
 0x26d   :  { %v2056_v15 = vadd.f32 %v2055_v12, %v2054_v13  ;;  %v2590_v34 = vpop.eup %2589  ;;  %v2312_v12 = vrot.slane %v5097_v27, %v5133_v45 }
 0x26e   :  { %v2201_v39 = vmul.f32 %v2181_v29, %v2157_v28  ;;  %v2158_v62 = vmul.f32 %v2590_v34, %v5126_v37 }
 0x26f   :  { %v2057_v1 = vrot.slane %v2056_v15, 2 }
 0x270   :  { %v2245_v43 = vadd.f32 %v2225_v8, %v2201_v39  ;;  %v2202_v33 = vmul.f32 %v2185_v40, %v2158_v62 }
 0x271   :  { %v2058_v18 = vadd.f32 %v2057_v1, %v2056_v15 }
 0x272   :  { %v2263_v47 = vmul.f32 1.442695, %v2245_v43  ;;  %v2246_v36 = vadd.f32 %v2229_v44, %v2202_v33  ;;  %vm2252_vm11 = vcmp.gt.f32.partialorder %v2245_v43, 0.0 }
 0x273   :  { %v2059_v19 = vrot.slane %v2058_v18, 1 }
 0x274   :  { %v2265_v37 = vmul.f32 1.442695, %v2246_v36  ;;  %vm2253_vm12 = vcmp.gt.f32.partialorder %v2246_v36, 0.0 }
 0x275   :  { %v2060_v22 = vadd.f32 %v2059_v19, %v2058_v18  ;;  %v2399_v19 = vstv %s2419_s0 }
 0x277   :  { %v2068_v23 = vmul.f32 0.5, %v2060_v22 }
 0x279   :  { %v2075_v24 = vsub.f32 %v2007_v7, %v2068_v23 }
 0x27b   :  { %v2082_v52 = vmul.f32 %v2075_v24, %v2075_v24 }
 0x27d   :  { %v2125_v25 = vsel %vm2053_vm9, %v2082_v52, 0.0 }
 0x27e   :  { %v2126_v56 = vrot.slane %v2125_v25, 4 }
 0x280   :  { %v2127_v21 = vadd.f32 %v2126_v56, %v2125_v25 }
 0x282   :  { %v2128_v63 = vrot.slane %v2127_v21, 2 }
 0x284   :  { %v2129_v32 = vadd.f32 %v2128_v63, %v2127_v21 }
 0x286   :  { %v2130_v35 = vrot.slane %v2129_v32, 1 }
 0x288   :  { %v2131_v42 = vadd.f32 %v2130_v35, %v2129_v32 }
 0x28a   :  { %v2138_v61 = vmul.f32 0.5, %v2131_v42 }
 0x28c   :  { %v2145_v6 = vadd.f32 1e-05, %v2138_v61 }
 0x28e   :  { %2591 = vrsqrt.f32 %v2145_v6 }
 0x28f   :  { %2593 = vpow2.f32 %v2263_v47 }
 0x290   :  { %v2363_v46 = vpop.xlane.xlu0 %2362  ;;  %2595 = vpow2.f32 %v2265_v37 }
 0x291   :  { %v2395_v49 = vadd.f32 %v2394_v30, %v2363_v46 }
 0x293   :  { %2397 = vst.msk [vmem:[%s5176_s7] sm:$0x3] %vm2396_vm10, %v2395_v49 }
 0x29b   :  { %v2592_v51 = vpop.eup %2591 }
 0x29c   :  { %v2159_v38 = vmul.f32 %v2592_v51, %v2075_v24  ;;  %v2594_v50 = vpop.eup %2593 }
 0x29d   :  { %v2416_v0 = vadd.f32 -1.0, %v2594_v50  ;;  %v2596_v2 = vpop.eup %2595 }
 0x29e   :  { %v2203_v58 = vmul.f32 %v2189_v9, %v2159_v38  ;;  %v2417_v41 = vadd.f32 -1.0, %v2596_v2 }
 0x29f   :  { %v2280_v3 = vsel %vm2252_vm11, %v2245_v43, %v2416_v0 }
 0x2a0   :  { %v2247_v60 = vadd.f32 %v2233_v54, %v2203_v58  ;;  %v2324_v5 = vmul.f32 %v2304_v31, %v2280_v3  ;;  %v2281_v7 = vsel %vm2253_vm12, %v2246_v36, %v2417_v41 }
 0x2a1   :  { %v2325_v59 = vmul.f32 %v2308_v48, %v2281_v7 }
 0x2a2   :  { %v2267_v4 = vmul.f32 1.442695, %v2247_v60  ;;  %v2385_v11 = vsel %vm2010_vm1, %v2324_v5, 0.0  ;;  %vm2254_vm13 = vcmp.gt.f32.partialorder %v2247_v60, 0.0 }
 0x2a3   :  { %v2386_v55 = vadd.f32 %v2385_v11, %v2383_v14  ;;  %v2387_v15 = vsel %vm2010_vm1, %v2325_v59, 0.0 }
 0x2a4   :  { %2597 = vpow2.f32 %v2267_v4 }
 0x2a5   :  { %v2388_v57 = vadd.f32 %v2387_v15, %v2386_v55 }
 0x2b1   :  { %v2598_v13 = vpop.eup %2597 }
 0x2b2   :  { %v2418_v10 = vadd.f32 -1.0, %v2598_v13 }
 0x2b4   :  { %v2282_v1 = vsel %vm2254_vm13, %v2247_v60, %v2418_v10 }
 0x2b5   :  { %v2326_v16 = vmul.f32 %v2312_v12, %v2282_v1 }
 0x2b7   :  { %v2389_v17 = vsel %vm2053_vm9, %v2326_v16, 0.0 }
 0x2b8   :  { %v2390_v18 = vadd.f32 %v2389_v17, %v2388_v57 }
 0x2ba   :  { %2391 = vadd.xlane.f32.xlu0 %v2390_v18 }
 0x343   :  { %v2392_v20 = vpop.xlane.xlu0 %2391 }
 0x344   :  { %v2400_v27 = vadd.f32 %v2399_v19, %v2392_v20 }
 0x346   :  { %2402 = vst.msk [vmem:[%s5176_s7] sm:$0x3] %vm2401_vm14, %v2400_v27 }
 0x347   :  { %2407 = vsyncpa [#allocation3], 1 }

</bundles_post_ra>
